<compile_context>
chip_gen: v5e
topology: v5e:2x2
jax: 0.10.0
libtpu: 0.0.40
codegen_flags: <defaults>
</compile_context>

<pallas_src>
import jax
import jax.numpy as jnp
from jax import lax
from jax.experimental import pallas as pl
from jax.experimental.pallas import tpu as pltpu


# ----------------------------------------------------------------------------
# Kernel: AGCN forward (5 chained matmuls + row L2 normalize), fully fused.
# ----------------------------------------------------------------------------
def _agcn_kernel(x_ref, a_ref, w1_ref, w2_ref, out_ref):
    f32 = jnp.float32
    bf16 = jnp.bfloat16

    # bf16 operands for the MXU; accumulation stays f32.
    A = a_ref[...].astype(bf16)
    X = x_ref[...].astype(bf16)
    W1 = w1_ref[...].astype(bf16)
    W2 = w2_ref[...].astype(bf16)

    # Independent product first: w2 @ X depends on neither A nor the first
    # two matmuls -> interleaves with the serial chain (hides MXU drain).
    w2x = jnp.dot(W2, X, preferred_element_type=f32).astype(bf16)

    # aw1 = A @ w1
    aw1 = jnp.dot(A, W1, preferred_element_type=f32).astype(bf16)

    # h1 = aw1 @ A.T  -- contract dim 1 of both operands (no transpose op)
    h1 = lax.dot_general(aw1, A, (((1,), (1,)), ((), ())),
                         preferred_element_type=f32).astype(bf16)

    # h2 = h1 @ (w2 @ X)   ==   (h1 @ w2) @ X   (associativity)
    h2 = jnp.dot(h1, w2x, preferred_element_type=f32)

    # embed = h2 @ h2.T  -- again contract dim 1 of both operands
    h2b = h2.astype(bf16)
    embed = lax.dot_general(h2b, h2b, (((1,), (1,)), ((), ())),
                            preferred_element_type=f32)

    # F.normalize(embed, dim=1): embed / clamp_min(||row||_2, 1e-12)
    # Overflow-safe: scale each row by its abs-max before squaring.
    row_max = jnp.max(jnp.abs(embed), axis=1, keepdims=True)
    scale = jnp.maximum(row_max, 1e-30)
    scaled = embed / scale
    sumsq = jnp.sum(scaled * scaled, axis=1, keepdims=True)
    norm = scale * jnp.sqrt(sumsq)                 # == ||row||_2 exactly
    out_ref[...] = embed / jnp.maximum(norm, 1e-12)


# ----------------------------------------------------------------------------
# Python wrapper
# ----------------------------------------------------------------------------
_VMEM_SPEC = pl.BlockSpec(memory_space=pltpu.MemorySpace.VMEM)


def agcn_forward(X, A, w1, w2):
    n = X.shape[0]
    # Zero-pad to the next multiple of 128: keeps the output lane-dense
    # (unmasked vst). Padded rows/cols stay exactly zero through every
    # matmul and normalize to 0, so slicing back is semantics-preserving.
    n_pad = ((n + 127) // 128) * 128
    if n_pad != n:
        pad = ((0, n_pad - n), (0, n_pad - n))
        X, A, w1, w2 = (jnp.pad(t, pad) for t in (X, A, w1, w2))

    # Footprint: ~10 f32 N^2 arrays (inputs/out/intermediates) + bf16 copies;
    # double for headroom, floor 8 MiB, cap at v7x physical VMEM.
    vmem_bytes = int(min(64 * 2**20, max(8 * 2**20, 26 * n_pad * n_pad * 4)))

    out = pl.pallas_call(
        _agcn_kernel,
        out_shape=jax.ShapeDtypeStruct((n_pad, n_pad), jnp.float32),
        in_specs=[_VMEM_SPEC] * 4,
        out_specs=_VMEM_SPEC,
        compiler_params=pltpu.CompilerParams(vmem_limit_bytes=vmem_bytes),
        cost_estimate=pl.CostEstimate(
            flops=10 * n_pad ** 3,                 # 5 matmuls x 2*N^3
            transcendentals=n_pad,                 # one sqrt per row
            bytes_accessed=5 * n_pad * n_pad * 4,  # 4 inputs + 1 output
        ),
    )(X, A, w1, w2)

    return out[:n, :n] if n_pad != n else out


# ----------------------------------------------------------------------------
# References
# ----------------------------------------------------------------------------
def agcn_reference_f32(X, A, w1, w2):
    """Pure-JAX full-precision reference mirroring the PyTorch forward."""
    hp = jax.lax.Precision.HIGHEST
    H = jnp.dot(jnp.dot(A, w1, precision=hp), A.T, precision=hp)
    H = jnp.dot(jnp.dot(H, w2, precision=hp), X, precision=hp)
    embed = jnp.dot(H, H.T, precision=hp)
    norm = jnp.sqrt(jnp.sum(embed * embed, axis=1, keepdims=True))
    return embed / jnp.maximum(norm, 1e-12)


def agcn_reference_bf16(X, A, w1, w2):
    """Reference matching the kernel's bf16-operand / f32-accum numerics."""
    bf16, f32 = jnp.bfloat16, jnp.float32
    A_, X_ = A.astype(bf16), X.astype(bf16)
    W1, W2 = w1.astype(bf16), w2.astype(bf16)
    w2x = jnp.dot(W2, X_, preferred_element_type=f32).astype(bf16)
    aw1 = jnp.dot(A_, W1, preferred_element_type=f32).astype(bf16)
    h1 = lax.dot_general(aw1, A_, (((1,), (1,)), ((), ())),
                         preferred_element_type=f32).astype(bf16)
    h2 = jnp.dot(h1, w2x, preferred_element_type=f32)
    h2b = h2.astype(bf16)
    embed = lax.dot_general(h2b, h2b, (((1,), (1,)), ((), ())),
                            preferred_element_type=f32)
    row_max = jnp.maximum(jnp.max(jnp.abs(embed), axis=1, keepdims=True), 1e-30)
    scaled = embed / row_max
    norm = row_max * jnp.sqrt(jnp.sum(scaled * scaled, axis=1, keepdims=True))
    return embed / jnp.maximum(norm, 1e-12)


def _make_inputs(n, key):
    k_x, k_a, k_w1, k_w2 = jax.random.split(key, 4)
    X = jax.random.uniform(k_x, (n, n), jnp.float32)
    A_raw = jax.random.uniform(k_a, (n, n), jnp.float32)
    A = 0.5 * (A_raw + A_raw.T)
    # Module initializes w1/w2 to identity; add a small perturbation so the
    # matmuls are exercised non-trivially (forward semantics unchanged).
    eye = jnp.eye(n, dtype=jnp.float32)
    w1 = eye + 0.01 * jax.random.normal(k_w1, (n, n), jnp.float32)
    w2 = eye + 0.01 * jax.random.normal(k_w2, (n, n), jnp.float32)
    return X, A, w1, w2


def _check(n, key):
    X, A, w1, w2 = _make_inputs(n, key)
    embed = agcn_forward(X, A, w1, w2)
    jax.block_until_ready(embed)

    assert embed.shape == (n, n) and embed.dtype == jnp.float32
    assert bool(jnp.all(jnp.isfinite(embed)))

    # Tight check against a reference with matching bf16-operand numerics.
    ref_bf16 = agcn_reference_bf16(X, A, w1, w2)
    assert bool(jnp.allclose(embed, ref_bf16, atol=2e-3, rtol=2e-3))

    # Looser sanity check against the full-f32 reference (bf16 MXU operands
    # trade a small amount of precision for 3-8x MXU throughput).
    ref_f32 = agcn_reference_f32(X, A, w1, w2)
    assert bool(jnp.allclose(embed, ref_f32, atol=2.5e-2, rtol=2.5e-2))


if __name__ == "__main__":
    key = jax.random.PRNGKey(0)
    k0, k1 = jax.random.split(key)

    # N = 256: fully fills the 256x256 MXU on v6e/v7x (v5e's 128x128 MXUs
    # are tiled naturally too); still a small, VMEM-resident test shape.
    _check(256, k0)
    # Non-128-multiple size: exercises the zero-padding path in the wrapper.
    _check(100, k1)

    print("KERNEL_OK")
</pallas_src>

<mosaic_0001>
module attributes {stable_mosaic.version = 11 : i64} {
  func.func @_agcn_kernel(%arg0: memref<256x256xf32, #tpu.memory_space<vmem>>, %arg1: memref<256x256xf32, #tpu.memory_space<vmem>>, %arg2: memref<256x256xf32, #tpu.memory_space<vmem>>, %arg3: memref<256x256xf32, #tpu.memory_space<vmem>>, %arg4: memref<256x256xf32, #tpu.memory_space<vmem>>) attributes {dimension_semantics = [], scalar_prefetch = 0 : i64, scratch_operands = 0 : i64, tpu.core_type = #tpu.core_type<tc>} {
    %c0 = arith.constant 0 : index
    %c0_0 = arith.constant 0 : index
    %0 = vector.load %arg1[%c0, %c0_0] : memref<256x256xf32, #tpu.memory_space<vmem>>, vector<256x256xf32>
    %1 = arith.truncf %0 : vector<256x256xf32> to vector<256x256xbf16>
    %c0_1 = arith.constant 0 : index
    %c0_2 = arith.constant 0 : index
    %2 = vector.load %arg0[%c0_1, %c0_2] : memref<256x256xf32, #tpu.memory_space<vmem>>, vector<256x256xf32>
    %3 = arith.truncf %2 : vector<256x256xf32> to vector<256x256xbf16>
    %c0_3 = arith.constant 0 : index
    %c0_4 = arith.constant 0 : index
    %4 = vector.load %arg2[%c0_3, %c0_4] : memref<256x256xf32, #tpu.memory_space<vmem>>, vector<256x256xf32>
    %5 = arith.truncf %4 : vector<256x256xf32> to vector<256x256xbf16>
    %c0_5 = arith.constant 0 : index
    %c0_6 = arith.constant 0 : index
    %6 = vector.load %arg3[%c0_5, %c0_6] : memref<256x256xf32, #tpu.memory_space<vmem>>, vector<256x256xf32>
    %7 = arith.truncf %6 : vector<256x256xf32> to vector<256x256xbf16>
    %cst = arith.constant dense<0.000000e+00> : vector<256x256xf32>
    %8 = tpu.matmul %7, %3, %cst {dimension_numbers = #tpu.dot_dimension_numbers<[1], [0], [0], [1], [0, 0, 1, 1], [], []>} : vector<256x256xbf16>, vector<256x256xbf16>, vector<256x256xf32> -> vector<256x256xf32>
    %9 = arith.truncf %8 : vector<256x256xf32> to vector<256x256xbf16>
    %cst_7 = arith.constant dense<0.000000e+00> : vector<256x256xf32>
    %10 = tpu.matmul %1, %5, %cst_7 {dimension_numbers = #tpu.dot_dimension_numbers<[1], [0], [0], [1], [0, 0, 1, 1], [], []>} : vector<256x256xbf16>, vector<256x256xbf16>, vector<256x256xf32> -> vector<256x256xf32>
    %11 = arith.truncf %10 : vector<256x256xf32> to vector<256x256xbf16>
    %cst_8 = arith.constant dense<0.000000e+00> : vector<256x256xf32>
    %12 = tpu.matmul %11, %1, %cst_8 {dimension_numbers = #tpu.dot_dimension_numbers<[1], [1], [0], [0], [0, 0, 1, 0], [], []>} : vector<256x256xbf16>, vector<256x256xbf16>, vector<256x256xf32> -> vector<256x256xf32>
    %13 = arith.truncf %12 : vector<256x256xf32> to vector<256x256xbf16>
    %cst_9 = arith.constant dense<0.000000e+00> : vector<256x256xf32>
    %14 = tpu.matmul %13, %9, %cst_9 {dimension_numbers = #tpu.dot_dimension_numbers<[1], [0], [0], [1], [0, 0, 1, 1], [], []>} : vector<256x256xbf16>, vector<256x256xbf16>, vector<256x256xf32> -> vector<256x256xf32>
    %15 = arith.truncf %14 : vector<256x256xf32> to vector<256x256xbf16>
    %cst_10 = arith.constant dense<0.000000e+00> : vector<256x256xf32>
    %16 = tpu.matmul %15, %15, %cst_10 {dimension_numbers = #tpu.dot_dimension_numbers<[1], [1], [0], [0], [0, 0, 1, 0], [], []>} : vector<256x256xbf16>, vector<256x256xbf16>, vector<256x256xf32> -> vector<256x256xf32>
    %17 = math.absf %16 : vector<256x256xf32>
    %cst_11 = arith.constant dense<0xFF800000> : vector<256xf32>
    %18 = vector.multi_reduction <maximumf>, %17, %cst_11 [1] : vector<256x256xf32> to vector<256xf32>
    %19 = vector.shape_cast %18 : vector<256xf32> to vector<256x1xf32>
    %cst_12 = arith.constant 1.000000e-30 : f32
    %20 = vector.broadcast %cst_12 : f32 to vector<256x1xf32>
    %21 = arith.maximumf %19, %20 : vector<256x1xf32>
    %22 = vector.broadcast %21 : vector<256x1xf32> to vector<256x256xf32>
    %23 = arith.divf %16, %22 : vector<256x256xf32>
    %24 = arith.mulf %23, %23 : vector<256x256xf32>
    %cst_13 = arith.constant dense<0.000000e+00> : vector<256xf32>
    %25 = vector.multi_reduction <add>, %24, %cst_13 [1] : vector<256x256xf32> to vector<256xf32>
    %26 = vector.shape_cast %25 : vector<256xf32> to vector<256x1xf32>
    %27 = math.sqrt %26 : vector<256x1xf32>
    %28 = arith.mulf %21, %27 : vector<256x1xf32>
    %cst_14 = arith.constant 9.99999996E-13 : f32
    %29 = vector.broadcast %cst_14 : f32 to vector<256x1xf32>
    %30 = arith.maximumf %28, %29 : vector<256x1xf32>
    %31 = vector.broadcast %30 : vector<256x1xf32> to vector<256x256xf32>
    %32 = arith.divf %16, %31 : vector<256x256xf32>
    %c0_15 = arith.constant 0 : index
    %c0_16 = arith.constant 0 : index
    %33 = vector.load %arg4[%c0_15, %c0_16] : memref<256x256xf32, #tpu.memory_space<vmem>>, vector<256x256xf32>
    tpu.vector_store %arg4[%c0_15, %c0_16], %32 {strides = array<i32>} : memref<256x256xf32, #tpu.memory_space<vmem>>, vector<256x256xf32>,
    return
  }
}

</mosaic_0001>

<bundles_post_ra>
// kernel: tpu_custom_call.1
= control target key start
LH: loop header
LB: loop body
LE: loop exit
PB: predicated region body
PF: predicated region fallthrough
CT: control target
= control target key end

     0   :  { %9 = vsyncpa [#allocation3], 0  ;;  %s7352_s0 = inlined_call_operand.hbm [shape: f32[256,256], index: 0, kind: input, shape index: {}]   ;;  %s7353_s1 = inlined_call_operand.hbm [shape: f32[256,256], index: 1, kind: input, shape index: {}]   ;;  %s7354_s2 = inlined_call_operand.hbm [shape: f32[256,256], index: 2, kind: input, shape index: {}]   ;;  %s7355_s3 = inlined_call_operand.hbm [shape: f32[256,256], index: 3, kind: input, shape index: {}]   ;;  %s7356_s4 = inlined_call_operand.hbm [shape: f32[256,256], index: 4, kind: output, shape index: {}]  }
   0x1   :  { %10 = vsyncpa [#allocation6], 0 }
   0x2   :  { %11 = vsyncpa [#allocation9], 0 }
   0x3   :  { %12 = vsyncpa [#allocation4], 0  ;;  %s30_s17 = sshll.u32 %s7353_s1, 4  ;;  %s4609_s18 = smov [#allocation5]   ;;  %s31_s17 = int_to_ptr.hbm [resolvable:$true] %s30_s17 }
   0x4   :  { %s32_s19 = sshll.u32 %s4609_s18, 4  ;;  %s17_s22 = sshll.u32 %s7352_s0, 4  ;;  %s33_s19 = int_to_ptr.vmem [resolvable:$true] %s32_s19  ;;  %s18_s22 = int_to_ptr.hbm [resolvable:$true] %s17_s22 }
   0x5   :  { %s4610_s23 = smov 256   ;;  %s4611_s24 = smov 16  }
   0x6   :  { %38 = dma.hbm_to_vmem [thread:$0]  %s31_s17, 8192, %s33_s19, [#allocation6], %s4610_s23, %s4610_s23, %s4611_s24  }
   0x7   :  { %s4612_s25 = smov [#allocation2]   ;;  %s43_s1 = sshll.u32 %s7354_s2, 4  ;;  %s44_s1 = int_to_ptr.hbm [resolvable:$true] %s43_s1 }
   0x8   :  { %s19_s26 = sshll.u32 %s4612_s25, 4  ;;  %s56_s30 = sshll.u32 %s7355_s3, 4  ;;  %s20_s26 = int_to_ptr.vmem [resolvable:$true] %s19_s26  ;;  %s57_s30 = int_to_ptr.hbm [resolvable:$true] %s56_s30 }
   0x9   :  { %25 = dma.hbm_to_vmem [thread:$0]  %s18_s22, 8192, %s20_s26, [#allocation3], %s4610_s23, %s4610_s23, %s4611_s24  }
   0xa   :  { %s4613_s5 = smov [#allocation7]   ;;  %s4614_s7 = smov [#allocation8]  }
   0xb   :  { %s45_s6 = sshll.u32 %s4613_s5, 4  ;;  %s58_s2 = sshll.u32 %s4614_s7, 4  ;;  %s46_s6 = int_to_ptr.vmem [resolvable:$true] %s45_s6  ;;  %s59_s2 = int_to_ptr.vmem [resolvable:$true] %s58_s2 }
   0xc   :  { %51 = dma.hbm_to_vmem [thread:$0]  %s44_s1, 8192, %s46_s6, [#allocation6], %s4610_s23, %s4610_s23, %s4611_s24  }
   0xd   :  { %64 = dma.hbm_to_vmem [thread:$0]  %s57_s30, 8192, %s59_s2, [#allocation9], %s4610_s23, %s4610_s23, %s4611_s24  }
   0xe   :  { %4601 = dma.done.wait [#allocation3], 8192  }
   0xf   :  { %4602 = vsyncadd [#allocation3], 4294959104 }
  0x10   :  { %4603 = dma.done.wait [#allocation6], 16384  }
  0x11   :  { %4604 = vsyncadd [#allocation6], 4294950912 }
  0x12   :  { %4605 = dma.done.wait [#allocation9], 8192  }
  0x13   :  { %4606 = vsyncadd [#allocation9], 4294959104  ;;  %v205_v0 = vld [vmem:[#allocation2 + $0xe0] sm:$0xff]  ;;  %v207_v1 = vld [vmem:[#allocation2 + $0xf0] sm:$0xff]  ;;  %s4615_s3 = smov [#allocation10]   ;;  %s4267_s11 = sshll.u32 %s7356_s4, 4  ;;  %s4268_s11 = int_to_ptr.hbm [resolvable:$true] %s4267_s11 }
  0x14   :  { %v237_v2 = vld [vmem:[#allocation2 + $0x1e0] sm:$0xff]  ;;  %v255_v3 = vpack.c.bf16 %v207_v1, %v205_v0  ;;  %v239_v4 = vld [vmem:[#allocation2 + $0x1f0] sm:$0xff]  ;;  %v206_v5 = vld [vmem:[#allocation2 + $0xe8] sm:$0xff]  ;;  %s4265_s8 = sshll.u32 %s4615_s3, 4  ;;  %s4266_s8 = int_to_ptr.vmem [resolvable:$true] %s4265_s8 }
  0x15   :  { %v208_v6 = vld [vmem:[#allocation2 + $0xf8] sm:$0xff]  ;;  %v271_v7 = vpack.c.bf16 %v239_v4, %v237_v2  ;;  %v238_v9 = vld [vmem:[#allocation2 + $0x1e8] sm:$0xff]  ;;  %v201_v11 = vld [vmem:[#allocation2 + $0xc0] sm:$0xff] }
  0x16   :  { %v256_v8 = vpack.c.bf16 %v208_v6, %v206_v5  ;;  %v240_v10 = vld [vmem:[#allocation2 + $0x1f8] sm:$0xff]  ;;  %465 = vmatpush.bf16.msra.mxu0 %v255_v3  ;;  %v203_v13 = vld [vmem:[#allocation2 + $0xd0] sm:$0xff]  ;;  %v233_v14 = vld [vmem:[#allocation2 + $0x1c0] sm:$0xff] }
  0x17   :  { %v272_v12 = vpack.c.bf16 %v240_v10, %v238_v9  ;;  %v235_v15 = vld [vmem:[#allocation2 + $0x1d0] sm:$0xff]  ;;  %554 = vmatpush.bf16.msra.mxu1 %v271_v7  ;;  %v253_v16 = vpack.c.bf16 %v203_v13, %v201_v11  ;;  %v202_v18 = vld [vmem:[#allocation2 + $0xc8] sm:$0xff]  ;;  %v204_v19 = vld [vmem:[#allocation2 + $0xd8] sm:$0xff] }
  0x18   :  { %643 = vmatpush.bf16.msra.mxu2 %v256_v8  ;;  %v269_v17 = vpack.c.bf16 %v235_v15, %v233_v14  ;;  %v234_v20 = vld [vmem:[#allocation2 + $0x1c8] sm:$0xff]  ;;  %v254_v21 = vpack.c.bf16 %v204_v19, %v202_v18  ;;  %v236_v22 = vld [vmem:[#allocation2 + $0x1d8] sm:$0xff]  ;;  %v197_v23 = vld [vmem:[#allocation2 + $0xa0] sm:$0xff] }
  0x19   :  { %732 = vmatpush.bf16.msra.mxu3 %v272_v12  ;;  %v199_v24 = vld [vmem:[#allocation2 + $0xb0] sm:$0xff]  ;;  %v270_v25 = vpack.c.bf16 %v236_v22, %v234_v20  ;;  %v229_v26 = vld [vmem:[#allocation2 + $0x1a0] sm:$0xff]  ;;  %v198_v28 = vld [vmem:[#allocation2 + $0xa8] sm:$0xff] }
  0x1a   :  { %v231_v27 = vld [vmem:[#allocation2 + $0x1b0] sm:$0xff]  ;;  %466 = vmatpush.bf16.msra.mxu0 %v253_v16  ;;  %v251_v29 = vpack.c.bf16 %v199_v24, %v197_v23  ;;  %v200_v30 = vld [vmem:[#allocation2 + $0xb8] sm:$0xff]  ;;  %v230_v31 = vld [vmem:[#allocation2 + $0x1a8] sm:$0xff] }
  0x1b   :  { %v232_v32 = vld [vmem:[#allocation2 + $0x1b8] sm:$0xff]  ;;  %555 = vmatpush.bf16.msra.mxu1 %v269_v17  ;;  %v267_v33 = vpack.c.bf16 %v231_v27, %v229_v26  ;;  %v252_v34 = vpack.c.bf16 %v200_v30, %v198_v28  ;;  %v193_v35 = vld [vmem:[#allocation2 + $0x80] sm:$0xff]  ;;  %v195_v36 = vld [vmem:[#allocation2 + $0x90] sm:$0xff] }
  0x1c   :  { %644 = vmatpush.bf16.msra.mxu2 %v254_v21  ;;  %v225_v37 = vld [vmem:[#allocation2 + $0x180] sm:$0xff]  ;;  %v268_v38 = vpack.c.bf16 %v232_v32, %v230_v31  ;;  %v227_v39 = vld [vmem:[#allocation2 + $0x190] sm:$0xff]  ;;  %v194_v40 = vld [vmem:[#allocation2 + $0x88] sm:$0xff]  ;;  %v249_v44 = vpack.c.bf16 %v195_v36, %v193_v35 }
  0x1d   :  { %733 = vmatpush.bf16.msra.mxu3 %v270_v25  ;;  %v196_v41 = vld [vmem:[#allocation2 + $0x98] sm:$0xff]  ;;  %v226_v42 = vld [vmem:[#allocation2 + $0x188] sm:$0xff]  ;;  %v265_v45 = vpack.c.bf16 %v227_v39, %v225_v37  ;;  %v189_v47 = vld [vmem:[#allocation2 + $0x60] sm:$0xff] }
  0x1e   :  { %v228_v43 = vld [vmem:[#allocation2 + $0x198] sm:$0xff]  ;;  %467 = vmatpush.bf16.msra.mxu0 %v251_v29  ;;  %v250_v46 = vpack.c.bf16 %v196_v41, %v194_v40  ;;  %v191_v48 = vld [vmem:[#allocation2 + $0x70] sm:$0xff]  ;;  %v221_v49 = vld [vmem:[#allocation2 + $0x160] sm:$0xff] }
  0x1f   :  { %556 = vmatpush.bf16.msra.mxu1 %v267_v33  ;;  %v266_v50 = vpack.c.bf16 %v228_v43, %v226_v42  ;;  %v223_v51 = vld [vmem:[#allocation2 + $0x170] sm:$0xff]  ;;  %v190_v52 = vld [vmem:[#allocation2 + $0x68] sm:$0xff]  ;;  %v192_v53 = vld [vmem:[#allocation2 + $0x78] sm:$0xff]  ;;  %v247_v56 = vpack.c.bf16 %v191_v48, %v189_v47 }
  0x20   :  { %645 = vmatpush.bf16.msra.mxu2 %v252_v34  ;;  %v222_v54 = vld [vmem:[#allocation2 + $0x168] sm:$0xff]  ;;  %v224_v55 = vld [vmem:[#allocation2 + $0x178] sm:$0xff]  ;;  %v263_v57 = vpack.c.bf16 %v223_v51, %v221_v49  ;;  %v248_v58 = vpack.c.bf16 %v192_v53, %v190_v52  ;;  %v185_v59 = vld [vmem:[#allocation2 + $0x40] sm:$0xff] }
  0x21   :  { %734 = vmatpush.bf16.msra.mxu3 %v268_v38  ;;  %v187_v60 = vld [vmem:[#allocation2 + $0x50] sm:$0xff]  ;;  %v217_v61 = vld [vmem:[#allocation2 + $0x140] sm:$0xff]  ;;  %v264_v62 = vpack.c.bf16 %v224_v55, %v222_v54  ;;  %v186_v0 = vld [vmem:[#allocation2 + $0x48] sm:$0xff] }
  0x22   :  { %468 = vmatpush.bf16.msra.mxu0 %v249_v44  ;;  %v219_v63 = vld [vmem:[#allocation2 + $0x150] sm:$0xff]  ;;  %v188_v1 = vld [vmem:[#allocation2 + $0x58] sm:$0xff]  ;;  %v218_v2 = vld [vmem:[#allocation2 + $0x148] sm:$0xff]  ;;  %v245_v4 = vpack.c.bf16 %v187_v60, %v185_v59 }
  0x23   :  { %557 = vmatpush.bf16.msra.mxu1 %v265_v45  ;;  %v220_v3 = vld [vmem:[#allocation2 + $0x158] sm:$0xff]  ;;  %v261_v5 = vpack.c.bf16 %v219_v63, %v217_v61  ;;  %v246_v6 = vpack.c.bf16 %v188_v1, %v186_v0  ;;  %v181_v7 = vld [vmem:[#allocation2 + $0x20] sm:$0xff]  ;;  %v183_v8 = vld [vmem:[#allocation2 + $0x30] sm:$0xff] }
  0x24   :  { %646 = vmatpush.bf16.msra.mxu2 %v250_v46  ;;  %v213_v9 = vld [vmem:[#allocation2 + $0x120] sm:$0xff]  ;;  %v262_v10 = vpack.c.bf16 %v220_v3, %v218_v2  ;;  %v215_v11 = vld [vmem:[#allocation2 + $0x130] sm:$0xff]  ;;  %v182_v12 = vld [vmem:[#allocation2 + $0x28] sm:$0xff]  ;;  %v243_v16 = vpack.c.bf16 %v183_v8, %v181_v7 }
  0x25   :  { %735 = vmatpush.bf16.msra.mxu3 %v266_v50  ;;  %v184_v13 = vld [vmem:[#allocation2 + $0x38] sm:$0xff]  ;;  %v214_v14 = vld [vmem:[#allocation2 + $0x128] sm:$0xff]  ;;  %v259_v17 = vpack.c.bf16 %v215_v11, %v213_v9  ;;  %v177_v19 = vld [vmem:[#allocation2] sm:$0xff] }
  0x26   :  { %469 = vmatpush.bf16.msra.mxu0 %v247_v56  ;;  %v216_v15 = vld [vmem:[#allocation2 + $0x138] sm:$0xff]  ;;  %v244_v18 = vpack.c.bf16 %v184_v13, %v182_v12  ;;  %v179_v20 = vld [vmem:[#allocation2 + $0x10] sm:$0xff]  ;;  %v209_v21 = vld [vmem:[#allocation2 + $0x100] sm:$0xff] }
  0x27   :  { %558 = vmatpush.bf16.msra.mxu1 %v263_v57  ;;  %v260_v22 = vpack.c.bf16 %v216_v15, %v214_v14  ;;  %v211_v23 = vld [vmem:[#allocation2 + $0x110] sm:$0xff]  ;;  %v178_v24 = vld [vmem:[#allocation2 + $0x8] sm:$0xff]  ;;  %v180_v25 = vld [vmem:[#allocation2 + $0x18] sm:$0xff]  ;;  %v241_v28 = vpack.c.bf16 %v179_v20, %v177_v19 }
  0x28   :  { %647 = vmatpush.bf16.msra.mxu2 %v248_v58  ;;  %v210_v26 = vld [vmem:[#allocation2 + $0x108] sm:$0xff]  ;;  %v212_v27 = vld [vmem:[#allocation2 + $0x118] sm:$0xff]  ;;  %v369_v29 = vld [vmem:[#allocation8] sm:$0xff]  ;;  %v257_v31 = vpack.c.bf16 %v211_v23, %v209_v21  ;;  %v242_v32 = vpack.c.bf16 %v180_v25, %v178_v24 }
  0x29   :  { %736 = vmatpush.bf16.msra.mxu3 %v264_v62  ;;  %v371_v30 = vld [vmem:[#allocation8 + $0x10] sm:$0xff]  ;;  %v370_v33 = vld [vmem:[#allocation8 + $0x8] sm:$0xff]  ;;  %v372_v34 = vld [vmem:[#allocation8 + $0x18] sm:$0xff]  ;;  %v258_v35 = vpack.c.bf16 %v212_v27, %v210_v26 }
  0x2a   :  { %470 = vmatpush.bf16.msra.mxu0 %v245_v4  ;;  %v433_v36 = vpack.c.bf16 %v371_v30, %v369_v29  ;;  %v434_v37 = vpack.c.bf16 %v372_v34, %v370_v33  ;;  %v373_v38 = vld [vmem:[#allocation8 + $0x20] sm:$0xff]  ;;  %v375_v39 = vld [vmem:[#allocation8 + $0x30] sm:$0xff]  ;;  %v374_v40 = vld [vmem:[#allocation8 + $0x28] sm:$0xff] }
  0x2b   :  { %559 = vmatpush.bf16.msra.mxu1 %v261_v5  ;;  %v376_v41 = vld [vmem:[#allocation8 + $0x38] sm:$0xff]  ;;  %v435_v42 = vpack.c.bf16 %v375_v39, %v373_v38  ;;  %v377_v44 = vld [vmem:[#allocation8 + $0x40] sm:$0xff]  ;;  %v379_v45 = vld [vmem:[#allocation8 + $0x50] sm:$0xff] }
  0x2c   :  { %648 = vmatpush.bf16.msra.mxu2 %v246_v6  ;;  %v436_v43 = vpack.c.bf16 %v376_v41, %v374_v40  ;;  %v378_v46 = vld [vmem:[#allocation8 + $0x48] sm:$0xff]  ;;  %v380_v47 = vld [vmem:[#allocation8 + $0x58] sm:$0xff]  ;;  %v437_v48 = vpack.c.bf16 %v379_v45, %v377_v44  ;;  %v381_v50 = vld [vmem:[#allocation8 + $0x60] sm:$0xff] }
  0x2d   :  { %737 = vmatpush.bf16.msra.mxu3 %v262_v10  ;;  %v438_v49 = vpack.c.bf16 %v380_v47, %v378_v46  ;;  %v383_v51 = vld [vmem:[#allocation8 + $0x70] sm:$0xff]  ;;  %v382_v52 = vld [vmem:[#allocation8 + $0x68] sm:$0xff]  ;;  %v384_v53 = vld [vmem:[#allocation8 + $0x78] sm:$0xff] }
  0x2e   :  { %471 = vmatpush.bf16.msra.mxu0 %v243_v16  ;;  %v439_v54 = vpack.c.bf16 %v383_v51, %v381_v50  ;;  %v440_v55 = vpack.c.bf16 %v384_v53, %v382_v52  ;;  %v385_v56 = vld [vmem:[#allocation8 + $0x80] sm:$0xff]  ;;  %v387_v57 = vld [vmem:[#allocation8 + $0x90] sm:$0xff]  ;;  %v386_v58 = vld [vmem:[#allocation8 + $0x88] sm:$0xff] }
  0x2f   :  { %560 = vmatpush.bf16.msra.mxu1 %v259_v17  ;;  %v388_v59 = vld [vmem:[#allocation8 + $0x98] sm:$0xff]  ;;  %v441_v60 = vpack.c.bf16 %v387_v57, %v385_v56  ;;  %v389_v62 = vld [vmem:[#allocation8 + $0xa0] sm:$0xff]  ;;  %v391_v63 = vld [vmem:[#allocation8 + $0xb0] sm:$0xff] }
  0x30   :  { %649 = vmatpush.bf16.msra.mxu2 %v244_v18  ;;  %v442_v61 = vpack.c.bf16 %v388_v59, %v386_v58  ;;  %v390_v0 = vld [vmem:[#allocation8 + $0xa8] sm:$0xff]  ;;  %v392_v1 = vld [vmem:[#allocation8 + $0xb8] sm:$0xff]  ;;  %v443_v2 = vpack.c.bf16 %v391_v63, %v389_v62  ;;  %v393_v4 = vld [vmem:[#allocation8 + $0xc0] sm:$0xff] }
  0x31   :  { %738 = vmatpush.bf16.msra.mxu3 %v260_v22  ;;  %v444_v3 = vpack.c.bf16 %v392_v1, %v390_v0  ;;  %v395_v5 = vld [vmem:[#allocation8 + $0xd0] sm:$0xff]  ;;  %v394_v6 = vld [vmem:[#allocation8 + $0xc8] sm:$0xff]  ;;  %v396_v7 = vld [vmem:[#allocation8 + $0xd8] sm:$0xff] }
  0x32   :  { %472 = vmatpush.bf16.msra.mxu0 %v241_v28  ;;  %v445_v8 = vpack.c.bf16 %v395_v5, %v393_v4  ;;  %v446_v9 = vpack.c.bf16 %v396_v7, %v394_v6  ;;  %v397_v10 = vld [vmem:[#allocation8 + $0xe0] sm:$0xff]  ;;  %v399_v11 = vld [vmem:[#allocation8 + $0xf0] sm:$0xff]  ;;  %v398_v12 = vld [vmem:[#allocation8 + $0xe8] sm:$0xff] }
  0x33   :  { %561 = vmatpush.bf16.msra.mxu1 %v257_v31  ;;  %v400_v13 = vld [vmem:[#allocation8 + $0xf8] sm:$0xff]  ;;  %v447_v14 = vpack.c.bf16 %v399_v11, %v397_v10  ;;  %v401_v16 = vld [vmem:[#allocation8 + $0x100] sm:$0xff]  ;;  %v403_v17 = vld [vmem:[#allocation8 + $0x110] sm:$0xff] }
  0x34   :  { %650 = vmatpush.bf16.msra.mxu2 %v242_v32  ;;  %v448_v15 = vpack.c.bf16 %v400_v13, %v398_v12  ;;  %v402_v18 = vld [vmem:[#allocation8 + $0x108] sm:$0xff]  ;;  %v404_v19 = vld [vmem:[#allocation8 + $0x118] sm:$0xff]  ;;  %v449_v20 = vpack.c.bf16 %v403_v17, %v401_v16  ;;  %v405_v31 = vld [vmem:[#allocation8 + $0x120] sm:$0xff] }
  0x35   :  { %739 = vmatpush.bf16.msra.mxu3 %v258_v35  ;;  %473 = vmatmul.bf16.vlgmr.msra.gmra.mxu0 %v433_v36  ;;  %v450_v22 = vpack.c.bf16 %v404_v19, %v402_v18  ;;  %v407_v32 = vld [vmem:[#allocation8 + $0x130] sm:$0xff]  ;;  %v301_v34 = vld [vmem:[#allocation7 + $0xe0] sm:$0xff]  ;;  %v408_v38 = vld [vmem:[#allocation8 + $0x138] sm:$0xff] }
  0x36   :  { %562 = vmatmul.bf16.vlgmr.msra.gmra.mxu1 %v434_v37  ;;  %v303_v35 = vld [vmem:[#allocation7 + $0xf0] sm:$0xff]  ;;  %v304_v40 = vld [vmem:[#allocation7 + $0xf8] sm:$0xff]  ;;  %v297_v47 = vld [vmem:[#allocation7 + $0xc0] sm:$0xff] }
  0x37   :  { %651 = vmatmul.bf16.vlgmr.msra.gmra.mxu2 %v433_v36  ;;  %v302_v36 = vld [vmem:[#allocation7 + $0xe8] sm:$0xff]  ;;  %v351_v39 = vpack.c.bf16 %v303_v35, %v301_v34  ;;  %v300_v53 = vld [vmem:[#allocation7 + $0xd8] sm:$0xff]  ;;  %v293_v57 = vld [vmem:[#allocation7 + $0xa0] sm:$0xff] }
  0x38   :  { %740 = vmatmul.bf16.vlgmr.msra.gmra.mxu3 %v434_v37  ;;  %v406_v37 = vld [vmem:[#allocation8 + $0x128] sm:$0xff]  ;;  %v352_v41 = vpack.c.bf16 %v304_v40, %v302_v36  ;;  %v295_v58 = vld [vmem:[#allocation7 + $0xb0] sm:$0xff]  ;;  %v409_v11 = vld [vmem:[#allocation8 + $0x140] sm:$0xff] }
  0x39   :  { %853 = vmatpush.bf16.msrb.mxu0 %v351_v39  ;;  %v452_v46 = vpack.c.bf16 %v408_v38, %v406_v37  ;;  %v294_v59 = vld [vmem:[#allocation7 + $0xa8] sm:$0xff]  ;;  %v411_v12 = vld [vmem:[#allocation8 + $0x150] sm:$0xff]  ;;  %v412_v18 = vld [vmem:[#allocation8 + $0x158] sm:$0xff] }
  0x3a   :  { %1031 = vmatpush.bf16.msrb.mxu2 %v352_v41  ;;  %v290_v4 = vld [vmem:[#allocation7 + $0x88] sm:$0xff]  ;;  %v284_v37 = vld [vmem:[#allocation7 + $0x58] sm:$0xff]  ;;  %v277_v41 = vld [vmem:[#allocation7 + $0x20] sm:$0xff] }
  0x3b   :  { %v286_v16 = vld [vmem:[#allocation7 + $0x68] sm:$0xff]  ;;  %v425_v56 = vld [vmem:[#allocation8 + $0x1c0] sm:$0xff]  ;;  %v427_v33 = vld [vmem:[#allocation8 + $0x1d0] sm:$0xff] }
  0x3c   :  { %v410_v17 = vld [vmem:[#allocation8 + $0x148] sm:$0xff]  ;;  %v428_v40 = vld [vmem:[#allocation8 + $0x1d8] sm:$0xff] }
  0x45   :  { %478 = vmatmul.bf16.gmra.mxu0 %v435_v42 }
  0x46   :  { %567 = vmatmul.bf16.gmra.mxu1 %v436_v43 }
  0x47   :  { %656 = vmatmul.bf16.gmra.mxu2 %v435_v42 }
  0x48   :  { %745 = vmatmul.bf16.gmra.mxu3 %v436_v43  ;;  %v451_v43 = vpack.c.bf16 %v407_v32, %v405_v31  ;;  %v283_v31 = vld [vmem:[#allocation7 + $0x50] sm:$0xff]  ;;  %v282_v32 = vld [vmem:[#allocation7 + $0x48] sm:$0xff] }
  0x49   :  { %v342_v39 = vpack.c.bf16 %v284_v37, %v282_v32 }
  0x55   :  { %483 = vmatmul.bf16.gmra.mxu0 %v437_v48 }
  0x56   :  { %572 = vmatmul.bf16.gmra.mxu1 %v438_v49 }
  0x57   :  { %661 = vmatmul.bf16.gmra.mxu2 %v437_v48  ;;  %v299_v48 = vld [vmem:[#allocation7 + $0xd0] sm:$0xff] }
  0x58   :  { %750 = vmatmul.bf16.gmra.mxu3 %v438_v49  ;;  %v298_v49 = vld [vmem:[#allocation7 + $0xc8] sm:$0xff]  ;;  %v349_v52 = vpack.c.bf16 %v299_v48, %v297_v47  ;;  %v280_v47 = vld [vmem:[#allocation7 + $0x38] sm:$0xff] }
  0x5a   :  { %854 = vmatpush.bf16.msrb.mxu0 %v349_v52 }
  0x65   :  { %488 = vmatmul.bf16.gmra.mxu0 %v439_v54 }
  0x66   :  { %577 = vmatmul.bf16.gmra.mxu1 %v440_v55 }
  0x67   :  { %666 = vmatmul.bf16.gmra.mxu2 %v439_v54 }
  0x68   :  { %755 = vmatmul.bf16.gmra.mxu3 %v440_v55  ;;  %v350_v55 = vpack.c.bf16 %v300_v53, %v298_v49 }
  0x6a   :  { %1032 = vmatpush.bf16.msrb.mxu2 %v350_v55  ;;  %v273_v55 = vld [vmem:[#allocation7] sm:$0xff] }
  0x75   :  { %493 = vmatmul.bf16.gmra.mxu0 %v441_v60 }
  0x76   :  { %582 = vmatmul.bf16.gmra.mxu1 %v442_v61 }
  0x77   :  { %671 = vmatmul.bf16.gmra.mxu2 %v441_v60  ;;  %v347_v60 = vpack.c.bf16 %v295_v58, %v293_v57  ;;  %v275_v57 = vld [vmem:[#allocation7 + $0x10] sm:$0xff]  ;;  %v274_v58 = vld [vmem:[#allocation7 + $0x8] sm:$0xff] }
  0x78   :  { %760 = vmatmul.bf16.gmra.mxu3 %v442_v61  ;;  %v296_v61 = vld [vmem:[#allocation7 + $0xb8] sm:$0xff] }
  0x79   :  { %v348_v62 = vpack.c.bf16 %v296_v61, %v294_v59  ;;  %855 = vmatpush.bf16.msrb.mxu0 %v347_v60  ;;  %v337_v61 = vpack.c.bf16 %v275_v57, %v273_v55  ;;  %v417_v55 = vld [vmem:[#allocation8 + $0x180] sm:$0xff]  ;;  %v419_v57 = vld [vmem:[#allocation8 + $0x190] sm:$0xff] }
  0x7b   :  { %1033 = vmatpush.bf16.msrb.mxu2 %v348_v62  ;;  %v276_v62 = vld [vmem:[#allocation7 + $0x18] sm:$0xff] }
  0x85   :  { %498 = vmatmul.bf16.gmra.mxu0 %v443_v2 }
  0x86   :  { %587 = vmatmul.bf16.gmra.mxu1 %v444_v3 }
  0x87   :  { %676 = vmatmul.bf16.gmra.mxu2 %v443_v2  ;;  %v289_v2 = vld [vmem:[#allocation7 + $0x80] sm:$0xff] }
  0x88   :  { %765 = vmatmul.bf16.gmra.mxu3 %v444_v3  ;;  %v291_v3 = vld [vmem:[#allocation7 + $0x90] sm:$0xff] }
  0x89   :  { %v345_v7 = vpack.c.bf16 %v291_v3, %v289_v2  ;;  %v338_v2 = vpack.c.bf16 %v276_v62, %v274_v58  ;;  %v418_v58 = vld [vmem:[#allocation8 + $0x188] sm:$0xff]  ;;  %v457_v62 = vpack.c.bf16 %v419_v57, %v417_v55  ;;  %v325_v57 = vld [vmem:[#allocation7 + $0x1a0] sm:$0xff] }
  0x8b   :  { %856 = vmatpush.bf16.msrb.mxu0 %v345_v7  ;;  %v413_v7 = vld [vmem:[#allocation8 + $0x160] sm:$0xff] }
  0x95   :  { %503 = vmatmul.bf16.gmra.mxu0 %v445_v8 }
  0x96   :  { %592 = vmatmul.bf16.gmra.mxu1 %v446_v9 }
  0x97   :  { %681 = vmatmul.bf16.gmra.mxu2 %v445_v8  ;;  %v292_v8 = vld [vmem:[#allocation7 + $0x98] sm:$0xff] }
  0x98   :  { %770 = vmatmul.bf16.gmra.mxu3 %v446_v9  ;;  %v346_v10 = vpack.c.bf16 %v292_v8, %v290_v4  ;;  %v141_v4 = vld [vmem:[#allocation5 + $0x1e0] sm:$0xff] }
  0x9a   :  { %1034 = vmatpush.bf16.msrb.mxu2 %v346_v10  ;;  %v113_v10 = vld [vmem:[#allocation5 + $0x100] sm:$0xff] }
  0xa5   :  { %508 = vmatmul.bf16.gmra.mxu0 %v447_v14 }
  0xa6   :  { %597 = vmatmul.bf16.gmra.mxu1 %v448_v15 }
  0xa7   :  { %686 = vmatmul.bf16.gmra.mxu2 %v447_v14  ;;  %v285_v14 = vld [vmem:[#allocation7 + $0x60] sm:$0xff] }
  0xa8   :  { %775 = vmatmul.bf16.gmra.mxu3 %v448_v15  ;;  %v287_v15 = vld [vmem:[#allocation7 + $0x70] sm:$0xff] }
  0xa9   :  { %v343_v19 = vpack.c.bf16 %v287_v15, %v285_v14  ;;  %v335_v14 = vld [vmem:[#allocation7 + $0x1f0] sm:$0xff]  ;;  %v414_v15 = vld [vmem:[#allocation8 + $0x168] sm:$0xff] }
  0xab   :  { %857 = vmatpush.bf16.msrb.mxu0 %v343_v19 }
  0xb2   :  { %v474_v21 = vpop.f32.mrf.mxu0 }
  0xb3   :  { %v563_v23 = vpop.f32.mrf.mxu1 }
  0xb4   :  { %v4665_v24 = vadd.f32 %v563_v23, %v474_v21  ;;  %v453_v23 = vpack.c.bf16 %v411_v12, %v409_v11  ;;  %v415_v11 = vld [vmem:[#allocation8 + $0x170] sm:$0xff]  ;;  %v333_v12 = vld [vmem:[#allocation7 + $0x1e0] sm:$0xff] }
  0xb5   :  { %513 = vmatmul.bf16.gmra.mxu0 %v449_v20  ;;  %v455_v19 = vpack.c.bf16 %v415_v11, %v413_v7  ;;  %v97_v7 = vld [vmem:[#allocation5 + $0x80] sm:$0xff]  ;;  %v99_v11 = vld [vmem:[#allocation5 + $0x90] sm:$0xff] }
  0xb6   :  { %602 = vmatmul.bf16.gmra.mxu1 %v450_v22 }
  0xb7   :  { %691 = vmatmul.bf16.gmra.mxu2 %v449_v20  ;;  %v288_v20 = vld [vmem:[#allocation7 + $0x78] sm:$0xff] }
  0xb8   :  { %780 = vmatmul.bf16.gmra.mxu3 %v450_v22  ;;  %v344_v21 = vpack.c.bf16 %v288_v20, %v286_v16  ;;  %v416_v16 = vld [vmem:[#allocation8 + $0x178] sm:$0xff] }
  0xba   :  { %v652_v25 = vpop.f32.mrf.mxu2  ;;  %v476_v27 = vpop.f32.mrf.mxu0  ;;  %1035 = vmatpush.bf16.msrb.mxu2 %v344_v21 }
  0xbb   :  { %v741_v26 = vpop.f32.mrf.mxu3  ;;  %v565_v29 = vpop.f32.mrf.mxu1 }
  0xbc   :  { %v4667_v28 = vadd.f32 %v741_v26, %v652_v25  ;;  %v4669_v30 = vadd.f32 %v565_v29, %v476_v27  ;;  %v454_v27 = vpack.c.bf16 %v412_v18, %v410_v17  ;;  %v281_v29 = vld [vmem:[#allocation7 + $0x40] sm:$0xff]  ;;  %v367_v17 = vpack.c.bf16 %v335_v14, %v333_v12 }
  0xbd   :  { %v341_v36 = vpack.c.bf16 %v283_v31, %v281_v29  ;;  %v137_v29 = vld [vmem:[#allocation5 + $0x1c0] sm:$0xff] }
  0xbe   :  { %1036 = vmatpush.bf16.msrb.mxu2 %v342_v39  ;;  %942 = vmatpush.bf16.msrb.mxu1 %v367_v17  ;;  %v129_v12 = vld [vmem:[#allocation5 + $0x180] sm:$0xff] }
  0xbf   :  { %858 = vmatpush.bf16.msrb.mxu0 %v341_v36 }
  0xc2   :  { %v654_v42 = vpop.f32.mrf.mxu2  ;;  %v479_v45 = vpop.f32.mrf.mxu0 }
  0xc3   :  { %v743_v44 = vpop.f32.mrf.mxu3  ;;  %v568_v51 = vpop.f32.mrf.mxu1 }
  0xc4   :  { %v4673_v50 = vadd.f32 %v743_v44, %v654_v42  ;;  %v4675_v54 = vadd.f32 %v568_v51, %v479_v45  ;;  %v279_v42 = vld [vmem:[#allocation7 + $0x30] sm:$0xff]  ;;  %v334_v44 = vld [vmem:[#allocation7 + $0x1e8] sm:$0xff]  ;;  %v336_v45 = vld [vmem:[#allocation7 + $0x1f8] sm:$0xff] }
  0xc5   :  { %518 = vmatmul.bf16.gmra.mxu0 %v451_v43  ;;  %v368_v48 = vpack.c.bf16 %v336_v45, %v334_v44  ;;  %v101_v45 = vld [vmem:[#allocation5 + $0xa0] sm:$0xff] }
  0xc6   :  { %607 = vmatmul.bf16.gmra.mxu1 %v452_v46 }
  0xc7   :  { %696 = vmatmul.bf16.gmra.mxu2 %v451_v43  ;;  %v278_v43 = vld [vmem:[#allocation7 + $0x28] sm:$0xff]  ;;  %1120 = vmatpush.bf16.msrb.mxu3 %v368_v48 }
  0xc8   :  { %785 = vmatmul.bf16.gmra.mxu3 %v452_v46  ;;  %v339_v46 = vpack.c.bf16 %v279_v42, %v277_v41  ;;  %v340_v49 = vpack.c.bf16 %v280_v47, %v278_v43  ;;  %v133_v47 = vld [vmem:[#allocation5 + $0x1a0] sm:$0xff] }
  0xca   :  { %v657_v63 = vpop.f32.mrf.mxu2  ;;  %v481_v1 = vpop.f32.mrf.mxu0  ;;  %859 = vmatpush.bf16.msrb.mxu0 %v339_v46  ;;  %1037 = vmatpush.bf16.msrb.mxu2 %v340_v49  ;;  %v103_v46 = vld [vmem:[#allocation5 + $0xb0] sm:$0xff] }
  0xcb   :  { %v746_v0 = vpop.f32.mrf.mxu3  ;;  %v570_v6 = vpop.f32.mrf.mxu1  ;;  %v4719_v49 = vpack.c.bf16 %v103_v46, %v101_v45  ;;  %v125_v45 = vld [vmem:[#allocation5 + $0x160] sm:$0xff] }
  0xcc   :  { %v4679_v5 = vadd.f32 %v746_v0, %v657_v63  ;;  %v4681_v9 = vadd.f32 %v570_v6, %v481_v1  ;;  %v109_v63 = vld [vmem:[#allocation5 + $0xe0] sm:$0xff]  ;;  %v111_v0 = vld [vmem:[#allocation5 + $0xf0] sm:$0xff] }
  0xcd   :  { %v4695_v3 = vpack.c.bf16 %v111_v0, %v109_v63  ;;  %v143_v6 = vld [vmem:[#allocation5 + $0x1f0] sm:$0xff]  ;;  %7490 = vst [vmem:[#allocation19_spill] sm:$0xff] %v4719_v49 }
  0xce   :  { %v4697_v8 = vpack.c.bf16 %v143_v6, %v141_v4  ;;  %860 = vmatpush.bf16.msrb.mxu0 %v337_v61  ;;  %1038 = vmatpush.bf16.msrb.mxu2 %v338_v2 }
  0xcf   :  { %7486 = vst [vmem:[#allocation15_spill] sm:$0xff] %v4695_v3 }
  0xd0   :  { %7487 = vst [vmem:[#allocation16_spill] sm:$0xff] %v4697_v8 }
  0xd2   :  { %v659_v22 = vpop.f32.mrf.mxu2  ;;  %v484_v26 = vpop.f32.mrf.mxu0  ;;  %1241 = vmatpush.bf16.xpose.msra.mxu0 %v4695_v3  ;;  %1419 = vmatpush.bf16.xpose.msra.mxu2 %v4697_v8 }
  0xd3   :  { %v748_v25 = vpop.f32.mrf.mxu3  ;;  %v573_v35 = vpop.f32.mrf.mxu1 }
  0xd4   :  { %v4685_v34 = vadd.f32 %v748_v25, %v659_v22  ;;  %v4687_v38 = vadd.f32 %v573_v35, %v484_v26  ;;  %v456_v22 = vpack.c.bf16 %v416_v16, %v414_v15  ;;  %v105_v26 = vld [vmem:[#allocation5 + $0xc0] sm:$0xff]  ;;  %v139_v35 = vld [vmem:[#allocation5 + $0x1d0] sm:$0xff]  ;;  %v4731_v15 = vpack.c.bf16 %v99_v11, %v97_v7  ;;  %v424_v7 = vld [vmem:[#allocation8 + $0x1b8] sm:$0xff] }
  0xd5   :  { %523 = vmatmul.bf16.gmra.mxu0 %v453_v23  ;;  %v4711_v37 = vpack.c.bf16 %v139_v35, %v137_v29  ;;  %v131_v16 = vld [vmem:[#allocation5 + $0x190] sm:$0xff] }
  0xd6   :  { %612 = vmatmul.bf16.gmra.mxu1 %v454_v27 }
  0xd7   :  { %701 = vmatmul.bf16.gmra.mxu2 %v453_v23  ;;  %7489 = vst [vmem:[#allocation18_spill] sm:$0xff] %v4711_v37 }
  0xd8   :  { %790 = vmatmul.bf16.gmra.mxu3 %v454_v27  ;;  %v107_v27 = vld [vmem:[#allocation5 + $0xd0] sm:$0xff] }
  0xd9   :  { %v4707_v32 = vpack.c.bf16 %v107_v27, %v105_v26  ;;  %v331_v26 = vld [vmem:[#allocation7 + $0x1d0] sm:$0xff] }
  0xda   :  { %v662_v51 = vpop.f32.mrf.mxu2  ;;  %v486_v53 = vpop.f32.mrf.mxu0  ;;  %1420 = vmatpush.bf16.xpose.msra.mxu2 %v4711_v37  ;;  %v82_v37 = vld [vmem:[#allocation5 + $0x8] sm:$0xff] }
  0xdb   :  { %v751_v52 = vpop.f32.mrf.mxu3  ;;  %v575_v60 = vpop.f32.mrf.mxu1  ;;  %7488 = vst [vmem:[#allocation17_spill] sm:$0xff] %v4707_v32  ;;  %1242 = vmatpush.bf16.xpose.msra.mxu0 %v4707_v32 }
  0xdc   :  { %v4691_v59 = vadd.f32 %v751_v52, %v662_v51  ;;  %v4693_v1 = vadd.f32 %v575_v60, %v486_v53  ;;  %v135_v51 = vld [vmem:[#allocation5 + $0x1b0] sm:$0xff]  ;;  %v420_v60 = vld [vmem:[#allocation8 + $0x198] sm:$0xff] }
  0xdd   :  { %v4721_v52 = vpack.c.bf16 %v135_v51, %v133_v47  ;;  %v458_v2 = vpack.c.bf16 %v420_v60, %v418_v58  ;;  %v127_v51 = vld [vmem:[#allocation5 + $0x170] sm:$0xff]  ;;  %v326_v60 = vld [vmem:[#allocation7 + $0x1a8] sm:$0xff] }
  0xde   :  { %v4745_v55 = vpack.c.bf16 %v127_v51, %v125_v45  ;;  %v327_v58 = vld [vmem:[#allocation7 + $0x1b0] sm:$0xff]  ;;  %v121_v45 = vld [vmem:[#allocation5 + $0x140] sm:$0xff] }
  0xdf   :  { %7491 = vst [vmem:[#allocation20_spill] sm:$0xff] %v4721_v52 }
  0xe0   :  { %7493 = vst [vmem:[#allocation22_spill] sm:$0xff] %v4745_v55 }
  0xe2   :  { %v664_v18 = vpop.f32.mrf.mxu2  ;;  %v489_v21 = vpop.f32.mrf.mxu0  ;;  %1421 = vmatpush.bf16.xpose.msra.mxu2 %v4721_v52  ;;  %v84_v52 = vld [vmem:[#allocation5 + $0x18] sm:$0xff] }
  0xe3   :  { %v753_v20 = vpop.f32.mrf.mxu3  ;;  %v578_v25 = vpop.f32.mrf.mxu1  ;;  %1243 = vmatpush.bf16.xpose.msra.mxu0 %v4719_v49 }
  0xe4   :  { %v4703_v23 = vadd.f32 %v753_v20, %v664_v18  ;;  %v4705_v31 = vadd.f32 %v578_v25, %v489_v21  ;;  %v4735_v18 = vpack.c.bf16 %v131_v16, %v129_v12  ;;  %v332_v20 = vld [vmem:[#allocation7 + $0x1d8] sm:$0xff]  ;;  %v329_v25 = vld [vmem:[#allocation7 + $0x1c0] sm:$0xff] }
  0xe5   :  { %528 = vmatmul.bf16.gmra.mxu0 %v455_v19  ;;  %v365_v35 = vpack.c.bf16 %v331_v26, %v329_v25 }
  0xe6   :  { %617 = vmatmul.bf16.gmra.mxu1 %v456_v22  ;;  %7492 = vst [vmem:[#allocation21_spill] sm:$0xff] %v4735_v18 }
  0xe7   :  { %706 = vmatmul.bf16.gmra.mxu2 %v455_v19  ;;  %v330_v19 = vld [vmem:[#allocation7 + $0x1c8] sm:$0xff]  ;;  %943 = vmatpush.bf16.msrb.mxu1 %v365_v35 }
  0xe8   :  { %795 = vmatmul.bf16.gmra.mxu3 %v456_v22  ;;  %v366_v21 = vpack.c.bf16 %v332_v20, %v330_v19  ;;  %v321_v19 = vld [vmem:[#allocation7 + $0x180] sm:$0xff]  ;;  %v323_v20 = vld [vmem:[#allocation7 + $0x190] sm:$0xff] }
  0xea   :  { %v667_v39 = vpop.f32.mrf.mxu2  ;;  %v491_v42 = vpop.f32.mrf.mxu0  ;;  %1422 = vmatpush.bf16.xpose.msra.mxu2 %v4735_v18  ;;  %1121 = vmatpush.bf16.msrb.mxu3 %v366_v21  ;;  %v322_v21 = vld [vmem:[#allocation7 + $0x188] sm:$0xff] }
  0xeb   :  { %v756_v41 = vpop.f32.mrf.mxu3  ;;  %v580_v44 = vpop.f32.mrf.mxu1  ;;  %1244 = vmatpush.bf16.xpose.msra.mxu0 %v4731_v15 }
  0xec   :  { %v4715_v43 = vadd.f32 %v756_v41, %v667_v39  ;;  %v4717_v48 = vadd.f32 %v580_v44, %v491_v42  ;;  %v93_v42 = vld [vmem:[#allocation5 + $0x60] sm:$0xff]  ;;  %v95_v44 = vld [vmem:[#allocation5 + $0x70] sm:$0xff] }
  0xed   :  { %v4743_v47 = vpack.c.bf16 %v95_v44, %v93_v42  ;;  %v89_v42 = vld [vmem:[#allocation5 + $0x40] sm:$0xff]  ;;  %v91_v44 = vld [vmem:[#allocation5 + $0x50] sm:$0xff] }
  0xee   :  { %v4759_v51 = vpack.c.bf16 %v91_v44, %v89_v42  ;;  %v85_v42 = vld [vmem:[#allocation5 + $0x20] sm:$0xff]  ;;  %v87_v44 = vld [vmem:[#allocation5 + $0x30] sm:$0xff] }
  0xf2   :  { %v669_v61 = vpop.f32.mrf.mxu2  ;;  %v494_v0 = vpop.f32.mrf.mxu0  ;;  %1423 = vmatpush.bf16.xpose.msra.mxu2 %v4745_v55 }
  0xf3   :  { %v758_v63 = vpop.f32.mrf.mxu3  ;;  %v583_v6 = vpop.f32.mrf.mxu1  ;;  %1245 = vmatpush.bf16.xpose.msra.mxu0 %v4743_v47 }
  0xf4   :  { %v4727_v4 = vadd.f32 %v758_v63, %v669_v61  ;;  %v4729_v14 = vadd.f32 %v583_v6, %v494_v0  ;;  %v423_v63 = vld [vmem:[#allocation8 + $0x1b0] sm:$0xff]  ;;  %v363_v0 = vpack.c.bf16 %v327_v58, %v325_v57  ;;  %v422_v6 = vld [vmem:[#allocation8 + $0x1a8] sm:$0xff] }
  0xf5   :  { %533 = vmatmul.bf16.gmra.mxu0 %v457_v62  ;;  %v460_v26 = vpack.c.bf16 %v424_v7, %v422_v6  ;;  %v123_v57 = vld [vmem:[#allocation5 + $0x150] sm:$0xff] }
  0xf6   :  { %622 = vmatmul.bf16.gmra.mxu1 %v458_v2  ;;  %v4761_v58 = vpack.c.bf16 %v123_v57, %v121_v45  ;;  %v117_v45 = vld [vmem:[#allocation5 + $0x120] sm:$0xff]  ;;  %v4773_v57 = vpack.c.bf16 %v87_v44, %v85_v42  ;;  %v461_v42 = vpack.c.bf16 %v427_v33, %v425_v56  ;;  %v307_v44 = vld [vmem:[#allocation7 + $0x110] sm:$0xff] }
  0xf7   :  { %711 = vmatmul.bf16.gmra.mxu2 %v457_v62  ;;  %v421_v62 = vld [vmem:[#allocation8 + $0x1a0] sm:$0xff]  ;;  %944 = vmatpush.bf16.msrb.mxu1 %v363_v0  ;;  %v320_v0 = vld [vmem:[#allocation7 + $0x178] sm:$0xff]  ;;  %v115_v33 = vld [vmem:[#allocation5 + $0x110] sm:$0xff] }
  0xf8   :  { %800 = vmatmul.bf16.gmra.mxu3 %v458_v2  ;;  %v328_v2 = vld [vmem:[#allocation7 + $0x1b8] sm:$0xff]  ;;  %v459_v16 = vpack.c.bf16 %v423_v63, %v421_v62  ;;  %7494 = vst [vmem:[#allocation23_spill] sm:$0xff] %v4761_v58  ;;  %v319_v62 = vld [vmem:[#allocation7 + $0x170] sm:$0xff]  ;;  %v318_v63 = vld [vmem:[#allocation7 + $0x168] sm:$0xff]  ;;  %v4783_v56 = vpack.c.bf16 %v115_v33, %v113_v10 }
  0xf9   :  { %v364_v11 = vpack.c.bf16 %v328_v2, %v326_v60  ;;  %v317_v60 = vld [vmem:[#allocation7 + $0x160] sm:$0xff]  ;;  %v360_v6 = vpack.c.bf16 %v320_v0, %v318_v63  ;;  %v311_v0 = vld [vmem:[#allocation7 + $0x130] sm:$0xff] }
  0xfa   :  { %v672_v22 = vpop.f32.mrf.mxu2  ;;  %v496_v29 = vpop.f32.mrf.mxu0  ;;  %v359_v2 = vpack.c.bf16 %v319_v62, %v317_v60  ;;  %1424 = vmatpush.bf16.xpose.msra.mxu2 %v4761_v58  ;;  %v119_v60 = vld [vmem:[#allocation5 + $0x130] sm:$0xff]  ;;  %v309_v63 = vld [vmem:[#allocation7 + $0x120] sm:$0xff]  ;;  %7496 = vst [vmem:[#allocation25_spill] sm:$0xff] %v4783_v56 }
  0xfb   :  { %v761_v27 = vpop.f32.mrf.mxu3  ;;  %v585_v41 = vpop.f32.mrf.mxu1  ;;  %1122 = vmatpush.bf16.msrb.mxu3 %v364_v11  ;;  %1246 = vmatpush.bf16.xpose.msra.mxu0 %v4759_v51  ;;  %v313_v11 = vld [vmem:[#allocation7 + $0x140] sm:$0xff]  ;;  %v4775_v62 = vpack.c.bf16 %v119_v60, %v117_v45  ;;  %v306_v45 = vld [vmem:[#allocation7 + $0x108] sm:$0xff] }
  0xfc   :  { %v4739_v39 = vadd.f32 %v761_v27, %v672_v22  ;;  %v4741_v46 = vadd.f32 %v585_v41, %v496_v29  ;;  %v361_v27 = vpack.c.bf16 %v323_v20, %v321_v19  ;;  %v324_v29 = vld [vmem:[#allocation7 + $0x198] sm:$0xff]  ;;  %v315_v19 = vld [vmem:[#allocation7 + $0x150] sm:$0xff]  ;;  %v314_v20 = vld [vmem:[#allocation7 + $0x148] sm:$0xff] }
  0xfd   :  { %v362_v41 = vpack.c.bf16 %v324_v29, %v322_v21  ;;  %v316_v29 = vld [vmem:[#allocation7 + $0x158] sm:$0xff]  ;;  %7495 = vst [vmem:[#allocation24_spill] sm:$0xff] %v4775_v62 }
  0xfe   :  { %945 = vmatpush.bf16.msrb.mxu1 %v361_v27 }
  0xff   :  { %1123 = vmatpush.bf16.msrb.mxu3 %v362_v41  ;;  %v358_v41 = vpack.c.bf16 %v316_v29, %v314_v20 }
 0x102   :  { %v4750_v12 = vpop.f32.mrf.mxu2  ;;  %v4755_v25 = vpop.f32.mrf.mxu0  ;;  %946 = vmatpush.bf16.msrb.mxu1 %v359_v2  ;;  %v310_v2 = vld [vmem:[#allocation7 + $0x128] sm:$0xff]  ;;  %1425 = vmatpush.bf16.xpose.msra.mxu2 %v4775_v62 }
 0x103   :  { %v4753_v22 = vpop.f32.mrf.mxu3  ;;  %v4757_v35 = vpop.f32.mrf.mxu1  ;;  %1124 = vmatpush.bf16.msrb.mxu3 %v360_v6  ;;  %v355_v6 = vpack.c.bf16 %v311_v0, %v309_v63  ;;  %1247 = vmatpush.bf16.xpose.msra.mxu0 %v4773_v57  ;;  %v308_v0 = vld [vmem:[#allocation7 + $0x118] sm:$0xff] }
 0x104   :  { %v354_v17 = vpack.c.bf16 %v308_v0, %v306_v45  ;;  %v430_v45 = vld [vmem:[#allocation8 + $0x1e8] sm:$0xff]  ;;  %v432_v0 = vld [vmem:[#allocation8 + $0x1f8] sm:$0xff] }
 0x105   :  { %538 = vmatmul.bf16.gmra.mxu0 %v459_v16  ;;  %v464_v33 = vpack.c.bf16 %v432_v0, %v430_v45 }
 0x106   :  { %627 = vmatmul.bf16.gmra.mxu1 %v460_v26 }
 0x107   :  { %716 = vmatmul.bf16.gmra.mxu2 %v459_v16  ;;  %v357_v16 = vpack.c.bf16 %v315_v19, %v313_v11  ;;  %1125 = vmatpush.bf16.msrb.mxu3 %v358_v41  ;;  %v312_v11 = vld [vmem:[#allocation7 + $0x138] sm:$0xff]  ;;  %v426_v19 = vld [vmem:[#allocation8 + $0x1c8] sm:$0xff] }
 0x108   :  { %805 = vmatmul.bf16.gmra.mxu3 %v460_v26  ;;  %v356_v20 = vpack.c.bf16 %v312_v11, %v310_v2  ;;  %v462_v41 = vpack.c.bf16 %v428_v40, %v426_v19  ;;  %v81_v2 = vld [vmem:[#allocation5] sm:$0xff]  ;;  %v83_v11 = vld [vmem:[#allocation5 + $0x10] sm:$0xff] }
 0x109   :  { %947 = vmatpush.bf16.msrb.mxu1 %v357_v16  ;;  %v305_v16 = vld [vmem:[#allocation7 + $0x100] sm:$0xff]  ;;  %v145_v53 = vpack.c.bf16 %v83_v11, %v81_v2 }
 0x10a   :  { %v4764_v7 = vpop.f32.mrf.mxu2  ;;  %v4769_v27 = vpop.f32.mrf.mxu0  ;;  %v353_v63 = vpack.c.bf16 %v307_v44, %v305_v16  ;;  %1426 = vmatpush.bf16.xpose.msra.mxu2 %v4783_v56  ;;  %v429_v16 = vld [vmem:[#allocation8 + $0x1e0] sm:$0xff]  ;;  %v431_v44 = vld [vmem:[#allocation8 + $0x1f0] sm:$0xff]  ;;  %v4786_v56 = vpack.c.bf16 %v84_v52, %v82_v37 }
 0x10b   :  { %v4767_v21 = vpop.f32.mrf.mxu3  ;;  %v4771_v26 = vpop.f32.mrf.mxu1  ;;  %1126 = vmatpush.bf16.msrb.mxu3 %v356_v20  ;;  %1248 = vmatpush.bf16.xpose.msra.mxu0 %v145_v53  ;;  %v463_v11 = vpack.c.bf16 %v431_v44, %v429_v16 }
 0x10c   :  { %v591_v52 = vadd.f32 %v4771_v26, %v4769_v27 }
 0x10d   :  { %948 = vmatpush.bf16.msrb.mxu1 %v355_v6 }
 0x10f   :  { %1127 = vmatpush.bf16.msrb.mxu3 %v354_v17 }
 0x111   :  { %949 = vmatpush.bf16.msrb.mxu1 %v353_v63 }
 0x112   :  { %v4778_v29 = vpop.f32.mrf.mxu2  ;;  %v504_v13 = vpop.f32.mrf.mxu0 }
 0x113   :  { %v4781_v60 = vpop.f32.mrf.mxu3  ;;  %v593_v36 = vpop.f32.mrf.mxu1 }
 0x115   :  { %543 = vmatmul.bf16.gmra.mxu0 %v461_v42 }
 0x116   :  { %632 = vmatmul.bf16.gmra.mxu1 %v462_v41 }
 0x117   :  { %721 = vmatmul.bf16.gmra.mxu2 %v461_v42 }
 0x118   :  { %810 = vmatmul.bf16.gmra.mxu3 %v462_v41 }
 0x11a   :  { %v682_v40 = vpop.f32.mrf.mxu2  ;;  %v506_v19 = vpop.f32.mrf.mxu0 }
 0x11b   :  { %v771_v6 = vpop.f32.mrf.mxu3  ;;  %v595_v20 = vpop.f32.mrf.mxu1 }
 0x11c   :  { %v772_v37 = vadd.f32 %v771_v6, %v682_v40 }
 0x122   :  { %v684_v2 = vpop.f32.mrf.mxu2  ;;  %v509_v10 = vpop.f32.mrf.mxu0 }
 0x123   :  { %v773_v63 = vpop.f32.mrf.mxu3  ;;  %v598_v61 = vpop.f32.mrf.mxu1 }
 0x124   :  { %v599_v16 = vadd.f32 %v598_v61, %v509_v10  ;;  %v774_v49 = vadd.f32 %v773_v63, %v684_v2 }
 0x125   :  { %548 = vmatmul.bf16.gmra.mxu0 %v463_v11 }
 0x126   :  { %637 = vmatmul.bf16.gmra.mxu1 %v464_v33 }
 0x127   :  { %726 = vmatmul.bf16.gmra.mxu2 %v463_v11  ;;  %v596_v11 = vadd.f32 %v595_v20, %v506_v19 }
 0x128   :  { %815 = vmatmul.bf16.gmra.mxu3 %v464_v33 }
 0x12a   :  { %v687_v17 = vpop.f32.mrf.mxu2  ;;  %v511_v41 = vpop.f32.mrf.mxu0 }
 0x12b   :  { %v776_v42 = vpop.f32.mrf.mxu3  ;;  %v600_v8 = vpop.f32.mrf.mxu1 }
 0x12c   :  { %v601_v18 = vadd.f32 %v600_v8, %v511_v41  ;;  %v777_v44 = vadd.f32 %v776_v42, %v687_v17  ;;  %v594_v8 = vadd.f32 %v593_v36, %v504_v13 }
 0x12e   :  { %v835_v33 = vpack.c.bf16 %v601_v18, %v599_v16  ;;  %v769_v18 = vadd.f32 %v4781_v60, %v4778_v29  ;;  %v764_v29 = vadd.f32 %v4753_v22, %v4750_v12  ;;  %v7497_v12 = vpack.c.bf16 %v4741_v46, %v4729_v14 }
 0x12f   :  { %v7499_v14 = vpack.c.bf16 %v4727_v4, %v4715_v43  ;;  %v7500_v16 = vpack.c.bf16 %v4693_v1, %v4687_v38  ;;  %v90_v4 = vld [vmem:[#allocation5 + $0x48] sm:$0xff]  ;;  %v7503_v38 = vpack.c.bf16 %v4685_v34, %v4679_v5 }
 0x130   :  { %v830_v6 = vpack.c.bf16 %v764_v29, %v4739_v39  ;;  %v7498_v39 = vpack.c.bf16 %v4717_v48, %v4705_v31  ;;  %v7502_v48 = vpack.c.bf16 %v4681_v9, %v4675_v54  ;;  %v7505_v54 = vpack.c.bf16 %v4673_v50, %v4667_v28  ;;  %v110_v34 = vld [vmem:[#allocation5 + $0xe8] sm:$0xff] }
 0x132   :  { %v689_v55 = vpop.f32.mrf.mxu2  ;;  %v514_v62 = vpop.f32.mrf.mxu0 }
 0x133   :  { %v778_v58 = vpop.f32.mrf.mxu3  ;;  %v603_v0 = vpop.f32.mrf.mxu1 }
 0x134   :  { %v779_v45 = vadd.f32 %v778_v58, %v689_v55  ;;  %v4788_v3 = vadd.f32 %v603_v0, %v514_v62  ;;  %v833_v55 = vpack.c.bf16 %v596_v11, %v594_v8  ;;  %v834_v58 = vpack.c.bf16 %v774_v49, %v772_v37  ;;  %v112_v37 = vld [vmem:[#allocation5 + $0xf8] sm:$0xff] }
 0x135   :  { %861 = vmatmul.bf16.vlgmr.msrb.gmra.mxu0 %v145_v53 }
 0x136   :  { %v836_v32 = vpack.c.bf16 %v779_v45, %v777_v44  ;;  %950 = vmatmul.bf16.vlgmr.msrb.gmra.mxu1 %v4786_v56  ;;  %1629 = vmatpush.bf16.msrb.mxu0 %v835_v33  ;;  %v7501_v44 = vpack.c.bf16 %v4703_v23, %v4691_v59  ;;  %v92_v45 = vld [vmem:[#allocation5 + $0x58] sm:$0xff]  ;;  %v7504_v33 = vpack.c.bf16 %v4669_v30, %v4665_v24 }
 0x137   :  { %1039 = vmatmul.bf16.vlgmr.msrb.gmra.mxu2 %v145_v53  ;;  %v589_v53 = vadd.f32 %v4757_v35, %v4755_v25  ;;  %v86_v25 = vld [vmem:[#allocation5 + $0x28] sm:$0xff]  ;;  %v88_v35 = vld [vmem:[#allocation5 + $0x38] sm:$0xff]  ;;  %v4848_v59 = vpack.c.bf16 %v92_v45, %v90_v4  ;;  %v4866_v24 = vpack.c.bf16 %v112_v37, %v110_v34 }
 0x138   :  { %1128 = vmatmul.bf16.vlgmr.msrb.gmra.mxu3 %v4786_v56  ;;  %1807 = vmatpush.bf16.msrb.mxu2 %v836_v32  ;;  %v767_v32 = vadd.f32 %v4767_v21, %v4764_v7  ;;  %v4809_v21 = vpack.c.bf16 %v88_v35, %v86_v25  ;;  %v98_v4 = vld [vmem:[#allocation5 + $0x88] sm:$0xff] }
 0x139   :  { %v831_v26 = vpack.c.bf16 %v591_v52, %v589_v53  ;;  %1330 = vmatpush.bf16.xpose.msra.mxu1 %v4866_v24  ;;  %v108_v53 = vld [vmem:[#allocation5 + $0xd8] sm:$0xff] }
 0x13a   :  { %v692_v61 = vpop.f32.mrf.mxu2  ;;  %v516_v19 = vpop.f32.mrf.mxu0  ;;  %1630 = vmatpush.bf16.msrb.mxu0 %v833_v55  ;;  %v832_v49 = vpack.c.bf16 %v769_v18, %v767_v32  ;;  %v142_v18 = vld [vmem:[#allocation5 + $0x1e8] sm:$0xff]  ;;  %v96_v32 = vld [vmem:[#allocation5 + $0x78] sm:$0xff] }
 0x13b   :  { %v781_v62 = vpop.f32.mrf.mxu3  ;;  %v605_v36 = vpop.f32.mrf.mxu1 }
 0x13c   :  { %v4798_v13 = vadd.f32 %v781_v62, %v692_v61  ;;  %1808 = vmatpush.bf16.msrb.mxu2 %v834_v58  ;;  %v4802_v27 = vadd.f32 %v605_v36, %v516_v19  ;;  %v144_v58 = vld [vmem:[#allocation5 + $0x1f8] sm:$0xff]  ;;  %v106_v19 = vld [vmem:[#allocation5 + $0xc8] sm:$0xff] }
 0x13d   :  { %v4873_v62 = vpack.c.bf16 %v144_v58, %v142_v18  ;;  %v94_v36 = vld [vmem:[#allocation5 + $0x68] sm:$0xff] }
 0x13e   :  { %1631 = vmatpush.bf16.msrb.mxu0 %v831_v26  ;;  %v4878_v26 = vpack.c.bf16 %v108_v53, %v106_v19  ;;  %v152_v35 = vpack.c.bf16 %v96_v32, %v94_v36 }
 0x13f   :  { %7506 = vst [vmem:[#allocation26_spill] sm:$0xff] %v4873_v62  ;;  %1508 = vmatpush.bf16.xpose.msra.mxu3 %v4873_v62 }
 0x140   :  { %1809 = vmatpush.bf16.msrb.mxu2 %v832_v49 }
 0x141   :  { %1331 = vmatpush.bf16.xpose.msra.mxu1 %v4878_v26 }
 0x142   :  { %v694_v40 = vpop.f32.mrf.mxu2  ;;  %v519_v7 = vpop.f32.mrf.mxu0  ;;  %1632 = vmatpush.bf16.msrb.mxu0 %v7497_v12  ;;  %v140_v12 = vld [vmem:[#allocation5 + $0x1d8] sm:$0xff] }
 0x143   :  { %v783_v20 = vpop.f32.mrf.mxu3  ;;  %v608_v22 = vpop.f32.mrf.mxu1 }
 0x144   :  { %v4811_v2 = vadd.f32 %v783_v20, %v694_v40  ;;  %1810 = vmatpush.bf16.msrb.mxu2 %v830_v6  ;;  %v4816_v63 = vadd.f32 %v608_v22, %v519_v7  ;;  %v138_v7 = vld [vmem:[#allocation5 + $0x1c8] sm:$0xff] }
 0x145   :  { %866 = vmatmul.bf16.gmra.mxu0 %v4773_v57 }
 0x146   :  { %955 = vmatmul.bf16.gmra.mxu1 %v4809_v21  ;;  %1633 = vmatpush.bf16.msrb.mxu0 %v7498_v39  ;;  %v4888_v39 = vpack.c.bf16 %v140_v12, %v138_v7 }
 0x147   :  { %1044 = vmatmul.bf16.gmra.mxu2 %v4773_v57 }
 0x148   :  { %1133 = vmatmul.bf16.gmra.mxu3 %v4809_v21  ;;  %1811 = vmatpush.bf16.msrb.mxu2 %v7499_v14  ;;  %7507 = vst [vmem:[#allocation27_spill] sm:$0xff] %v4888_v39  ;;  %v102_v14 = vld [vmem:[#allocation5 + $0xa8] sm:$0xff] }
 0x149   :  { %1509 = vmatpush.bf16.xpose.msra.mxu3 %v4888_v39 }
 0x14a   :  { %v697_v46 = vpop.f32.mrf.mxu2  ;;  %v521_v42 = vpop.f32.mrf.mxu0  ;;  %1634 = vmatpush.bf16.msrb.mxu0 %v7500_v16 }
 0x14b   :  { %v786_v17 = vpop.f32.mrf.mxu3  ;;  %v610_v57 = vpop.f32.mrf.mxu1 }
 0x14c   :  { %v4830_v41 = vadd.f32 %v786_v17, %v697_v46  ;;  %1812 = vmatpush.bf16.msrb.mxu2 %v7501_v44  ;;  %v4838_v31 = vadd.f32 %v610_v57, %v521_v42  ;;  %v104_v46 = vld [vmem:[#allocation5 + $0xb8] sm:$0xff] }
 0x14d   :  { %v156_v17 = vpack.c.bf16 %v104_v46, %v102_v14  ;;  %v122_v14 = vld [vmem:[#allocation5 + $0x148] sm:$0xff]  ;;  %v124_v46 = vld [vmem:[#allocation5 + $0x158] sm:$0xff] }
 0x14e   :  { %1635 = vmatpush.bf16.msrb.mxu0 %v7502_v48 }
 0x14f   :  { %1332 = vmatpush.bf16.xpose.msra.mxu1 %v156_v17 }
 0x150   :  { %1813 = vmatpush.bf16.msrb.mxu2 %v7503_v38  ;;  %v100_v38 = vld [vmem:[#allocation5 + $0x98] sm:$0xff] }
 0x152   :  { %v699_v1 = vpop.f32.mrf.mxu2  ;;  %v524_v11 = vpop.f32.mrf.mxu0  ;;  %1636 = vmatpush.bf16.msrb.mxu0 %v7504_v33  ;;  %v154_v33 = vpack.c.bf16 %v100_v38, %v98_v4  ;;  %v118_v38 = vld [vmem:[#allocation5 + $0x128] sm:$0xff] }
 0x153   :  { %v788_v0 = vpop.f32.mrf.mxu3  ;;  %v613_v8 = vpop.f32.mrf.mxu1 }
 0x154   :  { %v4850_v23 = vadd.f32 %v788_v0, %v699_v1  ;;  %1814 = vmatpush.bf16.msrb.mxu2 %v7505_v54  ;;  %v4858_v9 = vadd.f32 %v613_v8, %v524_v11  ;;  %v134_v1 = vld [vmem:[#allocation5 + $0x1a8] sm:$0xff]  ;;  %v136_v0 = vld [vmem:[#allocation5 + $0x1b8] sm:$0xff] }
 0x155   :  { %871 = vmatmul.bf16.gmra.mxu0 %v4759_v51  ;;  %v4896_v11 = vpack.c.bf16 %v136_v0, %v134_v1  ;;  %v120_v1 = vld [vmem:[#allocation5 + $0x138] sm:$0xff] }
 0x156   :  { %960 = vmatmul.bf16.gmra.mxu1 %v4848_v59  ;;  %v4936_v0 = vpack.c.bf16 %v120_v1, %v118_v38 }
 0x157   :  { %1049 = vmatmul.bf16.gmra.mxu2 %v4759_v51  ;;  %7508 = vst [vmem:[#allocation28_spill] sm:$0xff] %v4896_v11  ;;  %1510 = vmatpush.bf16.xpose.msra.mxu3 %v4896_v11 }
 0x158   :  { %1138 = vmatmul.bf16.gmra.mxu3 %v4848_v59  ;;  %1333 = vmatpush.bf16.xpose.msra.mxu1 %v154_v33 }
 0x15a   :  { %v702_v30 = vpop.f32.mrf.mxu2  ;;  %v526_v50 = vpop.f32.mrf.mxu0 }
 0x15b   :  { %v791_v28 = vpop.f32.mrf.mxu3  ;;  %v615_v55 = vpop.f32.mrf.mxu1 }
 0x15c   :  { %v4869_v52 = vadd.f32 %v791_v28, %v702_v30  ;;  %v4871_v61 = vadd.f32 %v615_v55, %v526_v50  ;;  %v130_v50 = vld [vmem:[#allocation5 + $0x188] sm:$0xff]  ;;  %v132_v55 = vld [vmem:[#allocation5 + $0x198] sm:$0xff] }
 0x15d   :  { %v4908_v58 = vpack.c.bf16 %v132_v55, %v130_v50  ;;  %v7512_v50 = vld [vmem:[#allocation17_spill] sm:$0xff] }
 0x15f   :  { %7509 = vst [vmem:[#allocation29_spill] sm:$0xff] %v4908_v58  ;;  %1511 = vmatpush.bf16.xpose.msra.mxu3 %v4908_v58 }
 0x160   :  { %1334 = vmatpush.bf16.xpose.msra.mxu1 %v152_v35 }
 0x162   :  { %v704_v29 = vpop.f32.mrf.mxu2  ;;  %v529_v25 = vpop.f32.mrf.mxu0 }
 0x163   :  { %v793_v49 = vpop.f32.mrf.mxu3  ;;  %v618_v6 = vpop.f32.mrf.mxu1 }
 0x164   :  { %v4881_v40 = vadd.f32 %v793_v49, %v704_v29  ;;  %v4883_v20 = vadd.f32 %v618_v6, %v529_v25  ;;  %v126_v49 = vld [vmem:[#allocation5 + $0x168] sm:$0xff]  ;;  %v128_v25 = vld [vmem:[#allocation5 + $0x178] sm:$0xff] }
 0x165   :  { %876 = vmatmul.bf16.gmra.mxu0 %v4743_v47  ;;  %v4918_v6 = vpack.c.bf16 %v128_v25, %v126_v49 }
 0x166   :  { %965 = vmatmul.bf16.gmra.mxu1 %v152_v35 }
 0x167   :  { %1054 = vmatmul.bf16.gmra.mxu2 %v4743_v47  ;;  %7510 = vst [vmem:[#allocation30_spill] sm:$0xff] %v4918_v6  ;;  %1512 = vmatpush.bf16.xpose.msra.mxu3 %v4918_v6  ;;  %v7514_v6 = vld [vmem:[#allocation25_spill] sm:$0xff] }
 0x168   :  { %1143 = vmatmul.bf16.gmra.mxu3 %v152_v35  ;;  %1335 = vmatpush.bf16.xpose.msra.mxu1 %v4848_v59 }
 0x16a   :  { %v707_v42 = vpop.f32.mrf.mxu2  ;;  %v531_v57 = vpop.f32.mrf.mxu0 }
 0x16b   :  { %v796_v16 = vpop.f32.mrf.mxu3  ;;  %v620_v48 = vpop.f32.mrf.mxu1 }
 0x16c   :  { %v4892_v44 = vadd.f32 %v796_v16, %v707_v42  ;;  %v4894_v45 = vadd.f32 %v620_v48, %v531_v57  ;;  %v7511_v42 = vld [vmem:[#allocation19_spill] sm:$0xff]  ;;  %v4927_v16 = vpack.c.bf16 %v124_v46, %v122_v14 }
 0x16f   :  { %1513 = vmatpush.bf16.xpose.msra.mxu3 %v4927_v16 }
 0x170   :  { %1336 = vmatpush.bf16.xpose.msra.mxu1 %v4809_v21 }
 0x172   :  { %v709_v8 = vpop.f32.mrf.mxu2  ;;  %v534_v34 = vpop.f32.mrf.mxu0 }
 0x173   :  { %v798_v54 = vpop.f32.mrf.mxu3  ;;  %v623_v30 = vpop.f32.mrf.mxu1 }
 0x174   :  { %v4901_v37 = vadd.f32 %v798_v54, %v709_v8  ;;  %v4903_v28 = vadd.f32 %v623_v30, %v534_v34  ;;  %v114_v34 = vld [vmem:[#allocation5 + $0x108] sm:$0xff]  ;;  %v116_v30 = vld [vmem:[#allocation5 + $0x118] sm:$0xff] }
 0x175   :  { %881 = vmatmul.bf16.gmra.mxu0 %v4731_v15  ;;  %v162_v21 = vpack.c.bf16 %v116_v30, %v114_v34 }
 0x176   :  { %970 = vmatmul.bf16.gmra.mxu1 %v154_v33 }
 0x177   :  { %1059 = vmatmul.bf16.gmra.mxu2 %v4731_v15  ;;  %1514 = vmatpush.bf16.xpose.msra.mxu3 %v4936_v0 }
 0x178   :  { %1148 = vmatmul.bf16.gmra.mxu3 %v154_v33  ;;  %1337 = vmatpush.bf16.xpose.msra.mxu1 %v4786_v56 }
 0x17a   :  { %v712_v19 = vpop.f32.mrf.mxu2  ;;  %v4912_v36 = vpop.f32.mrf.mxu0 }
 0x17b   :  { %v801_v53 = vpop.f32.mrf.mxu3  ;;  %v4916_v29 = vpop.f32.mrf.mxu1 }
 0x17c   :  { %v4914_v32 = vadd.f32 %v801_v53, %v712_v19 }
 0x17f   :  { %1515 = vmatpush.bf16.xpose.msra.mxu3 %v162_v21 }
 0x182   :  { %v4921_v7 = vpop.f32.mrf.mxu2  ;;  %v539_v35 = vpop.f32.mrf.mxu0 }
 0x183   :  { %v4924_v15 = vpop.f32.mrf.mxu3  ;;  %v628_v12 = vpop.f32.mrf.mxu1 }
 0x184   :  { %v629_v11 = vadd.f32 %v628_v12, %v539_v35 }
 0x185   :  { %886 = vmatmul.bf16.gmra.mxu0 %v7511_v42 }
 0x186   :  { %975 = vmatmul.bf16.gmra.mxu1 %v156_v17 }
 0x187   :  { %1064 = vmatmul.bf16.gmra.mxu2 %v7511_v42  ;;  %v7513_v42 = vld [vmem:[#allocation15_spill] sm:$0xff] }
 0x188   :  { %1153 = vmatmul.bf16.gmra.mxu3 %v156_v17 }
 0x18a   :  { %v4931_v57 = vpop.f32.mrf.mxu2  ;;  %v541_v48 = vpop.f32.mrf.mxu0 }
 0x18b   :  { %v4934_v59 = vpop.f32.mrf.mxu3  ;;  %v630_v4 = vpop.f32.mrf.mxu1 }
 0x18c   :  { %v631_v43 = vadd.f32 %v630_v4, %v541_v48 }
 0x192   :  { %v719_v33 = vpop.f32.mrf.mxu2  ;;  %v544_v8 = vpop.f32.mrf.mxu0 }
 0x193   :  { %v808_v17 = vpop.f32.mrf.mxu3  ;;  %v633_v54 = vpop.f32.mrf.mxu1 }
 0x194   :  { %v634_v60 = vadd.f32 %v633_v54, %v544_v8 }
 0x195   :  { %891 = vmatmul.bf16.gmra.mxu0 %v7512_v50 }
 0x196   :  { %980 = vmatmul.bf16.gmra.mxu1 %v4878_v26 }
 0x197   :  { %1069 = vmatmul.bf16.gmra.mxu2 %v7512_v50 }
 0x198   :  { %1158 = vmatmul.bf16.gmra.mxu3 %v4878_v26 }
 0x19a   :  { %v722_v55 = vpop.f32.mrf.mxu2  ;;  %v546_v53 = vpop.f32.mrf.mxu0 }
 0x19b   :  { %v811_v19 = vpop.f32.mrf.mxu3  ;;  %v635_v49 = vpop.f32.mrf.mxu1 }
 0x19c   :  { %v636_v10 = vadd.f32 %v635_v49, %v546_v53  ;;  %v626_v53 = vadd.f32 %v4916_v29, %v4912_v36  ;;  %v847_v49 = vpack.c.bf16 %v631_v43, %v629_v11  ;;  %v807_v43 = vadd.f32 %v4934_v59, %v4931_v57 }
 0x19d   :  { %v804_v36 = vadd.f32 %v4924_v15, %v4921_v7  ;;  %v7516_v7 = vpack.c.bf16 %v4871_v61, %v4858_v9 }
 0x19e   :  { %v849_v18 = vpack.c.bf16 %v636_v10, %v634_v60  ;;  %v812_v60 = vadd.f32 %v811_v19, %v722_v55 }
 0x19f   :  { %v846_v35 = vpack.c.bf16 %v804_v36, %v4914_v32 }
 0x1a2   :  { %v724_v56 = vpop.f32.mrf.mxu2  ;;  %v549_v14 = vpop.f32.mrf.mxu0 }
 0x1a3   :  { %v813_v25 = vpop.f32.mrf.mxu3  ;;  %v638_v46 = vpop.f32.mrf.mxu1 }
 0x1a4   :  { %v639_v30 = vadd.f32 %v638_v46, %v549_v14  ;;  %v814_v8 = vadd.f32 %v813_v25, %v724_v56 }
 0x1a5   :  { %896 = vmatmul.bf16.gmra.mxu0 %v7513_v42 }
 0x1a6   :  { %985 = vmatmul.bf16.gmra.mxu1 %v4866_v24 }
 0x1a7   :  { %1074 = vmatmul.bf16.gmra.mxu2 %v7513_v42 }
 0x1a8   :  { %1163 = vmatmul.bf16.gmra.mxu3 %v4866_v24 }
 0x1aa   :  { %v727_v38 = vpop.f32.mrf.mxu2  ;;  %v551_v26 = vpop.f32.mrf.mxu0 }
 0x1ab   :  { %v816_v1 = vpop.f32.mrf.mxu3  ;;  %v640_v34 = vpop.f32.mrf.mxu1 }
 0x1ac   :  { %v641_v50 = vadd.f32 %v640_v34, %v551_v26  ;;  %v817_v62 = vadd.f32 %v816_v1, %v727_v38 }
 0x1ae   :  { %v851_v5 = vpack.c.bf16 %v641_v50, %v639_v30 }
 0x1b0   :  { %1718 = vmatpush.bf16.msrb.mxu1 %v851_v5  ;;  %v845_v5 = vpack.c.bf16 %v626_v53, %v4903_v28  ;;  %v7515_v28 = vpack.c.bf16 %v4894_v45, %v4883_v20  ;;  %v7518_v20 = vpack.c.bf16 %v4901_v37, %v4892_v44  ;;  %v7519_v45 = vpack.c.bf16 %v4838_v31, %v4816_v63  ;;  %v7525_v53 = vld [vmem:[#allocation22_spill] sm:$0xff] }
 0x1b1   :  { %v7522_v63 = vpack.c.bf16 %v4850_v23, %v4830_v41 }
 0x1b2   :  { %v729_v22 = vpop.f32.mrf.mxu2  ;;  %v862_v47 = vpop.f32.mrf.mxu0 }
 0x1b3   :  { %v818_v51 = vpop.f32.mrf.mxu3  ;;  %v951_v42 = vpop.f32.mrf.mxu1 }
 0x1b4   :  { %v819_v39 = vadd.f32 %v818_v51, %v729_v22  ;;  %v952_v24 = vadd.f32 %v951_v42, %v862_v47  ;;  %1719 = vmatpush.bf16.msrb.mxu1 %v849_v18  ;;  %v809_v51 = vadd.f32 %v808_v17, %v719_v33  ;;  %v850_v22 = vpack.c.bf16 %v814_v8, %v812_v60  ;;  %v7517_v33 = vld [vmem:[#allocation24_spill] sm:$0xff] }
 0x1b5   :  { %901 = vmatmul.bf16.gmra.mxu0 %v7514_v6 }
 0x1b6   :  { %v852_v58 = vpack.c.bf16 %v819_v39, %v817_v62  ;;  %990 = vmatmul.bf16.gmra.mxu1 %v162_v21 }
 0x1b7   :  { %1079 = vmatmul.bf16.gmra.mxu2 %v7514_v6 }
 0x1b8   :  { %1168 = vmatmul.bf16.gmra.mxu3 %v162_v21  ;;  %1720 = vmatpush.bf16.msrb.mxu1 %v847_v49  ;;  %v7520_v21 = vpack.c.bf16 %v4881_v40, %v4869_v52  ;;  %v7523_v52 = vpack.c.bf16 %v4811_v2, %v4798_v13  ;;  %v7526_v49 = vld [vmem:[#allocation30_spill] sm:$0xff] }
 0x1b9   :  { %1896 = vmatpush.bf16.msrb.mxu3 %v852_v58  ;;  %v848_v58 = vpack.c.bf16 %v809_v51, %v807_v43 }
 0x1ba   :  { %v1040_v10 = vpop.f32.mrf.mxu2  ;;  %v864_v39 = vpop.f32.mrf.mxu0 }
 0x1bb   :  { %v1129_v62 = vpop.f32.mrf.mxu3  ;;  %v953_v18 = vpop.f32.mrf.mxu1 }
 0x1bc   :  { %v1130_v47 = vadd.f32 %v1129_v62, %v1040_v10  ;;  %v954_v11 = vadd.f32 %v953_v18, %v864_v39  ;;  %1721 = vmatpush.bf16.msrb.mxu1 %v845_v5 }
 0x1bd   :  { %1897 = vmatpush.bf16.msrb.mxu3 %v850_v22 }
 0x1be   :  { %v4957_v29 = vpack.c.bf16 %v954_v11, %v952_v24 }
 0x1c0   :  { %1722 = vmatpush.bf16.msrb.mxu1 %v7515_v28  ;;  %v7528_v28 = vld [vmem:[#allocation29_spill] sm:$0xff] }
 0x1c1   :  { %1898 = vmatpush.bf16.msrb.mxu3 %v848_v58  ;;  %v7527_v58 = vld [vmem:[#allocation21_spill] sm:$0xff] }
 0x1c2   :  { %v1042_v6 = vpop.f32.mrf.mxu2  ;;  %v867_v48 = vpop.f32.mrf.mxu0 }
 0x1c3   :  { %v1131_v12 = vpop.f32.mrf.mxu3  ;;  %v956_v59 = vpop.f32.mrf.mxu1 }
 0x1c4   :  { %v1132_v57 = vadd.f32 %v1131_v12, %v1042_v6  ;;  %v957_v4 = vadd.f32 %v956_v59, %v867_v48  ;;  %1723 = vmatpush.bf16.msrb.mxu1 %v7516_v7 }
 0x1c5   :  { %1899 = vmatpush.bf16.msrb.mxu3 %v846_v35  ;;  %906 = vmatmul.bf16.gmra.mxu0 %v7517_v33 }
 0x1c6   :  { %v4966_v15 = vpack.c.bf16 %v1132_v57, %v1130_v47  ;;  %995 = vmatmul.bf16.gmra.mxu1 %v4936_v0 }
 0x1c7   :  { %1084 = vmatmul.bf16.gmra.mxu2 %v7517_v33 }
 0x1c8   :  { %1173 = vmatmul.bf16.gmra.mxu3 %v4936_v0  ;;  %1724 = vmatpush.bf16.msrb.mxu1 %v7519_v45  ;;  %v7521_v0 = vpack.c.bf16 %v4802_v27, %v4788_v3  ;;  %v7524_v3 = vld [vmem:[#allocation23_spill] sm:$0xff] }
 0x1c9   :  { %1900 = vmatpush.bf16.msrb.mxu3 %v7518_v20 }
 0x1ca   :  { %v1045_v9 = vpop.f32.mrf.mxu2  ;;  %v869_v32 = vpop.f32.mrf.mxu0 }
 0x1cb   :  { %v1134_v61 = vpop.f32.mrf.mxu3  ;;  %v958_v54 = vpop.f32.mrf.mxu1 }
 0x1cc   :  { %v1135_v17 = vadd.f32 %v1134_v61, %v1045_v9  ;;  %v959_v55 = vadd.f32 %v958_v54, %v869_v32  ;;  %1725 = vmatpush.bf16.msrb.mxu1 %v7521_v0  ;;  %v7530_v54 = vld [vmem:[#allocation28_spill] sm:$0xff] }
 0x1cd   :  { %1901 = vmatpush.bf16.msrb.mxu3 %v7520_v21 }
 0x1ce   :  { %v4984_v44 = vpack.c.bf16 %v959_v55, %v957_v4 }
 0x1d1   :  { %1902 = vmatpush.bf16.msrb.mxu3 %v7522_v63 }
 0x1d2   :  { %v1047_v31 = vpop.f32.mrf.mxu2  ;;  %v872_v19 = vpop.f32.mrf.mxu0 }
 0x1d3   :  { %v1136_v37 = vpop.f32.mrf.mxu3  ;;  %v961_v25 = vpop.f32.mrf.mxu1 }
 0x1d4   :  { %v1137_v56 = vadd.f32 %v1136_v37, %v1047_v31  ;;  %v962_v40 = vadd.f32 %v961_v25, %v872_v19 }
 0x1d5   :  { %1903 = vmatpush.bf16.msrb.mxu3 %v7523_v52  ;;  %911 = vmatmul.bf16.gmra.mxu0 %v7524_v3 }
 0x1d6   :  { %v4992_v14 = vpack.c.bf16 %v1137_v56, %v1135_v17  ;;  %1000 = vmatmul.bf16.gmra.mxu1 %v4927_v16  ;;  %v7529_v17 = vld [vmem:[#allocation20_spill] sm:$0xff] }
 0x1d7   :  { %1089 = vmatmul.bf16.gmra.mxu2 %v7524_v3 }
 0x1d8   :  { %1178 = vmatmul.bf16.gmra.mxu3 %v4927_v16 }
 0x1da   :  { %v1050_v27 = vpop.f32.mrf.mxu2  ;;  %v874_v23 = vpop.f32.mrf.mxu0 }
 0x1db   :  { %v1139_v41 = vpop.f32.mrf.mxu3  ;;  %v963_v38 = vpop.f32.mrf.mxu1 }
 0x1dc   :  { %v1140_v46 = vadd.f32 %v1139_v41, %v1050_v27  ;;  %v964_v1 = vadd.f32 %v963_v38, %v874_v23  ;;  %v7531_v23 = vld [vmem:[#allocation18_spill] sm:$0xff] }
 0x1de   :  { %v4998_v26 = vpack.c.bf16 %v964_v1, %v962_v40 }
 0x1e2   :  { %v1052_v13 = vpop.f32.mrf.mxu2  ;;  %v877_v34 = vpop.f32.mrf.mxu0 }
 0x1e3   :  { %v1141_v2 = vpop.f32.mrf.mxu3  ;;  %v966_v50 = vpop.f32.mrf.mxu1 }
 0x1e4   :  { %v1142_v30 = vadd.f32 %v1141_v2, %v1052_v13  ;;  %v967_v42 = vadd.f32 %v966_v50, %v877_v34 }
 0x1e5   :  { %916 = vmatmul.bf16.gmra.mxu0 %v7525_v53 }
 0x1e6   :  { %v5000_v24 = vpack.c.bf16 %v1142_v30, %v1140_v46  ;;  %1005 = vmatmul.bf16.gmra.mxu1 %v7526_v49  ;;  %v7532_v46 = vld [vmem:[#allocation27_spill] sm:$0xff] }
 0x1e7   :  { %1094 = vmatmul.bf16.gmra.mxu2 %v7525_v53 }
 0x1e8   :  { %1183 = vmatmul.bf16.gmra.mxu3 %v7526_v49 }
 0x1ea   :  { %v1055_v16 = vpop.f32.mrf.mxu2  ;;  %v879_v60 = vpop.f32.mrf.mxu0 }
 0x1eb   :  { %v1144_v8 = vpop.f32.mrf.mxu3  ;;  %v968_v5 = vpop.f32.mrf.mxu1 }
 0x1ec   :  { %v1145_v10 = vadd.f32 %v1144_v8, %v1055_v16  ;;  %v969_v51 = vadd.f32 %v968_v5, %v879_v60  ;;  %v7533_v5 = vld [vmem:[#allocation16_spill] sm:$0xff] }
 0x1ee   :  { %v5006_v22 = vpack.c.bf16 %v969_v51, %v967_v42  ;;  %v7534_v51 = vld [vmem:[#allocation26_spill] sm:$0xff] }
 0x1f2   :  { %v1057_v62 = vpop.f32.mrf.mxu2  ;;  %v882_v47 = vpop.f32.mrf.mxu0 }
 0x1f3   :  { %v1146_v39 = vpop.f32.mrf.mxu3  ;;  %v971_v43 = vpop.f32.mrf.mxu1 }
 0x1f4   :  { %v1147_v18 = vadd.f32 %v1146_v39, %v1057_v62  ;;  %v972_v11 = vadd.f32 %v971_v43, %v882_v47 }
 0x1f5   :  { %921 = vmatmul.bf16.gmra.mxu0 %v7527_v58 }
 0x1f6   :  { %v5008_v36 = vpack.c.bf16 %v1147_v18, %v1145_v10  ;;  %1010 = vmatmul.bf16.gmra.mxu1 %v7528_v28 }
 0x1f7   :  { %1099 = vmatmul.bf16.gmra.mxu2 %v7527_v58 }
 0x1f8   :  { %1188 = vmatmul.bf16.gmra.mxu3 %v7528_v28 }
 0x1fa   :  { %v1060_v6 = vpop.f32.mrf.mxu2  ;;  %v884_v12 = vpop.f32.mrf.mxu0 }
 0x1fb   :  { %v1149_v35 = vpop.f32.mrf.mxu3  ;;  %v973_v57 = vpop.f32.mrf.mxu1 }
 0x1fc   :  { %v1150_v48 = vadd.f32 %v1149_v35, %v1060_v6  ;;  %v974_v59 = vadd.f32 %v973_v57, %v884_v12 }
 0x1fe   :  { %v5014_v4 = vpack.c.bf16 %v974_v59, %v972_v11 }
 0x202   :  { %v1062_v7 = vpop.f32.mrf.mxu2  ;;  %v887_v20 = vpop.f32.mrf.mxu0 }
 0x203   :  { %v1151_v33 = vpop.f32.mrf.mxu3  ;;  %v976_v9 = vpop.f32.mrf.mxu1 }
 0x204   :  { %v1152_v45 = vadd.f32 %v1151_v33, %v1062_v7  ;;  %v977_v61 = vadd.f32 %v976_v9, %v887_v20 }
 0x205   :  { %926 = vmatmul.bf16.gmra.mxu0 %v7529_v17 }
 0x206   :  { %v5016_v32 = vpack.c.bf16 %v1152_v45, %v1150_v48  ;;  %1015 = vmatmul.bf16.gmra.mxu1 %v7530_v54 }
 0x207   :  { %1104 = vmatmul.bf16.gmra.mxu2 %v7529_v17 }
 0x208   :  { %1193 = vmatmul.bf16.gmra.mxu3 %v7530_v54 }
 0x20a   :  { %v1065_v21 = vpop.f32.mrf.mxu2  ;;  %v889_v0 = vpop.f32.mrf.mxu0 }
 0x20b   :  { %v1154_v55 = vpop.f32.mrf.mxu3  ;;  %v978_v31 = vpop.f32.mrf.mxu1 }
 0x20c   :  { %v1155_v63 = vadd.f32 %v1154_v55, %v1065_v21  ;;  %v979_v37 = vadd.f32 %v978_v31, %v889_v0 }
 0x20e   :  { %v5022_v19 = vpack.c.bf16 %v979_v37, %v977_v61 }
 0x212   :  { %v1067_v56 = vpop.f32.mrf.mxu2  ;;  %v892_v52 = vpop.f32.mrf.mxu0 }
 0x213   :  { %v1156_v25 = vpop.f32.mrf.mxu3  ;;  %v981_v3 = vpop.f32.mrf.mxu1 }
 0x214   :  { %v1157_v40 = vadd.f32 %v1156_v25, %v1067_v56  ;;  %v982_v27 = vadd.f32 %v981_v3, %v892_v52 }
 0x215   :  { %931 = vmatmul.bf16.gmra.mxu0 %v7531_v23 }
 0x216   :  { %v5024_v41 = vpack.c.bf16 %v1157_v40, %v1155_v63  ;;  %1020 = vmatmul.bf16.gmra.mxu1 %v7532_v46 }
 0x217   :  { %1109 = vmatmul.bf16.gmra.mxu2 %v7531_v23 }
 0x218   :  { %1198 = vmatmul.bf16.gmra.mxu3 %v7532_v46 }
 0x21a   :  { %v1070_v38 = vpop.f32.mrf.mxu2  ;;  %v894_v13 = vpop.f32.mrf.mxu0 }
 0x21b   :  { %v1159_v1 = vpop.f32.mrf.mxu3  ;;  %v983_v34 = vpop.f32.mrf.mxu1 }
 0x21c   :  { %v1160_v2 = vadd.f32 %v1159_v1, %v1070_v38  ;;  %v984_v30 = vadd.f32 %v983_v34, %v894_v13 }
 0x21e   :  { %v5030_v50 = vpack.c.bf16 %v984_v30, %v982_v27 }
 0x222   :  { %v1072_v42 = vpop.f32.mrf.mxu2  ;;  %v897_v49 = vpop.f32.mrf.mxu0 }
 0x223   :  { %v1161_v53 = vpop.f32.mrf.mxu3  ;;  %v986_v8 = vpop.f32.mrf.mxu1 }
 0x224   :  { %v1162_v16 = vadd.f32 %v1161_v53, %v1072_v42  ;;  %v987_v60 = vadd.f32 %v986_v8, %v897_v49 }
 0x225   :  { %936 = vmatmul.bf16.gmra.mxu0 %v7533_v5 }
 0x226   :  { %v5032_v10 = vpack.c.bf16 %v1162_v16, %v1160_v2  ;;  %1025 = vmatmul.bf16.gmra.mxu1 %v7534_v51 }
 0x227   :  { %1114 = vmatmul.bf16.gmra.mxu2 %v7533_v5 }
 0x228   :  { %1203 = vmatmul.bf16.gmra.mxu3 %v7534_v51 }
 0x22a   :  { %v1075_v62 = vpop.f32.mrf.mxu2  ;;  %v899_v47 = vpop.f32.mrf.mxu0 }
 0x22b   :  { %v1164_v39 = vpop.f32.mrf.mxu3  ;;  %v988_v43 = vpop.f32.mrf.mxu1 }
 0x22c   :  { %v1165_v18 = vadd.f32 %v1164_v39, %v1075_v62  ;;  %v989_v11 = vadd.f32 %v988_v43, %v899_v47 }
 0x22e   :  { %v5038_v58 = vpack.c.bf16 %v989_v11, %v987_v60 }
 0x232   :  { %v1077_v28 = vpop.f32.mrf.mxu2  ;;  %v902_v35 = vpop.f32.mrf.mxu0 }
 0x233   :  { %v1166_v6 = vpop.f32.mrf.mxu3  ;;  %v991_v48 = vpop.f32.mrf.mxu1 }
 0x234   :  { %v1167_v12 = vadd.f32 %v1166_v6, %v1077_v28  ;;  %v992_v57 = vadd.f32 %v991_v48, %v902_v35 }
 0x235   :  { %1249 = vmatmul.bf16.vlgmr.msra.gmra.mxu0 %v4957_v29 }
 0x236   :  { %v5040_v59 = vpack.c.bf16 %v1167_v12, %v1165_v18  ;;  %1338 = vmatmul.bf16.vlgmr.msra.gmra.mxu1 %v4966_v15 }
 0x237   :  { %1427 = vmatmul.bf16.vlgmr.msra.gmra.mxu2 %v4957_v29 }
 0x238   :  { %1516 = vmatmul.bf16.vlgmr.msra.gmra.mxu3 %v4966_v15 }
 0x23a   :  { %v1080_v7 = vpop.f32.mrf.mxu2  ;;  %v904_v20 = vpop.f32.mrf.mxu0 }
 0x23b   :  { %v1169_v33 = vpop.f32.mrf.mxu3  ;;  %v993_v9 = vpop.f32.mrf.mxu1 }
 0x23c   :  { %v1170_v45 = vadd.f32 %v1169_v33, %v1080_v7  ;;  %v994_v61 = vadd.f32 %v993_v9, %v904_v20 }
 0x23e   :  { %v5046_v17 = vpack.c.bf16 %v994_v61, %v992_v57 }
 0x242   :  { %v1082_v54 = vpop.f32.mrf.mxu2  ;;  %v907_v55 = vpop.f32.mrf.mxu0 }
 0x243   :  { %v1171_v21 = vpop.f32.mrf.mxu3  ;;  %v996_v63 = vpop.f32.mrf.mxu1 }
 0x244   :  { %v1172_v0 = vadd.f32 %v1171_v21, %v1082_v54  ;;  %v997_v31 = vadd.f32 %v996_v63, %v907_v55 }
 0x245   :  { %1254 = vmatmul.bf16.gmra.mxu0 %v4984_v44 }
 0x246   :  { %v5048_v37 = vpack.c.bf16 %v1172_v0, %v1170_v45  ;;  %1343 = vmatmul.bf16.gmra.mxu1 %v4992_v14 }
 0x247   :  { %1432 = vmatmul.bf16.gmra.mxu2 %v4984_v44 }
 0x248   :  { %1521 = vmatmul.bf16.gmra.mxu3 %v4992_v14 }
 0x24a   :  { %v1085_v29 = vpop.f32.mrf.mxu2  ;;  %v909_v56 = vpop.f32.mrf.mxu0 }
 0x24b   :  { %v1174_v15 = vpop.f32.mrf.mxu3  ;;  %v998_v52 = vpop.f32.mrf.mxu1 }
 0x24c   :  { %v1175_v25 = vadd.f32 %v1174_v15, %v1085_v29  ;;  %v999_v40 = vadd.f32 %v998_v52, %v909_v56 }
 0x24e   :  { %v5054_v3 = vpack.c.bf16 %v999_v40, %v997_v31 }
 0x252   :  { %v1087_v27 = vpop.f32.mrf.mxu2  ;;  %v912_v46 = vpop.f32.mrf.mxu0 }
 0x253   :  { %v1176_v23 = vpop.f32.mrf.mxu3  ;;  %v1001_v1 = vpop.f32.mrf.mxu1 }
 0x254   :  { %v1177_v38 = vadd.f32 %v1176_v23, %v1087_v27  ;;  %v1002_v13 = vadd.f32 %v1001_v1, %v912_v46 }
 0x255   :  { %1259 = vmatmul.bf16.gmra.mxu0 %v4998_v26 }
 0x256   :  { %v5056_v2 = vpack.c.bf16 %v1177_v38, %v1175_v25  ;;  %1348 = vmatmul.bf16.gmra.mxu1 %v5000_v24 }
 0x257   :  { %1437 = vmatmul.bf16.gmra.mxu2 %v4998_v26 }
 0x258   :  { %1526 = vmatmul.bf16.gmra.mxu3 %v5000_v24 }
 0x25a   :  { %v1090_v44 = vpop.f32.mrf.mxu2  ;;  %v914_v34 = vpop.f32.mrf.mxu0 }
 0x25b   :  { %v1179_v14 = vpop.f32.mrf.mxu3  ;;  %v1003_v42 = vpop.f32.mrf.mxu1 }
 0x25c   :  { %v1180_v30 = vadd.f32 %v1179_v14, %v1090_v44  ;;  %v1004_v53 = vadd.f32 %v1003_v42, %v914_v34 }
 0x25e   :  { %v5062_v49 = vpack.c.bf16 %v1004_v53, %v1002_v13 }
 0x262   :  { %v1092_v16 = vpop.f32.mrf.mxu2  ;;  %v917_v60 = vpop.f32.mrf.mxu0 }
 0x263   :  { %v1181_v8 = vpop.f32.mrf.mxu3  ;;  %v1006_v51 = vpop.f32.mrf.mxu1 }
 0x264   :  { %v1182_v5 = vadd.f32 %v1181_v8, %v1092_v16  ;;  %v1007_v62 = vadd.f32 %v1006_v51, %v917_v60 }
 0x265   :  { %1264 = vmatmul.bf16.gmra.mxu0 %v5006_v22 }
 0x266   :  { %v5064_v39 = vpack.c.bf16 %v1182_v5, %v1180_v30  ;;  %1353 = vmatmul.bf16.gmra.mxu1 %v5008_v36 }
 0x267   :  { %1442 = vmatmul.bf16.gmra.mxu2 %v5006_v22 }
 0x268   :  { %1531 = vmatmul.bf16.gmra.mxu3 %v5008_v36 }
 0x26a   :  { %v1095_v26 = vpop.f32.mrf.mxu2  ;;  %v919_v47 = vpop.f32.mrf.mxu0 }
 0x26b   :  { %v1184_v24 = vpop.f32.mrf.mxu3  ;;  %v1008_v43 = vpop.f32.mrf.mxu1 }
 0x26c   :  { %v1185_v18 = vadd.f32 %v1184_v24, %v1095_v26  ;;  %v1009_v11 = vadd.f32 %v1008_v43, %v919_v47 }
 0x26e   :  { %v5070_v28 = vpack.c.bf16 %v1009_v11, %v1007_v62 }
 0x272   :  { %v1097_v6 = vpop.f32.mrf.mxu2  ;;  %v922_v12 = vpop.f32.mrf.mxu0 }
 0x273   :  { %v1186_v35 = vpop.f32.mrf.mxu3  ;;  %v1011_v57 = vpop.f32.mrf.mxu1 }
 0x274   :  { %v1187_v48 = vadd.f32 %v1186_v35, %v1097_v6  ;;  %v1012_v7 = vadd.f32 %v1011_v57, %v922_v12 }
 0x275   :  { %1269 = vmatmul.bf16.gmra.mxu0 %v5014_v4 }
 0x276   :  { %v5072_v33 = vpack.c.bf16 %v1187_v48, %v1185_v18  ;;  %1358 = vmatmul.bf16.gmra.mxu1 %v5016_v32 }
 0x277   :  { %1447 = vmatmul.bf16.gmra.mxu2 %v5014_v4 }
 0x278   :  { %1536 = vmatmul.bf16.gmra.mxu3 %v5016_v32 }
 0x27a   :  { %v1100_v22 = vpop.f32.mrf.mxu2  ;;  %v924_v20 = vpop.f32.mrf.mxu0 }
 0x27b   :  { %v1189_v36 = vpop.f32.mrf.mxu3  ;;  %v1013_v9 = vpop.f32.mrf.mxu1 }
 0x27c   :  { %v1190_v45 = vadd.f32 %v1189_v36, %v1100_v22  ;;  %v1014_v61 = vadd.f32 %v1013_v9, %v924_v20 }
 0x27e   :  { %v5078_v54 = vpack.c.bf16 %v1014_v61, %v1012_v7 }
 0x282   :  { %v1102_v21 = vpop.f32.mrf.mxu2  ;;  %v927_v0 = vpop.f32.mrf.mxu0 }
 0x283   :  { %v1191_v55 = vpop.f32.mrf.mxu3  ;;  %v1016_v31 = vpop.f32.mrf.mxu1 }
 0x284   :  { %v1192_v63 = vadd.f32 %v1191_v55, %v1102_v21  ;;  %v1017_v29 = vadd.f32 %v1016_v31, %v927_v0 }
 0x285   :  { %1274 = vmatmul.bf16.gmra.mxu0 %v5022_v19 }
 0x286   :  { %v5080_v15 = vpack.c.bf16 %v1192_v63, %v1190_v45  ;;  %1363 = vmatmul.bf16.gmra.mxu1 %v5024_v41 }
 0x287   :  { %1452 = vmatmul.bf16.gmra.mxu2 %v5022_v19 }
 0x288   :  { %1541 = vmatmul.bf16.gmra.mxu3 %v5024_v41 }
 0x28a   :  { %v1105_v4 = vpop.f32.mrf.mxu2  ;;  %v929_v56 = vpop.f32.mrf.mxu0 }
 0x28b   :  { %v1194_v32 = vpop.f32.mrf.mxu3  ;;  %v1018_v52 = vpop.f32.mrf.mxu1 }
 0x28c   :  { %v1195_v25 = vadd.f32 %v1194_v32, %v1105_v4  ;;  %v1019_v40 = vadd.f32 %v1018_v52, %v929_v56 }
 0x28e   :  { %v5086_v27 = vpack.c.bf16 %v1019_v40, %v1017_v29 }
 0x292   :  { %v1107_v23 = vpop.f32.mrf.mxu2  ;;  %v932_v38 = vpop.f32.mrf.mxu0 }
 0x293   :  { %v1196_v46 = vpop.f32.mrf.mxu3  ;;  %v1021_v13 = vpop.f32.mrf.mxu1 }
 0x294   :  { %v1197_v1 = vadd.f32 %v1196_v46, %v1107_v23  ;;  %v1022_v44 = vadd.f32 %v1021_v13, %v932_v38 }
 0x295   :  { %1279 = vmatmul.bf16.gmra.mxu0 %v5030_v50 }
 0x296   :  { %v5088_v14 = vpack.c.bf16 %v1197_v1, %v1195_v25  ;;  %1368 = vmatmul.bf16.gmra.mxu1 %v5032_v10 }
 0x297   :  { %1457 = vmatmul.bf16.gmra.mxu2 %v5030_v50 }
 0x298   :  { %1546 = vmatmul.bf16.gmra.mxu3 %v5032_v10 }
 0x29a   :  { %v1110_v19 = vpop.f32.mrf.mxu2  ;;  %v934_v34 = vpop.f32.mrf.mxu0 }
 0x29b   :  { %v1199_v41 = vpop.f32.mrf.mxu3  ;;  %v1023_v42 = vpop.f32.mrf.mxu1 }
 0x29c   :  { %v1200_v30 = vadd.f32 %v1199_v41, %v1110_v19  ;;  %v1024_v53 = vadd.f32 %v1023_v42, %v934_v34 }
 0x29e   :  { %v5094_v16 = vpack.c.bf16 %v1024_v53, %v1022_v44 }
 0x2a2   :  { %v1112_v8 = vpop.f32.mrf.mxu2  ;;  %v937_v5 = vpop.f32.mrf.mxu0 }
 0x2a3   :  { %v1201_v60 = vpop.f32.mrf.mxu3  ;;  %v1026_v62 = vpop.f32.mrf.mxu1 }
 0x2a4   :  { %v1202_v51 = vadd.f32 %v1201_v60, %v1112_v8  ;;  %v1027_v26 = vadd.f32 %v1026_v62, %v937_v5 }
 0x2a5   :  { %1284 = vmatmul.bf16.gmra.mxu0 %v5038_v58 }
 0x2a6   :  { %v5096_v24 = vpack.c.bf16 %v1202_v51, %v1200_v30  ;;  %1373 = vmatmul.bf16.gmra.mxu1 %v5040_v59 }
 0x2a7   :  { %1462 = vmatmul.bf16.gmra.mxu2 %v5038_v58 }
 0x2a8   :  { %1551 = vmatmul.bf16.gmra.mxu3 %v5040_v59 }
 0x2aa   :  { %v1115_v50 = vpop.f32.mrf.mxu2  ;;  %v939_v47 = vpop.f32.mrf.mxu0 }
 0x2ab   :  { %v1204_v10 = vpop.f32.mrf.mxu3  ;;  %v1028_v43 = vpop.f32.mrf.mxu1 }
 0x2ac   :  { %v1205_v18 = vadd.f32 %v1204_v10, %v1115_v50  ;;  %v1029_v11 = vadd.f32 %v1028_v43, %v939_v47 }
 0x2ae   :  { %v5102_v6 = vpack.c.bf16 %v1029_v11, %v1027_v26 }
 0x2b2   :  { %v1117_v35 = vpop.f32.mrf.mxu2  ;;  %v1250_v48 = vpop.f32.mrf.mxu0 }
 0x2b3   :  { %v1206_v12 = vpop.f32.mrf.mxu3  ;;  %v1339_v7 = vpop.f32.mrf.mxu1 }
 0x2b4   :  { %v1207_v57 = vadd.f32 %v1206_v12, %v1117_v35  ;;  %v1340_v22 = vadd.f32 %v1339_v7, %v1250_v48 }
 0x2b5   :  { %1289 = vmatmul.bf16.gmra.mxu0 %v5046_v17 }
 0x2b6   :  { %v5104_v36 = vpack.c.bf16 %v1207_v57, %v1205_v18  ;;  %1378 = vmatmul.bf16.gmra.mxu1 %v5048_v37 }
 0x2b7   :  { %1467 = vmatmul.bf16.gmra.mxu2 %v5046_v17 }
 0x2b8   :  { %1556 = vmatmul.bf16.gmra.mxu3 %v5048_v37 }
 0x2ba   :  { %v1428_v58 = vpop.f32.mrf.mxu2  ;;  %v1252_v20 = vpop.f32.mrf.mxu0 }
 0x2bb   :  { %v1517_v59 = vpop.f32.mrf.mxu3  ;;  %v1341_v9 = vpop.f32.mrf.mxu1 }
 0x2bc   :  { %v1518_v45 = vadd.f32 %v1517_v59, %v1428_v58  ;;  %v1342_v61 = vadd.f32 %v1341_v9, %v1252_v20 }
 0x2be   :  { %v5110_v21 = vpack.c.bf16 %v1342_v61, %v1340_v22 }
 0x2c2   :  { %v1430_v55 = vpop.f32.mrf.mxu2  ;;  %v1255_v63 = vpop.f32.mrf.mxu0 }
 0x2c3   :  { %v1519_v0 = vpop.f32.mrf.mxu3  ;;  %v1344_v29 = vpop.f32.mrf.mxu1 }
 0x2c4   :  { %v1520_v31 = vadd.f32 %v1519_v0, %v1430_v55  ;;  %v1345_v4 = vadd.f32 %v1344_v29, %v1255_v63 }
 0x2c5   :  { %1294 = vmatmul.bf16.gmra.mxu0 %v5054_v3 }
 0x2c6   :  { %v5112_v32 = vpack.c.bf16 %v1520_v31, %v1518_v45  ;;  %1383 = vmatmul.bf16.gmra.mxu1 %v5056_v2 }
 0x2c7   :  { %1472 = vmatmul.bf16.gmra.mxu2 %v5054_v3 }
 0x2c8   :  { %1561 = vmatmul.bf16.gmra.mxu3 %v5056_v2 }
 0x2ca   :  { %v1433_v17 = vpop.f32.mrf.mxu2  ;;  %v1257_v56 = vpop.f32.mrf.mxu0 }
 0x2cb   :  { %v1522_v37 = vpop.f32.mrf.mxu3  ;;  %v1346_v52 = vpop.f32.mrf.mxu1 }
 0x2cc   :  { %v1523_v25 = vadd.f32 %v1522_v37, %v1433_v17  ;;  %v1347_v40 = vadd.f32 %v1346_v52, %v1257_v56 }
 0x2ce   :  { %v5118_v23 = vpack.c.bf16 %v1347_v40, %v1345_v4 }
 0x2d2   :  { %v1435_v46 = vpop.f32.mrf.mxu2  ;;  %v1260_v1 = vpop.f32.mrf.mxu0 }
 0x2d3   :  { %v1524_v38 = vpop.f32.mrf.mxu3  ;;  %v1349_v44 = vpop.f32.mrf.mxu1 }
 0x2d4   :  { %v1525_v13 = vadd.f32 %v1524_v38, %v1435_v46  ;;  %v1350_v19 = vadd.f32 %v1349_v44, %v1260_v1 }
 0x2d5   :  { %1299 = vmatmul.bf16.gmra.mxu0 %v5062_v49 }
 0x2d6   :  { %v5120_v41 = vpack.c.bf16 %v1525_v13, %v1523_v25  ;;  %1388 = vmatmul.bf16.gmra.mxu1 %v5064_v39 }
 0x2d7   :  { %1477 = vmatmul.bf16.gmra.mxu2 %v5062_v49 }
 0x2d8   :  { %1566 = vmatmul.bf16.gmra.mxu3 %v5064_v39 }
 0x2da   :  { %v1438_v3 = vpop.f32.mrf.mxu2  ;;  %v1262_v34 = vpop.f32.mrf.mxu0 }
 0x2db   :  { %v1527_v2 = vpop.f32.mrf.mxu3  ;;  %v1351_v42 = vpop.f32.mrf.mxu1 }
 0x2dc   :  { %v1528_v30 = vadd.f32 %v1527_v2, %v1438_v3  ;;  %v1352_v53 = vadd.f32 %v1351_v42, %v1262_v34 }
 0x2de   :  { %v5126_v8 = vpack.c.bf16 %v1352_v53, %v1350_v19 }
 0x2e2   :  { %v1440_v60 = vpop.f32.mrf.mxu2  ;;  %v1265_v51 = vpop.f32.mrf.mxu0 }
 0x2e3   :  { %v1529_v5 = vpop.f32.mrf.mxu3  ;;  %v1354_v26 = vpop.f32.mrf.mxu1 }
 0x2e4   :  { %v1530_v62 = vadd.f32 %v1529_v5, %v1440_v60  ;;  %v1355_v50 = vadd.f32 %v1354_v26, %v1265_v51 }
 0x2e5   :  { %1304 = vmatmul.bf16.gmra.mxu0 %v5070_v28 }
 0x2e6   :  { %v5128_v10 = vpack.c.bf16 %v1530_v62, %v1528_v30  ;;  %1393 = vmatmul.bf16.gmra.mxu1 %v5072_v33 }
 0x2e7   :  { %1482 = vmatmul.bf16.gmra.mxu2 %v5070_v28 }
 0x2e8   :  { %1571 = vmatmul.bf16.gmra.mxu3 %v5072_v33 }
 0x2ea   :  { %v1443_v49 = vpop.f32.mrf.mxu2  ;;  %v1267_v47 = vpop.f32.mrf.mxu0 }
 0x2eb   :  { %v1532_v39 = vpop.f32.mrf.mxu3  ;;  %v1356_v43 = vpop.f32.mrf.mxu1 }
 0x2ec   :  { %v1533_v18 = vadd.f32 %v1532_v39, %v1443_v49  ;;  %v1357_v11 = vadd.f32 %v1356_v43, %v1267_v47 }
 0x2ee   :  { %v5134_v35 = vpack.c.bf16 %v1357_v11, %v1355_v50 }
 0x2f2   :  { %v1445_v12 = vpop.f32.mrf.mxu2  ;;  %v1270_v57 = vpop.f32.mrf.mxu0 }
 0x2f3   :  { %v1534_v48 = vpop.f32.mrf.mxu3  ;;  %v1359_v22 = vpop.f32.mrf.mxu1 }
 0x2f4   :  { %v1535_v7 = vadd.f32 %v1534_v48, %v1445_v12  ;;  %v1360_v58 = vadd.f32 %v1359_v22, %v1270_v57 }
 0x2f5   :  { %1309 = vmatmul.bf16.gmra.mxu0 %v5078_v54 }
 0x2f6   :  { %v5136_v59 = vpack.c.bf16 %v1535_v7, %v1533_v18  ;;  %1398 = vmatmul.bf16.gmra.mxu1 %v5080_v15 }
 0x2f7   :  { %1487 = vmatmul.bf16.gmra.mxu2 %v5078_v54 }
 0x2f8   :  { %1576 = vmatmul.bf16.gmra.mxu3 %v5080_v15 }
 0x2fa   :  { %v1448_v28 = vpop.f32.mrf.mxu2  ;;  %v1272_v20 = vpop.f32.mrf.mxu0 }
 0x2fb   :  { %v1537_v33 = vpop.f32.mrf.mxu3  ;;  %v1361_v9 = vpop.f32.mrf.mxu1 }
 0x2fc   :  { %v1538_v45 = vadd.f32 %v1537_v33, %v1448_v28  ;;  %v1362_v61 = vadd.f32 %v1361_v9, %v1272_v20 }
 0x2fe   :  { %v5142_v55 = vpack.c.bf16 %v1362_v61, %v1360_v58 }
 0x302   :  { %v1450_v0 = vpop.f32.mrf.mxu2  ;;  %v1275_v31 = vpop.f32.mrf.mxu0 }
 0x303   :  { %v1539_v63 = vpop.f32.mrf.mxu3  ;;  %v1364_v4 = vpop.f32.mrf.mxu1 }
 0x304   :  { %v1540_v29 = vadd.f32 %v1539_v63, %v1450_v0  ;;  %v1365_v17 = vadd.f32 %v1364_v4, %v1275_v31 }
 0x305   :  { %1314 = vmatmul.bf16.gmra.mxu0 %v5086_v27 }
 0x306   :  { %v5144_v37 = vpack.c.bf16 %v1540_v29, %v1538_v45  ;;  %1403 = vmatmul.bf16.gmra.mxu1 %v5088_v14 }
 0x307   :  { %1492 = vmatmul.bf16.gmra.mxu2 %v5086_v27 }
 0x308   :  { %1581 = vmatmul.bf16.gmra.mxu3 %v5088_v14 }
 0x30a   :  { %v1453_v54 = vpop.f32.mrf.mxu2  ;;  %v1277_v56 = vpop.f32.mrf.mxu0 }
 0x30b   :  { %v1542_v15 = vpop.f32.mrf.mxu3  ;;  %v1366_v52 = vpop.f32.mrf.mxu1 }
 0x30c   :  { %v1543_v25 = vadd.f32 %v1542_v15, %v1453_v54  ;;  %v1367_v40 = vadd.f32 %v1366_v52, %v1277_v56 }
 0x30e   :  { %v5150_v46 = vpack.c.bf16 %v1367_v40, %v1365_v17 }
 0x312   :  { %v1455_v38 = vpop.f32.mrf.mxu2  ;;  %v1280_v13 = vpop.f32.mrf.mxu0 }
 0x313   :  { %v1544_v1 = vpop.f32.mrf.mxu3  ;;  %v1369_v19 = vpop.f32.mrf.mxu1 }
 0x314   :  { %v1545_v44 = vadd.f32 %v1544_v1, %v1455_v38  ;;  %v1370_v3 = vadd.f32 %v1369_v19, %v1280_v13 }
 0x315   :  { %1319 = vmatmul.bf16.gmra.mxu0 %v5094_v16 }
 0x316   :  { %v5152_v2 = vpack.c.bf16 %v1545_v44, %v1543_v25  ;;  %1408 = vmatmul.bf16.gmra.mxu1 %v5096_v24 }
 0x317   :  { %1497 = vmatmul.bf16.gmra.mxu2 %v5094_v16 }
 0x318   :  { %1586 = vmatmul.bf16.gmra.mxu3 %v5096_v24 }
 0x31a   :  { %v1458_v27 = vpop.f32.mrf.mxu2  ;;  %v1282_v34 = vpop.f32.mrf.mxu0 }
 0x31b   :  { %v1547_v14 = vpop.f32.mrf.mxu3  ;;  %v1371_v42 = vpop.f32.mrf.mxu1 }
 0x31c   :  { %v1548_v30 = vadd.f32 %v1547_v14, %v1458_v27  ;;  %v1372_v53 = vadd.f32 %v1371_v42, %v1282_v34 }
 0x31e   :  { %v5158_v60 = vpack.c.bf16 %v1372_v53, %v1370_v3 }
 0x322   :  { %v1460_v5 = vpop.f32.mrf.mxu2  ;;  %v1285_v62 = vpop.f32.mrf.mxu0 }
 0x323   :  { %v1549_v51 = vpop.f32.mrf.mxu3  ;;  %v1374_v50 = vpop.f32.mrf.mxu1 }
 0x324   :  { %v1550_v26 = vadd.f32 %v1549_v51, %v1460_v5  ;;  %v1375_v49 = vadd.f32 %v1374_v50, %v1285_v62 }
 0x325   :  { %1324 = vmatmul.bf16.gmra.mxu0 %v5102_v6 }
 0x326   :  { %v5160_v39 = vpack.c.bf16 %v1550_v26, %v1548_v30  ;;  %1413 = vmatmul.bf16.gmra.mxu1 %v5104_v36 }
 0x327   :  { %1502 = vmatmul.bf16.gmra.mxu2 %v5102_v6 }
 0x328   :  { %1591 = vmatmul.bf16.gmra.mxu3 %v5104_v36 }
 0x32a   :  { %v1463_v16 = vpop.f32.mrf.mxu2  ;;  %v1287_v47 = vpop.f32.mrf.mxu0 }
 0x32b   :  { %v1552_v24 = vpop.f32.mrf.mxu3  ;;  %v1376_v43 = vpop.f32.mrf.mxu1 }
 0x32c   :  { %v1553_v18 = vadd.f32 %v1552_v24, %v1463_v16  ;;  %v1377_v11 = vadd.f32 %v1376_v43, %v1287_v47 }
 0x32e   :  { %v5166_v12 = vpack.c.bf16 %v1377_v11, %v1375_v49 }
 0x332   :  { %v1465_v48 = vpop.f32.mrf.mxu2  ;;  %v1290_v7 = vpop.f32.mrf.mxu0 }
 0x333   :  { %v1554_v57 = vpop.f32.mrf.mxu3  ;;  %v1379_v58 = vpop.f32.mrf.mxu1 }
 0x334   :  { %v1555_v22 = vadd.f32 %v1554_v57, %v1465_v48  ;;  %v1380_v28 = vadd.f32 %v1379_v58, %v1290_v7 }
 0x335   :  { %1637 = vmatmul.bf16.vlgmr.msrb.gmra.mxu0 %v5110_v21 }
 0x336   :  { %v5168_v33 = vpack.c.bf16 %v1555_v22, %v1553_v18  ;;  %1726 = vmatmul.bf16.vlgmr.msrb.gmra.mxu1 %v5112_v32 }
 0x337   :  { %1815 = vmatmul.bf16.vlgmr.msrb.gmra.mxu2 %v5110_v21 }
 0x338   :  { %1904 = vmatmul.bf16.vlgmr.msrb.gmra.mxu3 %v5112_v32 }
 0x33a   :  { %v1468_v6 = vpop.f32.mrf.mxu2  ;;  %v1292_v20 = vpop.f32.mrf.mxu0 }
 0x33b   :  { %v1557_v36 = vpop.f32.mrf.mxu3  ;;  %v1381_v9 = vpop.f32.mrf.mxu1 }
 0x33c   :  { %v1558_v45 = vadd.f32 %v1557_v36, %v1468_v6  ;;  %v1382_v61 = vadd.f32 %v1381_v9, %v1292_v20 }
 0x33e   :  { %v5174_v0 = vpack.c.bf16 %v1382_v61, %v1380_v28 }
 0x342   :  { %v1470_v63 = vpop.f32.mrf.mxu2  ;;  %v1295_v29 = vpop.f32.mrf.mxu0 }
 0x343   :  { %v1559_v31 = vpop.f32.mrf.mxu3  ;;  %v1384_v17 = vpop.f32.mrf.mxu1 }
 0x344   :  { %v1560_v4 = vadd.f32 %v1559_v31, %v1470_v63  ;;  %v1385_v54 = vadd.f32 %v1384_v17, %v1295_v29 }
 0x345   :  { %1642 = vmatmul.bf16.gmra.mxu0 %v5118_v23 }
 0x346   :  { %v5176_v15 = vpack.c.bf16 %v1560_v4, %v1558_v45  ;;  %1731 = vmatmul.bf16.gmra.mxu1 %v5120_v41 }
 0x347   :  { %1820 = vmatmul.bf16.gmra.mxu2 %v5118_v23 }
 0x348   :  { %1909 = vmatmul.bf16.gmra.mxu3 %v5120_v41 }
 0x34a   :  { %v1473_v21 = vpop.f32.mrf.mxu2  ;;  %v1297_v56 = vpop.f32.mrf.mxu0 }
 0x34b   :  { %v1562_v32 = vpop.f32.mrf.mxu3  ;;  %v1386_v52 = vpop.f32.mrf.mxu1 }
 0x34c   :  { %v1563_v25 = vadd.f32 %v1562_v32, %v1473_v21  ;;  %v1387_v40 = vadd.f32 %v1386_v52, %v1297_v56 }
 0x34e   :  { %v5182_v38 = vpack.c.bf16 %v1387_v40, %v1385_v54 }
 0x352   :  { %v1475_v1 = vpop.f32.mrf.mxu2  ;;  %v1300_v44 = vpop.f32.mrf.mxu0 }
 0x353   :  { %v1564_v13 = vpop.f32.mrf.mxu3  ;;  %v1389_v3 = vpop.f32.mrf.mxu1 }
 0x354   :  { %v1565_v19 = vadd.f32 %v1564_v13, %v1475_v1  ;;  %v1390_v27 = vadd.f32 %v1389_v3, %v1300_v44 }
 0x355   :  { %1647 = vmatmul.bf16.gmra.mxu0 %v5126_v8 }
 0x356   :  { %v5184_v14 = vpack.c.bf16 %v1565_v19, %v1563_v25  ;;  %1736 = vmatmul.bf16.gmra.mxu1 %v5128_v10 }
 0x357   :  { %1825 = vmatmul.bf16.gmra.mxu2 %v5126_v8 }
 0x358   :  { %1914 = vmatmul.bf16.gmra.mxu3 %v5128_v10 }
 0x35a   :  { %v1478_v23 = vpop.f32.mrf.mxu2  ;;  %v1302_v34 = vpop.f32.mrf.mxu0 }
 0x35b   :  { %v1567_v41 = vpop.f32.mrf.mxu3  ;;  %v1391_v42 = vpop.f32.mrf.mxu1 }
 0x35c   :  { %v1568_v30 = vadd.f32 %v1567_v41, %v1478_v23  ;;  %v1392_v53 = vadd.f32 %v1391_v42, %v1302_v34 }
 0x35e   :  { %v5190_v5 = vpack.c.bf16 %v1392_v53, %v1390_v27 }
 0x362   :  { %v1480_v51 = vpop.f32.mrf.mxu2  ;;  %v1305_v26 = vpop.f32.mrf.mxu0 }
 0x363   :  { %v1569_v62 = vpop.f32.mrf.mxu3  ;;  %v1394_v49 = vpop.f32.mrf.mxu1 }
 0x364   :  { %v1570_v50 = vadd.f32 %v1569_v62, %v1480_v51  ;;  %v1395_v16 = vadd.f32 %v1394_v49, %v1305_v26 }
 0x365   :  { %1652 = vmatmul.bf16.gmra.mxu0 %v5134_v35 }
 0x366   :  { %v5192_v24 = vpack.c.bf16 %v1570_v50, %v1568_v30  ;;  %1741 = vmatmul.bf16.gmra.mxu1 %v5136_v59 }
 0x367   :  { %1830 = vmatmul.bf16.gmra.mxu2 %v5134_v35 }
 0x368   :  { %1919 = vmatmul.bf16.gmra.mxu3 %v5136_v59 }
 0x36a   :  { %v1483_v8 = vpop.f32.mrf.mxu2  ;;  %v1307_v47 = vpop.f32.mrf.mxu0 }
 0x36b   :  { %v1572_v10 = vpop.f32.mrf.mxu3  ;;  %v1396_v43 = vpop.f32.mrf.mxu1 }
 0x36c   :  { %v1573_v18 = vadd.f32 %v1572_v10, %v1483_v8  ;;  %v1397_v11 = vadd.f32 %v1396_v43, %v1307_v47 }
 0x36e   :  { %v5198_v48 = vpack.c.bf16 %v1397_v11, %v1395_v16 }
 0x372   :  { %v1485_v57 = vpop.f32.mrf.mxu2  ;;  %v1310_v22 = vpop.f32.mrf.mxu0 }
 0x373   :  { %v1574_v7 = vpop.f32.mrf.mxu3  ;;  %v1399_v28 = vpop.f32.mrf.mxu1 }
 0x374   :  { %v1575_v58 = vadd.f32 %v1574_v7, %v1485_v57  ;;  %v1400_v6 = vadd.f32 %v1399_v28, %v1310_v22 }
 0x375   :  { %1657 = vmatmul.bf16.gmra.mxu0 %v5142_v55 }
 0x376   :  { %v5200_v36 = vpack.c.bf16 %v1575_v58, %v1573_v18  ;;  %1746 = vmatmul.bf16.gmra.mxu1 %v5144_v37 }
 0x377   :  { %1835 = vmatmul.bf16.gmra.mxu2 %v5142_v55 }
 0x378   :  { %1924 = vmatmul.bf16.gmra.mxu3 %v5144_v37 }
 0x37a   :  { %v1488_v35 = vpop.f32.mrf.mxu2  ;;  %v1312_v20 = vpop.f32.mrf.mxu0 }
 0x37b   :  { %v1577_v59 = vpop.f32.mrf.mxu3  ;;  %v1401_v9 = vpop.f32.mrf.mxu1 }
 0x37c   :  { %v1578_v45 = vadd.f32 %v1577_v59, %v1488_v35  ;;  %v1402_v61 = vadd.f32 %v1401_v9, %v1312_v20 }
 0x37e   :  { %v5206_v63 = vpack.c.bf16 %v1402_v61, %v1400_v6 }
 0x382   :  { %v1490_v31 = vpop.f32.mrf.mxu2  ;;  %v1315_v4 = vpop.f32.mrf.mxu0 }
 0x383   :  { %v1579_v29 = vpop.f32.mrf.mxu3  ;;  %v1404_v54 = vpop.f32.mrf.mxu1 }
 0x384   :  { %v1580_v17 = vadd.f32 %v1579_v29, %v1490_v31  ;;  %v1405_v21 = vadd.f32 %v1404_v54, %v1315_v4 }
 0x385   :  { %1662 = vmatmul.bf16.gmra.mxu0 %v5150_v46 }
 0x386   :  { %v5208_v32 = vpack.c.bf16 %v1580_v17, %v1578_v45  ;;  %1751 = vmatmul.bf16.gmra.mxu1 %v5152_v2 }
 0x387   :  { %1840 = vmatmul.bf16.gmra.mxu2 %v5150_v46 }
 0x388   :  { %1929 = vmatmul.bf16.gmra.mxu3 %v5152_v2 }
 0x38a   :  { %v1493_v55 = vpop.f32.mrf.mxu2  ;;  %v1317_v56 = vpop.f32.mrf.mxu0 }
 0x38b   :  { %v1582_v37 = vpop.f32.mrf.mxu3  ;;  %v1406_v52 = vpop.f32.mrf.mxu1 }
 0x38c   :  { %v1583_v25 = vadd.f32 %v1582_v37, %v1493_v55  ;;  %v1407_v40 = vadd.f32 %v1406_v52, %v1317_v56 }
 0x38e   :  { %v5214_v1 = vpack.c.bf16 %v1407_v40, %v1405_v21 }
 0x392   :  { %v1495_v13 = vpop.f32.mrf.mxu2  ;;  %v1320_v19 = vpop.f32.mrf.mxu0 }
 0x393   :  { %v1584_v44 = vpop.f32.mrf.mxu3  ;;  %v1409_v27 = vpop.f32.mrf.mxu1 }
 0x394   :  { %v1585_v3 = vadd.f32 %v1584_v44, %v1495_v13  ;;  %v1410_v23 = vadd.f32 %v1409_v27, %v1320_v19 }
 0x395   :  { %1667 = vmatmul.bf16.gmra.mxu0 %v5158_v60 }
 0x396   :  { %v5216_v41 = vpack.c.bf16 %v1585_v3, %v1583_v25  ;;  %1756 = vmatmul.bf16.gmra.mxu1 %v5160_v39 }
 0x397   :  { %1845 = vmatmul.bf16.gmra.mxu2 %v5158_v60 }
 0x398   :  { %1934 = vmatmul.bf16.gmra.mxu3 %v5160_v39 }
 0x39a   :  { %v1498_v46 = vpop.f32.mrf.mxu2  ;;  %v1322_v34 = vpop.f32.mrf.mxu0 }
 0x39b   :  { %v1587_v2 = vpop.f32.mrf.mxu3  ;;  %v1411_v42 = vpop.f32.mrf.mxu1 }
 0x39c   :  { %v1588_v30 = vadd.f32 %v1587_v2, %v1498_v46  ;;  %v1412_v53 = vadd.f32 %v1411_v42, %v1322_v34 }
 0x39e   :  { %v5222_v51 = vpack.c.bf16 %v1412_v53, %v1410_v23 }
 0x3a2   :  { %v1500_v62 = vpop.f32.mrf.mxu2  ;;  %v1325_v50 = vpop.f32.mrf.mxu0 }
 0x3a3   :  { %v1589_v26 = vpop.f32.mrf.mxu3  ;;  %v1414_v16 = vpop.f32.mrf.mxu1 }
 0x3a4   :  { %v1590_v49 = vadd.f32 %v1589_v26, %v1500_v62  ;;  %v1415_v8 = vadd.f32 %v1414_v16, %v1325_v50 }
 0x3a5   :  { %1672 = vmatmul.bf16.gmra.mxu0 %v5166_v12 }
 0x3a6   :  { %v5224_v10 = vpack.c.bf16 %v1590_v49, %v1588_v30  ;;  %1761 = vmatmul.bf16.gmra.mxu1 %v5168_v33 }
 0x3a7   :  { %1850 = vmatmul.bf16.gmra.mxu2 %v5166_v12 }
 0x3a8   :  { %1939 = vmatmul.bf16.gmra.mxu3 %v5168_v33 }
 0x3aa   :  { %v1503_v60 = vpop.f32.mrf.mxu2  ;;  %v1327_v47 = vpop.f32.mrf.mxu0 }
 0x3ab   :  { %v1592_v39 = vpop.f32.mrf.mxu3  ;;  %v1416_v43 = vpop.f32.mrf.mxu1 }
 0x3ac   :  { %v1593_v18 = vadd.f32 %v1592_v39, %v1503_v60  ;;  %v1417_v11 = vadd.f32 %v1416_v43, %v1327_v47 }
 0x3ae   :  { %v5230_v57 = vpack.c.bf16 %v1417_v11, %v1415_v8 }
 0x3b2   :  { %v1505_v7 = vpop.f32.mrf.mxu2  ;;  %v1638_v58 = vpop.f32.mrf.mxu0 }
 0x3b3   :  { %v1594_v22 = vpop.f32.mrf.mxu3  ;;  %v1727_v6 = vpop.f32.mrf.mxu1 }
 0x3b4   :  { %v1595_v28 = vadd.f32 %v1594_v22, %v1505_v7  ;;  %v1728_v35 = vadd.f32 %v1727_v6, %v1638_v58 }
 0x3b5   :  { %1677 = vmatmul.bf16.gmra.mxu0 %v5174_v0 }
 0x3b6   :  { %v5232_v59 = vpack.c.bf16 %v1595_v28, %v1593_v18  ;;  %1766 = vmatmul.bf16.gmra.mxu1 %v5176_v15 }
 0x3b7   :  { %1855 = vmatmul.bf16.gmra.mxu2 %v5174_v0 }
 0x3b8   :  { %1944 = vmatmul.bf16.gmra.mxu3 %v5176_v15 }
 0x3ba   :  { %v1816_v12 = vpop.f32.mrf.mxu2  ;;  %v1640_v20 = vpop.f32.mrf.mxu0 }
 0x3bb   :  { %v1905_v33 = vpop.f32.mrf.mxu3  ;;  %v1729_v9 = vpop.f32.mrf.mxu1 }
 0x3bc   :  { %v1906_v45 = vadd.f32 %v1905_v33, %v1816_v12  ;;  %v1730_v61 = vadd.f32 %v1729_v9, %v1640_v20 }
 0x3be   :  { %v5238_v31 = vpack.c.bf16 %v1730_v61, %v1728_v35 }
 0x3c0   :  { %7535 = vst [vmem:[#allocation19_spill] sm:$0xff] %v5238_v31 }
 0x3c2   :  { %v1818_v29 = vpop.f32.mrf.mxu2  ;;  %v1643_v17 = vpop.f32.mrf.mxu0 }
 0x3c3   :  { %v1907_v4 = vpop.f32.mrf.mxu3  ;;  %v1732_v21 = vpop.f32.mrf.mxu1 }
 0x3c4   :  { %v1908_v54 = vadd.f32 %v1907_v4, %v1818_v29  ;;  %v1733_v55 = vadd.f32 %v1732_v21, %v1643_v17 }
 0x3c5   :  { %1682 = vmatmul.bf16.gmra.mxu0 %v5182_v38 }
 0x3c6   :  { %v5240_v37 = vpack.c.bf16 %v1908_v54, %v1906_v45  ;;  %1771 = vmatmul.bf16.gmra.mxu1 %v5184_v14 }
 0x3c7   :  { %1860 = vmatmul.bf16.gmra.mxu2 %v5182_v38 }
 0x3c8   :  { %7536 = vst [vmem:[#allocation17_spill] sm:$0xff] %v5240_v37  ;;  %1949 = vmatmul.bf16.gmra.mxu3 %v5184_v14 }
 0x3ca   :  { %v1821_v0 = vpop.f32.mrf.mxu2  ;;  %v1645_v56 = vpop.f32.mrf.mxu0 }
 0x3cb   :  { %v1910_v15 = vpop.f32.mrf.mxu3  ;;  %v1734_v52 = vpop.f32.mrf.mxu1 }
 0x3cc   :  { %v1911_v25 = vadd.f32 %v1910_v15, %v1821_v0  ;;  %v1735_v40 = vadd.f32 %v1734_v52, %v1645_v56 }
 0x3ce   :  { %v5246_v13 = vpack.c.bf16 %v1735_v40, %v1733_v55 }
 0x3d0   :  { %7537 = vst [vmem:[#allocation15_spill] sm:$0xff] %v5246_v13 }
 0x3d2   :  { %v1823_v44 = vpop.f32.mrf.mxu2  ;;  %v1648_v3 = vpop.f32.mrf.mxu0 }
 0x3d3   :  { %v1912_v19 = vpop.f32.mrf.mxu3  ;;  %v1737_v23 = vpop.f32.mrf.mxu1 }
 0x3d4   :  { %v1913_v27 = vadd.f32 %v1912_v19, %v1823_v44  ;;  %v1738_v46 = vadd.f32 %v1737_v23, %v1648_v3 }
 0x3d5   :  { %1687 = vmatmul.bf16.gmra.mxu0 %v5190_v5 }
 0x3d6   :  { %v5248_v2 = vpack.c.bf16 %v1913_v27, %v1911_v25  ;;  %1776 = vmatmul.bf16.gmra.mxu1 %v5192_v24 }
 0x3d7   :  { %1865 = vmatmul.bf16.gmra.mxu2 %v5190_v5 }
 0x3d8   :  { %7538 = vst [vmem:[#allocation25_spill] sm:$0xff] %v5248_v2  ;;  %1954 = vmatmul.bf16.gmra.mxu3 %v5192_v24 }
 0x3da   :  { %v1826_v38 = vpop.f32.mrf.mxu2  ;;  %v1650_v34 = vpop.f32.mrf.mxu0 }
 0x3db   :  { %v1915_v14 = vpop.f32.mrf.mxu3  ;;  %v1739_v42 = vpop.f32.mrf.mxu1 }
 0x3dc   :  { %v1916_v30 = vadd.f32 %v1915_v14, %v1826_v38  ;;  %v1740_v53 = vadd.f32 %v1739_v42, %v1650_v34 }
 0x3de   :  { %v5254_v62 = vpack.c.bf16 %v1740_v53, %v1738_v46 }
 0x3e0   :  { %7539 = vst [vmem:[#allocation24_spill] sm:$0xff] %v5254_v62 }
 0x3e2   :  { %v1828_v26 = vpop.f32.mrf.mxu2  ;;  %v1653_v49 = vpop.f32.mrf.mxu0 }
 0x3e3   :  { %v1917_v50 = vpop.f32.mrf.mxu3  ;;  %v1742_v8 = vpop.f32.mrf.mxu1 }
 0x3e4   :  { %v1918_v16 = vadd.f32 %v1917_v50, %v1828_v26  ;;  %v1743_v60 = vadd.f32 %v1742_v8, %v1653_v49 }
 0x3e5   :  { %1692 = vmatmul.bf16.gmra.mxu0 %v5198_v48 }
 0x3e6   :  { %v5256_v39 = vpack.c.bf16 %v1918_v16, %v1916_v30  ;;  %1781 = vmatmul.bf16.gmra.mxu1 %v5200_v36 }
 0x3e7   :  { %1870 = vmatmul.bf16.gmra.mxu2 %v5198_v48 }
 0x3e8   :  { %7540 = vst [vmem:[#allocation23_spill] sm:$0xff] %v5256_v39  ;;  %1959 = vmatmul.bf16.gmra.mxu3 %v5200_v36 }
 0x3ea   :  { %v1831_v5 = vpop.f32.mrf.mxu2  ;;  %v1655_v47 = vpop.f32.mrf.mxu0 }
 0x3eb   :  { %v1920_v24 = vpop.f32.mrf.mxu3  ;;  %v1744_v43 = vpop.f32.mrf.mxu1 }
 0x3ec   :  { %v1921_v18 = vadd.f32 %v1920_v24, %v1831_v5  ;;  %v1745_v11 = vadd.f32 %v1744_v43, %v1655_v47 }
 0x3ee   :  { %v5262_v7 = vpack.c.bf16 %v1745_v11, %v1743_v60 }
 0x3f0   :  { %7541 = vst [vmem:[#allocation22_spill] sm:$0xff] %v5262_v7 }
 0x3f2   :  { %v1833_v22 = vpop.f32.mrf.mxu2  ;;  %v1658_v28 = vpop.f32.mrf.mxu0 }
 0x3f3   :  { %v1922_v58 = vpop.f32.mrf.mxu3  ;;  %v1747_v35 = vpop.f32.mrf.mxu1 }
 0x3f4   :  { %v1923_v6 = vadd.f32 %v1922_v58, %v1833_v22  ;;  %v5264_v12 = vadd.f32 %v1747_v35, %v1658_v28 }
 0x3f5   :  { %1697 = vmatmul.bf16.gmra.mxu0 %v5206_v63 }
 0x3f6   :  { %v5266_v33 = vpack.c.bf16 %v1923_v6, %v1921_v18  ;;  %1786 = vmatmul.bf16.gmra.mxu1 %v5208_v32 }
 0x3f7   :  { %1875 = vmatmul.bf16.gmra.mxu2 %v5206_v63 }
 0x3f8   :  { %7542 = vst [vmem:[#allocation30_spill] sm:$0xff] %v5266_v33  ;;  %1964 = vmatmul.bf16.gmra.mxu3 %v5208_v32 }
 0x3fa   :  { %v1836_v48 = vpop.f32.mrf.mxu2  ;;  %v5272_v20 = vpop.f32.mrf.mxu0 }
 0x3fb   :  { %v1925_v36 = vpop.f32.mrf.mxu3  ;;  %v5276_v9 = vpop.f32.mrf.mxu1 }
 0x3fc   :  { %v5274_v45 = vadd.f32 %v1925_v36, %v1836_v48  ;;  %v1750_v36 = vadd.f32 %v5276_v9, %v5272_v20 }
 0x402   :  { %v5278_v61 = vpop.f32.mrf.mxu2  ;;  %v1663_v4 = vpop.f32.mrf.mxu0 }
 0x403   :  { %v5280_v29 = vpop.f32.mrf.mxu3  ;;  %v1752_v17 = vpop.f32.mrf.mxu1 }
 0x404   :  { %v1753_v58 = vadd.f32 %v1752_v17, %v1663_v4  ;;  %v1928_v20 = vadd.f32 %v5280_v29, %v5278_v61 }
 0x405   :  { %1702 = vmatmul.bf16.gmra.mxu0 %v5214_v1 }
 0x406   :  { %1791 = vmatmul.bf16.gmra.mxu1 %v5216_v41 }
 0x407   :  { %1880 = vmatmul.bf16.gmra.mxu2 %v5214_v1 }
 0x408   :  { %1969 = vmatmul.bf16.gmra.mxu3 %v5216_v41 }
 0x40a   :  { %v5286_v63 = vpop.f32.mrf.mxu2  ;;  %v1665_v54 = vpop.f32.mrf.mxu0 }
 0x40b   :  { %v1930_v32 = vpop.f32.mrf.mxu3  ;;  %v1754_v21 = vpop.f32.mrf.mxu1 }
 0x40c   :  { %v1755_v24 = vadd.f32 %v1754_v21, %v1665_v54 }
 0x40e   :  { %v5315_v6 = vpack.c.bf16 %v1755_v24, %v1753_v58 }
 0x412   :  { %v1843_v55 = vpop.f32.mrf.mxu2  ;;  %v1668_v15 = vpop.f32.mrf.mxu0 }
 0x413   :  { %v1932_v0 = vpop.f32.mrf.mxu3  ;;  %v1757_v56 = vpop.f32.mrf.mxu1 }
 0x414   :  { %v1933_v35 = vadd.f32 %v1932_v0, %v1843_v55 }
 0x415   :  { %1707 = vmatmul.bf16.gmra.mxu0 %v5222_v51 }
 0x416   :  { %1796 = vmatmul.bf16.gmra.mxu1 %v5224_v10 }
 0x417   :  { %1885 = vmatmul.bf16.gmra.mxu2 %v5222_v51 }
 0x418   :  { %1974 = vmatmul.bf16.gmra.mxu3 %v5224_v10 }
 0x41a   :  { %v1846_v1 = vpop.f32.mrf.mxu2  ;;  %v1670_v41 = vpop.f32.mrf.mxu0 }
 0x41b   :  { %v1935_v25 = vpop.f32.mrf.mxu3  ;;  %v1759_v52 = vpop.f32.mrf.mxu1 }
 0x41c   :  { %v1760_v30 = vadd.f32 %v1759_v52, %v1670_v41  ;;  %v1936_v43 = vadd.f32 %v1935_v25, %v1846_v1  ;;  %v5331_v1 = vpack.c.bf16 %v1750_v36, %v5264_v12  ;;  %v5344_v25 = vpack.c.bf16 %v1928_v20, %v5274_v45 }
 0x422   :  { %v1848_v40 = vpop.f32.mrf.mxu2  ;;  %v1673_v19 = vpop.f32.mrf.mxu0 }
 0x423   :  { %v1937_v44 = vpop.f32.mrf.mxu3  ;;  %v1762_v3 = vpop.f32.mrf.mxu1 }
 0x424   :  { %v1763_v46 = vadd.f32 %v1762_v3, %v1673_v19  ;;  %v1938_v60 = vadd.f32 %v1937_v44, %v1848_v40 }
 0x425   :  { %1712 = vmatmul.bf16.gmra.mxu0 %v5230_v57 }
 0x426   :  { %1801 = vmatmul.bf16.gmra.mxu1 %v5232_v59  ;;  %v5313_v28 = vpack.c.bf16 %v1938_v60, %v1936_v43 }
 0x427   :  { %1890 = vmatmul.bf16.gmra.mxu2 %v5230_v57  ;;  %v1758_v57 = vadd.f32 %v1757_v56, %v1668_v15  ;;  %v1931_v15 = vadd.f32 %v1930_v32, %v5286_v63 }
 0x428   :  { %1979 = vmatmul.bf16.gmra.mxu3 %v5232_v59 }
 0x429   :  { %v5303_v8 = vpack.c.bf16 %v1760_v30, %v1758_v57  ;;  %v5328_v56 = vpack.c.bf16 %v1933_v35, %v1931_v15 }
 0x42a   :  { %v1851_v27 = vpop.f32.mrf.mxu2  ;;  %v1675_v23 = vpop.f32.mrf.mxu0 }
 0x42b   :  { %v1940_v51 = vpop.f32.mrf.mxu3  ;;  %v1764_v10 = vpop.f32.mrf.mxu1 }
 0x42c   :  { %v1765_v38 = vadd.f32 %v1764_v10, %v1675_v23  ;;  %v1941_v26 = vadd.f32 %v1940_v51, %v1851_v27 }
 0x42e   :  { %v5296_v14 = vpack.c.bf16 %v1765_v38, %v1763_v46 }
 0x430   :  { %2017 = vmatpush.bf16.xpose.msra.mxu0 %v5296_v14 }
 0x432   :  { %v1853_v34 = vpop.f32.mrf.mxu2  ;;  %v1678_v53 = vpop.f32.mrf.mxu0 }
 0x433   :  { %v1942_v42 = vpop.f32.mrf.mxu3  ;;  %v1767_v49 = vpop.f32.mrf.mxu1 }
 0x434   :  { %v1943_v50 = vadd.f32 %v1942_v42, %v1853_v34  ;;  %v5299_v16 = vadd.f32 %v1767_v49, %v1678_v53 }
 0x436   :  { %7543 = vst [vmem:[#allocation21_spill] sm:$0xff] %v5299_v16  ;;  %v5301_v59 = vpack.c.bf16 %v1943_v50, %v1941_v26 }
 0x438   :  { %7544 = vst [vmem:[#allocation29_spill] sm:$0xff] %v5301_v59  ;;  %2106 = vmatpush.bf16.xpose.msra.mxu1 %v5301_v59  ;;  %2018 = vmatpush.bf16.xpose.msra.mxu0 %v5303_v8 }
 0x43a   :  { %v1856_v5 = vpop.f32.mrf.mxu2  ;;  %v5307_v18 = vpop.f32.mrf.mxu0 }
 0x43b   :  { %v1945_v47 = vpop.f32.mrf.mxu3  ;;  %v5311_v22 = vpop.f32.mrf.mxu1 }
 0x43c   :  { %v5309_v11 = vadd.f32 %v1945_v47, %v1856_v5  ;;  %7546 = vst [vmem:[#allocation28_spill] sm:$0xff] %v5311_v22 }
 0x43e   :  { %7545 = vst [vmem:[#allocation20_spill] sm:$0xff] %v5309_v11 }
 0x440   :  { %2107 = vmatpush.bf16.xpose.msra.mxu1 %v5313_v28  ;;  %2019 = vmatpush.bf16.xpose.msra.mxu0 %v5315_v6 }
 0x442   :  { %v5319_v48 = vpop.f32.mrf.mxu2  ;;  %v1683_v21 = vpop.f32.mrf.mxu0 }
 0x443   :  { %7547 = vst [vmem:[#allocation18_spill] sm:$0xff] %v5319_v48  ;;  %v5323_v54 = vpop.f32.mrf.mxu3  ;;  %v1772_v4 = vpop.f32.mrf.mxu1 }
 0x444   :  { %7548 = vst [vmem:[#allocation27_spill] sm:$0xff] %v5323_v54  ;;  %v5326_v17 = vadd.f32 %v1772_v4, %v1683_v21 }
 0x448   :  { %2108 = vmatpush.bf16.xpose.msra.mxu1 %v5328_v56  ;;  %2020 = vmatpush.bf16.xpose.msra.mxu0 %v5331_v1 }
 0x44a   :  { %v1861_v9 = vpop.f32.mrf.mxu2  ;;  %v5337_v0 = vpop.f32.mrf.mxu0 }
 0x44b   :  { %v1950_v55 = vpop.f32.mrf.mxu3  ;;  %v5341_v32 = vpop.f32.mrf.mxu1 }
 0x44c   :  { %v5339_v63 = vadd.f32 %v1950_v55, %v1861_v9 }
 0x44e   :  { %7549 = vst [vmem:[#allocation16_spill] sm:$0xff] %v5339_v63 }
 0x450   :  { %2109 = vmatpush.bf16.xpose.msra.mxu1 %v5344_v25  ;;  %2021 = vmatpush.bf16.xpose.msra.mxu0 %v5262_v7 }
 0x452   :  { %v5348_v12 = vpop.f32.mrf.mxu2  ;;  %v1688_v61 = vpop.f32.mrf.mxu0 }
 0x453   :  { %v5350_v41 = vpop.f32.mrf.mxu3  ;;  %v1777_v29 = vpop.f32.mrf.mxu1 }
 0x454   :  { %v5352_v52 = vadd.f32 %v1777_v29, %v1688_v61 }
 0x458   :  { %2110 = vmatpush.bf16.xpose.msra.mxu1 %v5266_v33  ;;  %2022 = vmatpush.bf16.xpose.msra.mxu0 %v5254_v62 }
 0x45a   :  { %v1866_v40 = vpop.f32.mrf.mxu2  ;;  %v5356_v45 = vpop.f32.mrf.mxu0 }
 0x45b   :  { %v1955_v44 = vpop.f32.mrf.mxu3  ;;  %v5360_v3 = vpop.f32.mrf.mxu1 }
 0x45c   :  { %v5358_v19 = vadd.f32 %v1955_v44, %v1866_v40 }
 0x460   :  { %2111 = vmatpush.bf16.xpose.msra.mxu1 %v5256_v39  ;;  %2023 = vmatpush.bf16.xpose.msra.mxu0 %v5246_v13 }
 0x462   :  { %v5364_v27 = vpop.f32.mrf.mxu2  ;;  %v1693_v23 = vpop.f32.mrf.mxu0 }
 0x463   :  { %v5366_v51 = vpop.f32.mrf.mxu3  ;;  %v1782_v10 = vpop.f32.mrf.mxu1 }
 0x464   :  { %v5368_v46 = vadd.f32 %v1782_v10, %v1693_v23 }
 0x468   :  { %2112 = vmatpush.bf16.xpose.msra.mxu1 %v5248_v2  ;;  %2024 = vmatpush.bf16.xpose.msra.mxu0 %v5238_v31 }
 0x46a   :  { %v1871_v38 = vpop.f32.mrf.mxu2  ;;  %v5372_v30 = vpop.f32.mrf.mxu0 }
 0x46b   :  { %v1960_v34 = vpop.f32.mrf.mxu3  ;;  %v5376_v53 = vpop.f32.mrf.mxu1 }
 0x46c   :  { %v5374_v42 = vadd.f32 %v1960_v34, %v1871_v38 }
 0x46f   :  { %2025 = vmatmul.bf16.vlgmr.msra.gmra.mxu0 %v5238_v31 }
 0x470   :  { %2113 = vmatpush.bf16.xpose.msra.mxu1 %v5240_v37 }
 0x472   :  { %v5380_v26 = vpop.f32.mrf.mxu2  ;;  %v1698_v49 = vpop.f32.mrf.mxu0 }
 0x473   :  { %v5382_v50 = vpop.f32.mrf.mxu3  ;;  %v1787_v57 = vpop.f32.mrf.mxu1 }
 0x474   :  { %v5384_v60 = vadd.f32 %v1787_v57, %v1698_v49 }
 0x477   :  { %2114 = vmatmul.bf16.vlgmr.msra.gmra.mxu1 %v5240_v37 }
 0x47a   :  { %v1876_v5 = vpop.f32.mrf.mxu2  ;;  %v1700_v47 = vpop.f32.mrf.mxu0 }
 0x47b   :  { %v1965_v24 = vpop.f32.mrf.mxu3  ;;  %v1789_v58 = vpop.f32.mrf.mxu1 }
 0x47c   :  { %v5387_v43 = vadd.f32 %v1965_v24, %v1876_v5 }
 0x47f   :  { %2030 = vmatmul.bf16.gmra.mxu0 %v5246_v13 }
 0x482   :  { %v1878_v35 = vpop.f32.mrf.mxu2  ;;  %v1703_v21 = vpop.f32.mrf.mxu0 }
 0x483   :  { %v1967_v36 = vpop.f32.mrf.mxu3  ;;  %v1792_v15 = vpop.f32.mrf.mxu1 }
 0x487   :  { %2119 = vmatmul.bf16.gmra.mxu1 %v5248_v2 }
 0x48a   :  { %v1881_v4 = vpop.f32.mrf.mxu2  ;;  %v1705_v9 = vpop.f32.mrf.mxu0 }
 0x48b   :  { %v1970_v20 = vpop.f32.mrf.mxu3  ;;  %v1794_v55 = vpop.f32.mrf.mxu1 }
 0x48f   :  { %2035 = vmatmul.bf16.gmra.mxu0 %v5254_v62 }
 0x492   :  { %v1883_v61 = vpop.f32.mrf.mxu2  ;;  %v1708_v40 = vpop.f32.mrf.mxu0 }
 0x493   :  { %v1972_v29 = vpop.f32.mrf.mxu3  ;;  %v1797_v44 = vpop.f32.mrf.mxu1 }
 0x494   :  { %v1798_v63 = vadd.f32 %v1797_v44, %v1708_v40 }
 0x497   :  { %2124 = vmatmul.bf16.gmra.mxu1 %v5256_v39 }
 0x49a   :  { %v1886_v23 = vpop.f32.mrf.mxu2  ;;  %v1710_v38 = vpop.f32.mrf.mxu0 }
 0x49b   :  { %v1975_v10 = vpop.f32.mrf.mxu3  ;;  %v1799_v34 = vpop.f32.mrf.mxu1 }
 0x49f   :  { %2040 = vmatmul.bf16.gmra.mxu0 %v5262_v7  ;;  %v1800_v7 = vadd.f32 %v1799_v34, %v1710_v38 }
 0x4a2   :  { %v1888_v49 = vpop.f32.mrf.mxu2  ;;  %v1713_v5 = vpop.f32.mrf.mxu0 }
 0x4a3   :  { %v1977_v57 = vpop.f32.mrf.mxu3  ;;  %v1802_v24 = vpop.f32.mrf.mxu1 }
 0x4a4   :  { %v1803_v31 = vadd.f32 %v1802_v24, %v1713_v5  ;;  %v7565_v24 = vld [vmem:[#allocation24_spill] sm:$0xff] }
 0x4a7   :  { %2129 = vmatmul.bf16.gmra.mxu1 %v5266_v33  ;;  %v5401_v33 = vpack.c.bf16 %v1800_v7, %v1798_v63 }
 0x4aa   :  { %v1891_v2 = vpop.f32.mrf.mxu2  ;;  %v1715_v13 = vpop.f32.mrf.mxu0 }
 0x4ab   :  { %v1980_v62 = vpop.f32.mrf.mxu3  ;;  %v1804_v37 = vpop.f32.mrf.mxu1 }
 0x4ac   :  { %v1805_v11 = vadd.f32 %v1804_v37, %v1715_v13  ;;  %v1981_v59 = vadd.f32 %v1980_v62, %v1891_v2  ;;  %v1795_v37 = vadd.f32 %v1794_v55, %v1705_v9  ;;  %v1976_v13 = vadd.f32 %v1975_v10, %v1886_v23  ;;  %v7563_v10 = vld [vmem:[#allocation25_spill] sm:$0xff] }
 0x4ad   :  { %v1973_v2 = vadd.f32 %v1972_v29, %v1883_v61  ;;  %v1790_v62 = vadd.f32 %v1789_v58, %v1700_v47  ;;  %v1780_v58 = vadd.f32 %v5360_v3, %v5356_v45  ;;  %v7561_v29 = vld [vmem:[#allocation15_spill] sm:$0xff] }
 0x4ae   :  { %v5395_v54 = vpack.c.bf16 %v1805_v11, %v1803_v31  ;;  %v1978_v31 = vadd.f32 %v1977_v57, %v1888_v49  ;;  %v1793_v11 = vadd.f32 %v1792_v15, %v1703_v21 }
 0x4af   :  { %2045 = vmatmul.bf16.gmra.mxu0 %v5331_v1 }
 0x4b0   :  { %2195 = vmatpush.bf16.xpose.msra.mxu2 %v5395_v54  ;;  %v5406_v5 = vpack.c.bf16 %v1978_v31, %v1976_v13  ;;  %v5408_v38 = vpack.c.bf16 %v1795_v37, %v1793_v11  ;;  %v7567_v13 = vld [vmem:[#allocation23_spill] sm:$0xff] }
 0x4b2   :  { %v1893_v39 = vpop.f32.mrf.mxu2 }
 0x4b3   :  { %v1982_v48 = vpop.f32.mrf.mxu3 }
 0x4b4   :  { %v1983_v16 = vadd.f32 %v1982_v48, %v1893_v39  ;;  %v1971_v39 = vadd.f32 %v1970_v20, %v1881_v4  ;;  %v1785_v48 = vadd.f32 %v5376_v53, %v5372_v30  ;;  %v5440_v53 = vpack.c.bf16 %v1780_v58, %v5352_v52  ;;  %v7559_v20 = vld [vmem:[#allocation17_spill] sm:$0xff]  ;;  %v7571_v58 = vld [vmem:[#allocation30_spill] sm:$0xff] }
 0x4b5   :  { %v1953_v52 = vadd.f32 %v5350_v41, %v5348_v12  ;;  %v7556_v12 = vld [vmem:[#allocation20_spill] sm:$0xff] }
 0x4b6   :  { %v5399_v22 = vpack.c.bf16 %v1983_v16, %v1981_v59  ;;  %v5413_v7 = vpack.c.bf16 %v1973_v2, %v1971_v39  ;;  %v5416_v16 = vpack.c.bf16 %v1790_v62, %v5384_v60  ;;  %v1968_v59 = vadd.f32 %v1967_v36, %v1878_v35  ;;  %v7569_v39 = vld [vmem:[#allocation22_spill] sm:$0xff] }
 0x4b7   :  { %2134 = vmatmul.bf16.gmra.mxu1 %v5344_v25  ;;  %v5427_v47 = vpack.c.bf16 %v1785_v48, %v5368_v46  ;;  %v1963_v60 = vadd.f32 %v5382_v50, %v5380_v26  ;;  %v1958_v46 = vadd.f32 %v5366_v51, %v5364_v27  ;;  %v1775_v26 = vadd.f32 %v5341_v32, %v5337_v0  ;;  %v7550_v27 = vld [vmem:[#allocation28_spill] sm:$0xff]  ;;  %v7552_v32 = vld [vmem:[#allocation21_spill] sm:$0xff]  ;;  %v7554_v50 = vld [vmem:[#allocation18_spill] sm:$0xff] }
 0x4b8   :  { %2284 = vmatpush.bf16.xpose.msra.mxu3 %v5399_v22  ;;  %2196 = vmatpush.bf16.xpose.msra.mxu2 %v5401_v33  ;;  %v5424_v63 = vpack.c.bf16 %v1968_v59, %v5387_v43  ;;  %v1770_v51 = vadd.f32 %v7550_v27, %v5307_v18  ;;  %v7555_v43 = vld [vmem:[#allocation27_spill] sm:$0xff] }
 0x4b9   :  { %v5437_v30 = vpack.c.bf16 %v1963_v60, %v5374_v42  ;;  %v5450_v45 = vpack.c.bf16 %v1958_v46, %v5358_v19  ;;  %v5453_v3 = vpack.c.bf16 %v1775_v26, %v5326_v17  ;;  %v7551_v42 = vld [vmem:[#allocation16_spill] sm:$0xff]  ;;  %v7553_v17 = vld [vmem:[#allocation29_spill] sm:$0xff]  ;;  %v1948_v35 = vadd.f32 %v7555_v43, %v7554_v50  ;;  %v7557_v18 = vld [vmem:[#allocation19_spill] sm:$0xff] }
 0x4ba   :  { %v5463_v0 = vpack.c.bf16 %v1953_v52, %v7551_v42  ;;  %v5466_v19 = vpack.c.bf16 %v1770_v51, %v7552_v32 }
 0x4bb   :  { %v2002_v41 = vpack.c.bf16 %v1948_v35, %v7556_v12 }
 0x4bf   :  { %2050 = vmatmul.bf16.gmra.mxu0 %v5315_v6 }
 0x4c0   :  { %2285 = vmatpush.bf16.xpose.msra.mxu3 %v5406_v5  ;;  %2197 = vmatpush.bf16.xpose.msra.mxu2 %v5408_v38 }
 0x4c7   :  { %2139 = vmatmul.bf16.gmra.mxu1 %v5328_v56 }
 0x4c8   :  { %2286 = vmatpush.bf16.xpose.msra.mxu3 %v5413_v7  ;;  %2198 = vmatpush.bf16.xpose.msra.mxu2 %v5416_v16 }
 0x4cf   :  { %2055 = vmatmul.bf16.gmra.mxu0 %v5303_v8 }
 0x4d0   :  { %2287 = vmatpush.bf16.xpose.msra.mxu3 %v5424_v63  ;;  %2199 = vmatpush.bf16.xpose.msra.mxu2 %v5427_v47 }
 0x4d7   :  { %2144 = vmatmul.bf16.gmra.mxu1 %v5313_v28 }
 0x4d8   :  { %2288 = vmatpush.bf16.xpose.msra.mxu3 %v5437_v30  ;;  %2200 = vmatpush.bf16.xpose.msra.mxu2 %v5440_v53 }
 0x4df   :  { %2060 = vmatmul.bf16.gmra.mxu0 %v5296_v14 }
 0x4e0   :  { %2289 = vmatpush.bf16.xpose.msra.mxu3 %v5450_v45  ;;  %2201 = vmatpush.bf16.xpose.msra.mxu2 %v5453_v3 }
 0x4e7   :  { %2149 = vmatmul.bf16.gmra.mxu1 %v7553_v17 }
 0x4e8   :  { %2290 = vmatpush.bf16.xpose.msra.mxu3 %v5463_v0  ;;  %2202 = vmatpush.bf16.xpose.msra.mxu2 %v5466_v19 }
 0x4ec   :  { %v2026_v36 = vpop.f32.mrf.mxu0 }
 0x4ef   :  { %2065 = vmatmul.bf16.gmra.mxu0 %v5466_v19  ;;  %2203 = vmatmul.bf16.vlgmr.msra.gmra.mxu2 %v7557_v18 }
 0x4f0   :  { %2291 = vmatpush.bf16.xpose.msra.mxu3 %v2002_v41 }
 0x4f4   :  { %v2115_v21 = vpop.f32.mrf.mxu1  ;;  %v2028_v4 = vpop.f32.mrf.mxu0 }
 0x4f5   :  { %v5476_v15 = vadd.f32 %v2115_v21, %v2026_v36 }
 0x4f7   :  { %7558 = vst [vmem:[#allocation26_spill] sm:$0xff] %v5476_v15  ;;  %2154 = vmatmul.bf16.gmra.mxu1 %v2002_v41  ;;  %2292 = vmatmul.bf16.vlgmr.msra.gmra.mxu3 %v7559_v20  ;;  %v2373_v42 = vand.u32 2147483647, %v5476_v15 }
 0x4fc   :  { %v2117_v9 = vpop.f32.mrf.mxu1  ;;  %v2031_v61 = vpop.f32.mrf.mxu0 }
 0x4fd   :  { %v5479_v55 = vadd.f32 %v2117_v9, %v2028_v4 }
 0x4ff   :  { %7560 = vst [vmem:[#allocation28_spill] sm:$0xff] %v5479_v55  ;;  %2070 = vmatmul.bf16.gmra.mxu0 %v5453_v3  ;;  %2208 = vmatmul.bf16.gmra.mxu2 %v7561_v29  ;;  %v2375_v36 = vand.u32 2147483647, %v5479_v55 }
 0x504   :  { %v2120_v40 = vpop.f32.mrf.mxu1  ;;  %v2033_v23 = vpop.f32.mrf.mxu0 }
 0x505   :  { %v5483_v44 = vadd.f32 %v2120_v40, %v2031_v61 }
 0x507   :  { %7562 = vst [vmem:[#allocation16_spill] sm:$0xff] %v5483_v44  ;;  %2159 = vmatmul.bf16.gmra.mxu1 %v5463_v0  ;;  %2297 = vmatmul.bf16.gmra.mxu3 %v7563_v10  ;;  %v2377_v9 = vand.u32 2147483647, %v5483_v44 }
 0x50c   :  { %v2122_v34 = vpop.f32.mrf.mxu1  ;;  %v2036_v57 = vpop.f32.mrf.mxu0 }
 0x50d   :  { %v5487_v49 = vadd.f32 %v2122_v34, %v2033_v23 }
 0x50f   :  { %7564 = vst [vmem:[#allocation21_spill] sm:$0xff] %v5487_v49  ;;  %2075 = vmatmul.bf16.gmra.mxu0 %v5440_v53  ;;  %2213 = vmatmul.bf16.gmra.mxu2 %v7565_v24 }
 0x514   :  { %v2125_v31 = vpop.f32.mrf.mxu1  ;;  %v2038_v11 = vpop.f32.mrf.mxu0 }
 0x515   :  { %v5491_v37 = vadd.f32 %v2125_v31, %v2036_v57  ;;  %v2379_v57 = vand.u32 2147483647, %v5487_v49 }
 0x517   :  { %7566 = vst [vmem:[#allocation29_spill] sm:$0xff] %v5491_v37  ;;  %2164 = vmatmul.bf16.gmra.mxu1 %v5450_v45  ;;  %2302 = vmatmul.bf16.gmra.mxu3 %v7567_v13 }
 0x51c   :  { %v2127_v2 = vpop.f32.mrf.mxu1  ;;  %v2041_v59 = vpop.f32.mrf.mxu0 }
 0x51d   :  { %v5495_v62 = vadd.f32 %v2127_v2, %v2038_v11 }
 0x51f   :  { %7568 = vst [vmem:[#allocation18_spill] sm:$0xff] %v5495_v62  ;;  %2080 = vmatmul.bf16.gmra.mxu0 %v5427_v47  ;;  %2218 = vmatmul.bf16.gmra.mxu2 %v7569_v39 }
 0x524   :  { %v2130_v48 = vpop.f32.mrf.mxu1  ;;  %v2043_v46 = vpop.f32.mrf.mxu0 }
 0x525   :  { %v5499_v60 = vadd.f32 %v2130_v48, %v2041_v59  ;;  %v2381_v59 = vand.u32 2147483647, %v5491_v37 }
 0x527   :  { %7570 = vst [vmem:[#allocation27_spill] sm:$0xff] %v5499_v60  ;;  %2169 = vmatmul.bf16.gmra.mxu1 %v5437_v30  ;;  %2307 = vmatmul.bf16.gmra.mxu3 %v7571_v58 }
 0x52c   :  { %v2132_v26 = vpop.f32.mrf.mxu1 }
 0x52d   :  { %v5503_v52 = vadd.f32 %v2132_v26, %v2043_v46 }
 0x52f   :  { %7572 = vst [vmem:[#allocation20_spill] sm:$0xff] %v5503_v52  ;;  %2085 = vmatmul.bf16.gmra.mxu0 %v5416_v16  ;;  %2223 = vmatmul.bf16.gmra.mxu2 %v5331_v1  ;;  %v5523_v1 = vpop.f32.mrf.mxu0 }
 0x537   :  { %2174 = vmatmul.bf16.gmra.mxu1 %v5424_v63  ;;  %2312 = vmatmul.bf16.gmra.mxu3 %v5344_v25  ;;  %v5528_v25 = vpop.f32.mrf.mxu0 }
 0x53f   :  { %2090 = vmatmul.bf16.gmra.mxu0 %v5408_v38  ;;  %2228 = vmatmul.bf16.gmra.mxu2 %v5315_v6  ;;  %v5521_v6 = vpop.f32.mrf.mxu1 }
 0x547   :  { %2179 = vmatmul.bf16.gmra.mxu1 %v5413_v7  ;;  %2317 = vmatmul.bf16.gmra.mxu3 %v5328_v56  ;;  %v5526_v56 = vpop.f32.mrf.mxu1 }
 0x54f   :  { %2095 = vmatmul.bf16.gmra.mxu0 %v5401_v33  ;;  %2233 = vmatmul.bf16.gmra.mxu2 %v5303_v8  ;;  %v5532_v51 = vpop.f32.mrf.mxu1 }
 0x557   :  { %2184 = vmatmul.bf16.gmra.mxu1 %v5406_v5  ;;  %2322 = vmatmul.bf16.gmra.mxu3 %v5313_v28 }
 0x55f   :  { %2100 = vmatmul.bf16.gmra.mxu0 %v5395_v54  ;;  %2238 = vmatmul.bf16.gmra.mxu2 %v5296_v14 }
 0x567   :  { %2189 = vmatmul.bf16.gmra.mxu1 %v5399_v22  ;;  %2327 = vmatmul.bf16.gmra.mxu3 %v7553_v17  ;;  %v5536_v17 = vpop.f32.mrf.mxu0 }
 0x56f   :  { %2243 = vmatmul.bf16.gmra.mxu2 %v5466_v19  ;;  %v5546_v21 = vpop.f32.mrf.mxu0 }
 0x572   :  { %v2204_v8 = vpop.f32.mrf.mxu2 }
 0x577   :  { %2332 = vmatmul.bf16.gmra.mxu3 %v2002_v41  ;;  %v5543_v41 = vpop.f32.mrf.mxu1 }
 0x57a   :  { %v2293_v28 = vpop.f32.mrf.mxu3  ;;  %v2206_v14 = vpop.f32.mrf.mxu2 }
 0x57b   :  { %v5530_v27 = vadd.f32 %v2293_v28, %v2204_v8  ;;  %v2383_v28 = vand.u32 2147483647, %v5495_v62 }
 0x57d   :  { %7573 = vst [vmem:[#allocation19_spill] sm:$0xff] %v5530_v27  ;;  %v2374_v32 = vand.u32 2147483647, %v5530_v27 }
 0x57f   :  { %v2437_v50 = vmax.f32 %v2373_v42, %v2374_v32  ;;  %2248 = vmatmul.bf16.gmra.mxu2 %v5453_v3  ;;  %v5552_v40 = vpop.f32.mrf.mxu1 }
 0x581   :  { %2438 = vmax.xlane.f32.xlu0 %v2437_v50 }
 0x582   :  { %v2295_v19 = vpop.f32.mrf.mxu3  ;;  %v2209_v35 = vpop.f32.mrf.mxu2 }
 0x583   :  { %v5539_v43 = vadd.f32 %v2295_v19, %v2206_v14 }
 0x585   :  { %7574 = vst [vmem:[#allocation17_spill] sm:$0xff] %v5539_v43  ;;  %v2376_v12 = vand.u32 2147483647, %v5539_v43 }
 0x587   :  { %2337 = vmatmul.bf16.gmra.mxu3 %v5463_v0  ;;  %v2440_v18 = vmax.f32 %v2375_v36, %v2376_v12  ;;  %v5555_v0 = vpop.f32.mrf.mxu0  ;;  %v5562_v11 = vpop.f32.mrf.mxu1 }
 0x589   :  { %2441 = vmax.xlane.f32.xlu0 %v2440_v18 }
 0x58a   :  { %v2298_v4 = vpop.f32.mrf.mxu3  ;;  %v2211_v3 = vpop.f32.mrf.mxu2 }
 0x58b   :  { %v5548_v20 = vadd.f32 %v2298_v4, %v2209_v35  ;;  %v2385_v35 = vand.u32 2147483647, %v5499_v60 }
 0x58d   :  { %7575 = vst [vmem:[#allocation15_spill] sm:$0xff] %v5548_v20  ;;  %v2378_v61 = vand.u32 2147483647, %v5548_v20 }
 0x58f   :  { %v2443_v29 = vmax.f32 %v2377_v9, %v2378_v61  ;;  %2253 = vmatmul.bf16.gmra.mxu2 %v5440_v53  ;;  %v5566_v39 = vpop.f32.mrf.mxu0  ;;  %v5573_v8 = vpop.f32.mrf.mxu1  ;;  %v2387_v61 = vand.u32 2147483647, %v5503_v52 }
 0x591   :  { %2444 = vmax.xlane.f32.xlu1 %v2443_v29 }
 0x592   :  { %v2300_v23 = vpop.f32.mrf.mxu3  ;;  %v2214_v34 = vpop.f32.mrf.mxu2 }
 0x593   :  { %v5557_v10 = vadd.f32 %v2300_v23, %v2211_v3 }
 0x595   :  { %7576 = vst [vmem:[#allocation25_spill] sm:$0xff] %v5557_v10  ;;  %v2380_v24 = vand.u32 2147483647, %v5557_v10 }
 0x597   :  { %2342 = vmatmul.bf16.gmra.mxu3 %v5450_v45  ;;  %v2446_v31 = vmax.f32 %v2379_v57, %v2380_v24  ;;  %v5577_v42 = vpop.f32.mrf.mxu0  ;;  %v5584_v12 = vpop.f32.mrf.mxu1 }
 0x599   :  { %2447 = vmax.xlane.f32.xlu1 %v2446_v31 }
 0x59a   :  { %v2303_v13 = vpop.f32.mrf.mxu3  ;;  %v2216_v53 = vpop.f32.mrf.mxu2 }
 0x59b   :  { %v5564_v2 = vadd.f32 %v2303_v13, %v2214_v34  ;;  %v5596_v34 = vadd.f32 %v5521_v6, %v5523_v1 }
 0x59d   :  { %7577 = vst [vmem:[#allocation24_spill] sm:$0xff] %v5564_v2  ;;  %v2382_v48 = vand.u32 2147483647, %v5564_v2 }
 0x59e   :  { %7581 = vst [vmem:[#allocation31_spill] sm:$0xff] %v5596_v34 }
 0x59f   :  { %v2449_v58 = vmax.f32 %v2381_v59, %v2382_v48  ;;  %2258 = vmatmul.bf16.gmra.mxu2 %v5427_v47  ;;  %v5586_v4 = vpop.f32.mrf.mxu0  ;;  %v5598_v57 = vpop.f32.mrf.mxu1 }
 0x5a1   :  { %2450 = vmax.xlane.f32.xlu2 %v2449_v58 }
 0x5a2   :  { %v2305_v46 = vpop.f32.mrf.mxu3  ;;  %v2219_v26 = vpop.f32.mrf.mxu2 }
 0x5a3   :  { %v5571_v45 = vadd.f32 %v2305_v46, %v2216_v53  ;;  %v2389_v53 = vand.u32 2147483647, %v5596_v34 }
 0x5a5   :  { %7578 = vst [vmem:[#allocation23_spill] sm:$0xff] %v5571_v45  ;;  %v2384_v14 = vand.u32 2147483647, %v5571_v45 }
 0x5a7   :  { %2347 = vmatmul.bf16.gmra.mxu3 %v5437_v30  ;;  %v2452_v32 = vmax.f32 %v2383_v28, %v2384_v14  ;;  %v5600_v24 = vpop.f32.mrf.mxu0  ;;  %v5611_v1 = vpop.f32.mrf.mxu1 }
 0x5a9   :  { %2453 = vmax.xlane.f32.xlu2 %v2452_v32 }
 0x5aa   :  { %v2308_v50 = vpop.f32.mrf.mxu3  ;;  %v2221_v47 = vpop.f32.mrf.mxu2 }
 0x5ab   :  { %v5580_v19 = vadd.f32 %v2308_v50, %v2219_v26 }
 0x5ad   :  { %7579 = vst [vmem:[#allocation22_spill] sm:$0xff] %v5580_v19  ;;  %v2386_v36 = vand.u32 2147483647, %v5580_v19 }
 0x5af   :  { %v2455_v18 = vmax.f32 %v2385_v35, %v2386_v36  ;;  %2263 = vmatmul.bf16.gmra.mxu2 %v5416_v16  ;;  %v5615_v26 = vpop.f32.mrf.mxu0 }
 0x5b1   :  { %2456 = vmax.xlane.f32.xlu0 %v2455_v18 }
 0x5b2   :  { %v2310_v3 = vpop.f32.mrf.mxu3  ;;  %v2224_v9 = vpop.f32.mrf.mxu2 }
 0x5b3   :  { %v5589_v30 = vadd.f32 %v2310_v3, %v2221_v47  ;;  %v5626_v47 = vpop.f32.mrf.mxu1 }
 0x5b5   :  { %7580 = vst [vmem:[#allocation30_spill] sm:$0xff] %v5589_v30  ;;  %v2388_v29 = vand.u32 2147483647, %v5589_v30 }
 0x5b7   :  { %2352 = vmatmul.bf16.gmra.mxu3 %v5424_v63  ;;  %v2458_v23 = vmax.f32 %v2387_v61, %v2388_v29  ;;  %v5608_v63 = vadd.f32 %v5526_v56, %v5528_v25  ;;  %v5622_v56 = vadd.f32 %v5532_v51, %v5536_v17  ;;  %v5630_v18 = vpop.f32.mrf.mxu0 }
 0x5b9   :  { %2459 = vmax.xlane.f32.xlu1 %v2458_v23  ;;  %7583 = vst [vmem:[#allocation33_spill] sm:$0xff] %v5608_v63  ;;  %v2391_v28 = vand.u32 2147483647, %v5608_v63  ;;  %v2393_v35 = vand.u32 2147483647, %v5622_v56 }
 0x5ba   :  { %v2313_v16 = vpop.f32.mrf.mxu3  ;;  %v2226_v13 = vpop.f32.mrf.mxu2 }
 0x5bb   :  { %v5602_v31 = vadd.f32 %v2313_v16, %v2224_v9  ;;  %v5641_v23 = vpop.f32.mrf.mxu1 }
 0x5bd   :  { %7582 = vst [vmem:[#allocation32_spill] sm:$0xff] %v5602_v31  ;;  %v2390_v59 = vand.u32 2147483647, %v5602_v31 }
 0x5bf   :  { %v2461_v48 = vmax.f32 %v2389_v53, %v2390_v59  ;;  %2268 = vmatmul.bf16.gmra.mxu2 %v5408_v38 }
 0x5c1   :  { %2462 = vmax.xlane.f32.xlu2 %v2461_v48 }
 0x5c2   :  { %v2315_v6 = vpop.f32.mrf.mxu3  ;;  %v2229_v46 = vpop.f32.mrf.mxu2 }
 0x5c3   :  { %v5613_v58 = vadd.f32 %v2315_v6, %v2226_v13 }
 0x5c5   :  { %7584 = vst [vmem:[#allocation34_spill] sm:$0xff] %v5613_v58  ;;  %v2392_v14 = vand.u32 2147483647, %v5613_v58 }
 0x5c7   :  { %2357 = vmatmul.bf16.gmra.mxu3 %v5413_v7  ;;  %v2464_v32 = vmax.f32 %v2391_v28, %v2392_v14  ;;  %v5634_v7 = vadd.f32 %v5543_v41, %v5546_v21  ;;  %v5646_v41 = vadd.f32 %v5552_v40, %v5555_v0  ;;  %v5648_v21 = vpop.f32.mrf.mxu0 }
 0x5c9   :  { %2465 = vmax.xlane.f32.xlu0 %v2464_v32  ;;  %v2395_v61 = vand.u32 2147483647, %v5634_v7  ;;  %v2397_v59 = vand.u32 2147483647, %v5646_v41 }
 0x5ca   :  { %v2318_v38 = vpop.f32.mrf.mxu3  ;;  %v2231_v50 = vpop.f32.mrf.mxu2 }
 0x5cb   :  { %v5624_v25 = vadd.f32 %v2318_v38, %v2229_v46  ;;  %v5658_v46 = vpop.f32.mrf.mxu1 }
 0x5cd   :  { %v2394_v36 = vand.u32 2147483647, %v5624_v25 }
 0x5cf   :  { %v2467_v3 = vmax.f32 %v2393_v35, %v2394_v36  ;;  %2273 = vmatmul.bf16.gmra.mxu2 %v5401_v33  ;;  %v5661_v0 = vpop.f32.mrf.mxu0 }
 0x5d1   :  { %2468 = vmax.xlane.f32.xlu1 %v2467_v3 }
 0x5d2   :  { %v2320_v51 = vpop.f32.mrf.mxu3  ;;  %v2234_v9 = vpop.f32.mrf.mxu2 }
 0x5d3   :  { %v5637_v17 = vadd.f32 %v2320_v51, %v2231_v50 }
 0x5d5   :  { %7585 = vst [vmem:[#allocation35_spill] sm:$0xff] %v5637_v17  ;;  %v2396_v29 = vand.u32 2147483647, %v5637_v17 }
 0x5d7   :  { %2362 = vmatmul.bf16.gmra.mxu3 %v5406_v5  ;;  %v2470_v16 = vmax.f32 %v2395_v61, %v2396_v29  ;;  %v5656_v5 = vadd.f32 %v5562_v11, %v5566_v39  ;;  %v5670_v11 = vadd.f32 %v5573_v8, %v5577_v42  ;;  %v5672_v39 = vpop.f32.mrf.mxu1  ;;  %v5676_v3 = vpop.f32.mrf.mxu0 }
 0x5d9   :  { %2471 = vmax.xlane.f32.xlu2 %v2470_v16  ;;  %v2399_v32 = vand.u32 2147483647, %v5656_v5  ;;  %7586 = vst [vmem:[#allocation36_spill] sm:$0xff] %v5670_v11  ;;  %v2401_v51 = vand.u32 2147483647, %v5670_v11 }
 0x5da   :  { %v2323_v33 = vpop.f32.mrf.mxu3  ;;  %v2236_v53 = vpop.f32.mrf.mxu2 }
 0x5db   :  { %v5650_v13 = vadd.f32 %v2323_v33, %v2234_v9 }
 0x5dd   :  { %v2398_v48 = vand.u32 2147483647, %v5650_v13 }
 0x5df   :  { %v2473_v6 = vmax.f32 %v2397_v59, %v2398_v48  ;;  %2278 = vmatmul.bf16.gmra.mxu2 %v5395_v54  ;;  %v5686_v33 = vpop.f32.mrf.mxu1 }
 0x5e1   :  { %2474 = vmax.xlane.f32.xlu0 %v2473_v6  ;;  %v5692_v6 = vpop.f32.mrf.mxu0 }
 0x5e2   :  { %v2325_v40 = vpop.f32.mrf.mxu3  ;;  %v2239_v14 = vpop.f32.mrf.mxu2 }
 0x5e3   :  { %v5663_v28 = vadd.f32 %v2325_v40, %v2236_v53 }
 0x5e5   :  { %v2400_v38 = vand.u32 2147483647, %v5663_v28 }
 0x5e7   :  { %2367 = vmatmul.bf16.gmra.mxu3 %v5399_v22  ;;  %v2476_v50 = vmax.f32 %v2399_v32, %v2400_v38  ;;  %v5682_v22 = vadd.f32 %v5584_v12, %v5586_v4  ;;  %v5697_v4 = vadd.f32 %v5598_v57, %v5600_v24  ;;  %v5711_v24 = vadd.f32 %v5611_v1, %v5615_v26 }
 0x5e9   :  { %2477 = vmax.xlane.f32.xlu1 %v2476_v50  ;;  %v2403_v59 = vand.u32 2147483647, %v5682_v22  ;;  %7591 = vst [vmem:[#allocation41_spill] sm:$0xff] %v5711_v24 }
 0x5ea   :  { %v2328_v54 = vpop.f32.mrf.mxu3  ;;  %v2241_v36 = vpop.f32.mrf.mxu2 }
 0x5eb   :  { %v5674_v35 = vadd.f32 %v2328_v54, %v2239_v14 }
 0x5ed   :  { %7587 = vst [vmem:[#allocation37_spill] sm:$0xff] %v5674_v35  ;;  %v2402_v9 = vand.u32 2147483647, %v5674_v35 }
 0x5ef   :  { %v2479_v61 = vmax.f32 %v2401_v51, %v2402_v9 }
 0x5f1   :  { %2480 = vmax.xlane.f32.xlu2 %v2479_v61  ;;  %v5706_v61 = vpop.f32.mrf.mxu1 }
 0x5f2   :  { %v2330_v8 = vpop.f32.mrf.mxu3  ;;  %v2244_v16 = vpop.f32.mrf.mxu2 }
 0x5f3   :  { %v5684_v42 = vadd.f32 %v2330_v8, %v2241_v36  ;;  %v2405_v36 = vand.u32 2147483647, %v5697_v4 }
 0x5f4   :  { %v2439_v29 = vpop.xlane.xlu0 %2438 }
 0x5f5   :  { %v5688_v53 = vmax.f32 %v2439_v29, 1e-30  ;;  %v2404_v48 = vand.u32 2147483647, %v5684_v42  ;;  %v5713_v29 = vpop.f32.mrf.mxu0 }
 0x5f7   :  { %7588 = vst [vmem:[#allocation38_spill] sm:$0xff] %v5688_v53  ;;  %4289 = vrcp.f32 %v5688_v53  ;;  %v2482_v12 = vmax.f32 %v2403_v59, %v2404_v48  ;;  %vm2570_vm1 = vweird.f32 %v5688_v53 }
 0x5f9   :  { %2483 = vmax.xlane.f32.xlu0 %v2482_v12  ;;  %v2574_v12 = vand.u32 2147483647, %v5688_v53 }
 0x5fa   :  { %v2333_v40 = vpop.f32.mrf.mxu3  ;;  %v2246_v38 = vpop.f32.mrf.mxu2 }
 0x5fb   :  { %v5699_v14 = vadd.f32 %v2333_v40, %v2244_v16  ;;  %v2576_v16 = vand.u32 2147483648, %v5688_v53  ;;  %vm2575_vm3 = vcmp.eq.f32.partialorder %v2574_v12, 8.507059e+37 }
 0x5fc   :  { %v2442_v32 = vpop.xlane.xlu0 %2441 }
 0x5fd   :  { %7589 = vst [vmem:[#allocation39_spill] sm:$0xff] %v5699_v14  ;;  %v4290_v50 = vpop.eup %4289  ;;  %v5701_v54 = vmax.f32 %v2442_v32, 1e-30  ;;  %v2406_v51 = vand.u32 2147483647, %v5699_v14 }
 0x5fe   :  { %v2566_v9 = vmul.f32 %v4290_v50, %v5688_v53  ;;  %vm2571_vm0 = vweird.f32 %v4290_v50 }
 0x5ff   :  { %7590 = vst [vmem:[#allocation40_spill] sm:$0xff] %v5701_v54  ;;  %4291 = vrcp.f32 %v5701_v54  ;;  %v2485_v57 = vmax.f32 %v2405_v36, %v2406_v51  ;;  %v2407_v36 = vand.u32 2147483647, %v5711_v24  ;;  %vm2572_vm2 = vmor %vm2570_vm1, %vm2571_vm0  ;;  %vm2586_vm5 = vweird.f32 %v5701_v54 }
 0x600   :  { %v2567_v8 = vsub.f32 1.0, %v2566_v9 }
 0x601   :  { %2486 = vmax.xlane.f32.xlu1 %v2485_v57  ;;  %v2577_v57 = vor.u32 1.1754944e-38, %v2576_v16 }
 0x602   :  { %v2335_v59 = vpop.f32.mrf.mxu3  ;;  %v2568_v48 = vmul.f32 %v4290_v50, %v2567_v8  ;;  %v2249_v35 = vpop.f32.mrf.mxu2 }
 0x603   :  { %v5717_v40 = vadd.f32 %v2335_v59, %v2246_v38 }
 0x604   :  { %v2445_v32 = vpop.xlane.xlu1 %2444  ;;  %v2569_v51 = vadd.f32 %v4290_v50, %v2568_v48  ;;  %v5728_v48 = vadd.f32 %v5626_v47, %v5630_v18 }
 0x605   :  { %7592 = vst [vmem:[#allocation42_spill] sm:$0xff] %v5717_v40  ;;  %v4292_v1 = vpop.eup %4291  ;;  %v5721_v26 = vmax.f32 %v2445_v32, 1e-30  ;;  %v2408_v9 = vand.u32 2147483647, %v5717_v40  ;;  %v5732_v40 = vpop.f32.mrf.mxu1 }
 0x606   :  { %v2573_v8 = vsel %vm2572_vm2, %v4290_v50, %v2569_v51  ;;  %v2582_v11 = vmul.f32 %v4292_v1, %v5701_v54  ;;  %7594 = vst [vmem:[#allocation44_spill] sm:$0xff] %v5728_v48  ;;  %v2592_v50 = vand.u32 2147483648, %v5701_v54  ;;  %vm2587_vm4 = vweird.f32 %v4292_v1  ;;  %v5736_v51 = vpop.f32.mrf.mxu0 }
 0x607   :  { %7593 = vst [vmem:[#allocation43_spill] sm:$0xff] %v5721_v26  ;;  %4293 = vrcp.f32 %v5721_v26  ;;  %v2488_v38 = vmax.f32 %v2407_v36, %v2408_v9  ;;  %v2578_v59 = vsel %vm2575_vm3, %v2577_v57, %v2573_v8  ;;  %v2590_v36 = vand.u32 2147483647, %v5701_v54  ;;  %vm2588_vm6 = vmor %vm2586_vm5, %vm2587_vm4 }
 0x608   :  { %v2579_v53 = vmul.f32 %v2578_v59, %v5476_v15  ;;  %v2580_v32 = vmul.f32 %v2578_v59, %v5530_v27  ;;  %v2583_v24 = vsub.f32 1.0, %v2582_v11  ;;  %v2409_v11 = vand.u32 2147483647, %v5728_v48 }
 0x609   :  { %2489 = vmax.xlane.f32.xlu2 %v2488_v38  ;;  %v2593_v15 = vor.u32 1.1754944e-38, %v2592_v50  ;;  %vm2591_vm7 = vcmp.eq.f32.partialorder %v2590_v36, 8.507059e+37  ;;  %vm2602_vm9 = vweird.f32 %v5721_v26 }
 0x60a   :  { %v2338_v16 = vpop.f32.mrf.mxu3  ;;  %v2584_v12 = vmul.f32 %v4292_v1, %v2583_v24  ;;  %v3077_v47 = vmul.f32 %v2579_v53, %v2579_v53  ;;  %v3078_v18 = vmul.f32 %v2580_v32, %v2580_v32  ;;  %v2251_v8 = vpop.f32.mrf.mxu2 }
 0x60b   :  { %v5738_v9 = vadd.f32 %v2338_v16, %v2249_v35 }
 0x60c   :  { %v2448_v57 = vpop.xlane.xlu1 %2447  ;;  %v2585_v59 = vadd.f32 %v4292_v1, %v2584_v12  ;;  %v3141_v53 = vadd.f32 %v3078_v18, %v3077_v47  ;;  %v5749_v12 = vadd.f32 %v5641_v23, %v5648_v21  ;;  %v2606_v47 = vand.u32 2147483647, %v5721_v26 }
 0x60d   :  { %7595 = vst [vmem:[#allocation45_spill] sm:$0xff] %v5738_v9  ;;  %v4294_v38 = vpop.eup %4293  ;;  %v5742_v27 = vmax.f32 %v2448_v57, 1e-30  ;;  %v2410_v24 = vand.u32 2147483647, %v5738_v9  ;;  %v5755_v18 = vpop.f32.mrf.mxu1 }
 0x60e   :  { %v2589_v14 = vsel %vm2588_vm6, %v4292_v1, %v2585_v59  ;;  %v2598_v35 = vmul.f32 %v4294_v38, %v5721_v26  ;;  %7596 = vst [vmem:[#allocation46_spill] sm:$0xff] %v5749_v12  ;;  %v2608_v1 = vand.u32 2147483648, %v5721_v26  ;;  %vm2603_vm8 = vweird.f32 %v4294_v38 }
 0x60f   :  { %4295 = vrcp.f32 %v5742_v27  ;;  %v2491_v32 = vmax.f32 %v2409_v11, %v2410_v24  ;;  %v2594_v16 = vsel %vm2591_vm7, %v2593_v15, %v2589_v14  ;;  %v2411_v59 = vand.u32 2147483647, %v5749_v12  ;;  %vm2604_vm10 = vmor %vm2602_vm9, %vm2603_vm8 }
 0x610   :  { %v2595_v57 = vmul.f32 %v2594_v16, %v5479_v55  ;;  %v2596_v54 = vmul.f32 %v2594_v16, %v5539_v43  ;;  %v2599_v9 = vsub.f32 1.0, %v2598_v35  ;;  %v5764_v16 = vpop.f32.mrf.mxu0  ;;  %vm2607_vm11 = vcmp.eq.f32.partialorder %v2606_v47, 8.507059e+37 }
 0x611   :  { %3142 = vadd.xlane.f32.xlu2 %v3141_v53  ;;  %2492 = vmax.xlane.f32.xlu0 %v2491_v32  ;;  %v2609_v32 = vor.u32 1.1754944e-38, %v2608_v1  ;;  %v5772_v26 = vadd.f32 %v5658_v46, %v5661_v0  ;;  %vm2618_vm13 = vweird.f32 %v5742_v27 }
 0x612   :  { %v2340_v50 = vpop.f32.mrf.mxu3  ;;  %v2600_v36 = vmul.f32 %v4294_v38, %v2599_v9  ;;  %v3079_v23 = vmul.f32 %v2595_v57, %v2595_v57  ;;  %v3080_v21 = vmul.f32 %v2596_v54, %v2596_v54  ;;  %v2254_v11 = vpop.f32.mrf.mxu2 }
 0x613   :  { %v5757_v15 = vadd.f32 %v2340_v50, %v2251_v8  ;;  %7598 = vst [vmem:[#allocation48_spill] sm:$0xff] %v5772_v26  ;;  %v2413_v46 = vand.u32 2147483647, %v5772_v26 }
 0x614   :  { %v2451_v14 = vpop.xlane.xlu2 %2450  ;;  %v2601_v24 = vadd.f32 %v4294_v38, %v2600_v36  ;;  %v3144_v57 = vadd.f32 %v3080_v21, %v3079_v23  ;;  %v2622_v23 = vand.u32 2147483647, %v5742_v27 }
 0x615   :  { %7597 = vst [vmem:[#allocation47_spill] sm:$0xff] %v5757_v15  ;;  %v4296_v35 = vpop.eup %4295  ;;  %v5761_v53 = vmax.f32 %v2451_v14, 1e-30  ;;  %v2412_v9 = vand.u32 2147483647, %v5757_v15 }
 0x616   :  { %v2605_v8 = vsel %vm2604_vm10, %v4294_v38, %v2601_v24  ;;  %v2614_v54 = vmul.f32 %v4296_v35, %v5742_v27  ;;  %v2624_v38 = vand.u32 2147483648, %v5742_v27  ;;  %vm2619_vm12 = vweird.f32 %v4296_v35 }
 0x617   :  { %4297 = vrcp.f32 %v5761_v53  ;;  %v2494_v50 = vmax.f32 %v2411_v59, %v2412_v9  ;;  %v2610_v36 = vsel %vm2607_vm11, %v2609_v32, %v2605_v8  ;;  %vm2620_vm14 = vmor %vm2618_vm13, %vm2619_vm12  ;;  %vm2623_vm15 = vcmp.eq.f32.partialorder %v2622_v23, 8.507059e+37 }
 0x618   :  { %v2611_v43 = vmul.f32 %v2610_v36, %v5483_v44  ;;  %v2612_v14 = vmul.f32 %v2610_v36, %v5548_v20  ;;  %v2615_v55 = vsub.f32 1.0, %v2614_v54  ;;  %v2625_v54 = vor.u32 1.1754944e-38, %v2624_v38 }
 0x619   :  { %3145 = vadd.xlane.f32.xlu0 %v3144_v57  ;;  %2495 = vmax.xlane.f32.xlu1 %v2494_v50  ;;  %v5781_v57 = vpop.f32.mrf.mxu1  ;;  %v5790_v44 = vadd.f32 %v5672_v39, %v5676_v3  ;;  %vm2634_vm1 = vweird.f32 %v5761_v53 }
 0x61a   :  { %v2343_v1 = vpop.f32.mrf.mxu3  ;;  %v2616_v47 = vmul.f32 %v4296_v35, %v2615_v55  ;;  %v3081_v59 = vmul.f32 %v2611_v43, %v2611_v43  ;;  %v3082_v24 = vmul.f32 %v2612_v14, %v2612_v14  ;;  %v2256_v9 = vpop.f32.mrf.mxu2 }
 0x61b   :  { %v5776_v21 = vadd.f32 %v2343_v1, %v2254_v11  ;;  %v5784_v14 = vpop.f32.mrf.mxu0  ;;  %v2415_v39 = vand.u32 2147483647, %v5790_v44 }
 0x61c   :  { %v2617_v32 = vadd.f32 %v4296_v35, %v2616_v47  ;;  %v3147_v50 = vadd.f32 %v3082_v24, %v3081_v59  ;;  %v2638_v59 = vand.u32 2147483647, %v5761_v53 }
 0x61d   :  { %7599 = vst [vmem:[#allocation49_spill] sm:$0xff] %v5776_v21  ;;  %v4298_v8 = vpop.eup %4297  ;;  %v2414_v0 = vand.u32 2147483647, %v5776_v21 }
 0x61e   :  { %v2621_v55 = vsel %vm2620_vm14, %v4296_v35, %v2617_v32  ;;  %v2630_v11 = vmul.f32 %v4298_v8, %v5761_v53  ;;  %v2640_v35 = vand.u32 2147483648, %v5761_v53  ;;  %vm2635_vm0 = vweird.f32 %v4298_v8 }
 0x61f   :  { %v2497_v43 = vmax.f32 %v2413_v46, %v2414_v0  ;;  %v2626_v36 = vsel %vm2623_vm15, %v2625_v54, %v2621_v55  ;;  %vm2636_vm2 = vmor %vm2634_vm1, %vm2635_vm0  ;;  %vm2639_vm3 = vcmp.eq.f32.partialorder %v2638_v59, 8.507059e+37 }
 0x620   :  { %v2627_v1 = vmul.f32 %v2626_v36, %v5487_v49  ;;  %v2628_v47 = vmul.f32 %v2626_v36, %v5557_v10  ;;  %v2631_v20 = vsub.f32 1.0, %v2630_v11  ;;  %v2641_v55 = vor.u32 1.1754944e-38, %v2640_v35 }
 0x621   :  { %3148 = vadd.xlane.f32.xlu1 %v3147_v50  ;;  %2498 = vmax.xlane.f32.xlu2 %v2497_v43  ;;  %v5799_v36 = vpop.f32.mrf.mxu1 }
 0x622   :  { %v2345_v38 = vpop.f32.mrf.mxu3  ;;  %v2632_v23 = vmul.f32 %v4298_v8, %v2631_v20  ;;  %v3083_v32 = vmul.f32 %v2627_v1, %v2627_v1  ;;  %v3084_v46 = vmul.f32 %v2628_v47, %v2628_v47  ;;  %v2259_v0 = vpop.f32.mrf.mxu2  ;;  %v5805_v47 = vadd.f32 %v5686_v33, %v5692_v6 }
 0x623   :  { %v5794_v24 = vadd.f32 %v2345_v38, %v2256_v9  ;;  %v5807_v38 = vpop.f32.mrf.mxu0  ;;  %v5815_v33 = vadd.f32 %v5706_v61, %v5713_v29  ;;  %v5828_v29 = vadd.f32 %v5732_v40, %v5736_v51 }
 0x624   :  { %v2633_v54 = vadd.f32 %v4298_v8, %v2632_v23  ;;  %v3150_v20 = vadd.f32 %v3084_v46, %v3083_v32  ;;  %7601 = vst [vmem:[#allocation51_spill] sm:$0xff] %v5805_v47  ;;  %v2417_v46 = vand.u32 2147483647, %v5805_v47  ;;  %v2457_v61 = vpop.xlane.xlu0 %2456 }
 0x625   :  { %7600 = vst [vmem:[#allocation50_spill] sm:$0xff] %v5794_v24  ;;  %v2416_v3 = vand.u32 2147483647, %v5794_v24 }
 0x626   :  { %v2637_v11 = vsel %vm2636_vm2, %v4298_v8, %v2633_v54  ;;  %7603 = vst [vmem:[#allocation53_spill] sm:$0xff] %v5815_v33 }
 0x627   :  { %v2500_v50 = vmax.f32 %v2415_v39, %v2416_v3  ;;  %v2642_v43 = vsel %vm2639_vm3, %v2641_v55, %v2637_v11  ;;  %v2454_v39 = vpop.xlane.xlu2 %2453  ;;  %7606 = vst [vmem:[#allocation56_spill] sm:$0xff] %v5828_v29 }
 0x628   :  { %v2643_v9 = vmul.f32 %v2642_v43, %v5491_v37  ;;  %v2644_v1 = vmul.f32 %v2642_v43, %v5564_v2  ;;  %v5817_v6 = vmax.f32 %v2454_v39, 1e-30 }
 0x629   :  { %3151 = vadd.xlane.f32.xlu2 %v3150_v20  ;;  %2501 = vmax.xlane.f32.xlu0 %v2500_v50 }
 0x62a   :  { %v2348_v35 = vpop.f32.mrf.mxu3  ;;  %v3085_v23 = vmul.f32 %v2643_v9, %v2643_v9  ;;  %v3086_v59 = vmul.f32 %v2644_v1, %v2644_v1  ;;  %v2261_v32 = vpop.f32.mrf.mxu2  ;;  %7604 = vst [vmem:[#allocation54_spill] sm:$0xff] %v5817_v6  ;;  %4299 = vrcp.f32 %v5817_v6  ;;  %v2419_v9 = vand.u32 2147483647, %v5815_v33 }
 0x62b   :  { %v5809_v8 = vadd.f32 %v2348_v35, %v2259_v0  ;;  %v5819_v0 = vpop.f32.mrf.mxu1  ;;  %v2096_v50 = vpop.f32.mrf.mxu0  ;;  %vm2650_vm5 = vweird.f32 %v5817_v6 }
 0x62c   :  { %v3153_v3 = vadd.f32 %v3086_v59, %v3085_v23 }
 0x62d   :  { %7602 = vst [vmem:[#allocation52_spill] sm:$0xff] %v5809_v8  ;;  %v2418_v54 = vand.u32 2147483647, %v5809_v8 }
 0x62f   :  { %v2503_v55 = vmax.f32 %v2417_v46, %v2418_v54 }
 0x630   :  { %v5830_v59 = vpop.eup %4299 }
 0x631   :  { %3154 = vadd.xlane.f32.xlu0 %v3153_v3  ;;  %2504 = vmax.xlane.f32.xlu1 %v2503_v55  ;;  %v2421_v3 = vand.u32 2147483647, %v5828_v29  ;;  %v2646_v40 = vmul.f32 %v5830_v59, %v5817_v6  ;;  %vm2651_vm4 = vweird.f32 %v5830_v59 }
 0x632   :  { %v2350_v11 = vpop.f32.mrf.mxu3  ;;  %v2264_v43 = vpop.f32.mrf.mxu2  ;;  %vm2652_vm6 = vmor %vm2650_vm5, %vm2651_vm4 }
 0x633   :  { %v5821_v20 = vadd.f32 %v2350_v11, %v2261_v32  ;;  %v5832_v32 = vmax.f32 %v2457_v61, 1e-30  ;;  %v2187_v54 = vpop.f32.mrf.mxu1  ;;  %v2098_v11 = vpop.f32.mrf.mxu0  ;;  %v2647_v61 = vsub.f32 1.0, %v2646_v40 }
 0x634   :  { %v2463_v37 = vpop.xlane.xlu2 %2462 }
 0x635   :  { %7605 = vst [vmem:[#allocation55_spill] sm:$0xff] %v5821_v20  ;;  %v2420_v1 = vand.u32 2147483647, %v5821_v20  ;;  %4301 = vrcp.f32 %v5832_v32  ;;  %v5857_v20 = vmax.f32 %v2463_v37, 1e-30  ;;  %vm2666_vm9 = vweird.f32 %v5832_v32 }
 0x636   :  { %7607 = vst [vmem:[#allocation57_spill] sm:$0xff] %v5832_v32 }
 0x637   :  { %v2506_v35 = vmax.f32 %v2419_v9, %v2420_v1  ;;  %v2460_v9 = vpop.xlane.xlu1 %2459  ;;  %v5843_v1 = vadd.f32 %v5755_v18, %v5764_v16  ;;  %7612 = vst [vmem:[#allocation62_spill] sm:$0xff] %v5857_v20  ;;  %vm2698_vm15 = vweird.f32 %v5857_v20 }
 0x639   :  { %2507 = vmax.xlane.f32.xlu2 %v2506_v35  ;;  %7609 = vst [vmem:[#allocation59_spill] sm:$0xff] %v5843_v1 }
 0x63a   :  { %v2353_v23 = vpop.f32.mrf.mxu3  ;;  %v2266_v39 = vpop.f32.mrf.mxu2 }
 0x63b   :  { %v5834_v46 = vadd.f32 %v2353_v23, %v2264_v43  ;;  %v5845_v43 = vmax.f32 %v2460_v9, 1e-30  ;;  %v5849_v2 = vpop.eup %4301  ;;  %v2190_v18 = vpop.f32.mrf.mxu1  ;;  %v2648_v9 = vmul.f32 %v5830_v59, %v2647_v61 }
 0x63c   :  { %v2466_v23 = vpop.xlane.xlu0 %2465  ;;  %v2101_v40 = vpop.f32.mrf.mxu0  ;;  %vm2667_vm8 = vweird.f32 %v5849_v2 }
 0x63d   :  { %7608 = vst [vmem:[#allocation58_spill] sm:$0xff] %v5834_v46  ;;  %v2422_v55 = vand.u32 2147483647, %v5834_v46  ;;  %4303 = vrcp.f32 %v5845_v43  ;;  %v5854_v16 = vmax.f32 %v2466_v23, 1e-30  ;;  %v2649_v23 = vadd.f32 %v5830_v59, %v2648_v9  ;;  %vm5925_vm10 = vmor %vm2666_vm9, %vm2667_vm8 }
 0x63e   :  { %7610 = vst [vmem:[#allocation60_spill] sm:$0xff] %v5845_v43  ;;  %vm2682_vm13 = vweird.f32 %v5845_v43 }
 0x63f   :  { %v2509_v51 = vmax.f32 %v2421_v3, %v2422_v55  ;;  %v2423_v3 = vand.u32 2147483647, %v5843_v1  ;;  %4305 = vrcp.f32 %v5854_v16  ;;  %v2653_v8 = vsel %vm2652_vm6, %v5830_v59, %v2649_v23 }
 0x640   :  { %4307 = vrcp.f32 %v5857_v20  ;;  %vm2714_vm3 = vweird.f32 %v5854_v16 }
 0x641   :  { %2510 = vmax.xlane.f32.xlu0 %v2509_v51 }
 0x642   :  { %v2355_v35 = vpop.f32.mrf.mxu3  ;;  %v2269_v46 = vpop.f32.mrf.mxu2 }
 0x643   :  { %v5847_v29 = vadd.f32 %v2355_v35, %v2266_v39  ;;  %v2662_v39 = vmul.f32 %v5849_v2, %v5832_v32  ;;  %v5863_v35 = vadd.f32 %v5781_v57, %v5784_v14  ;;  %v5868_v61 = vpop.eup %4303  ;;  %v2654_v14 = vand.u32 2147483647, %v5817_v6 }
 0x644   :  { %vm2683_vm12 = vweird.f32 %v5868_v61 }
 0x645   :  { %7611 = vst [vmem:[#allocation61_spill] sm:$0xff] %v5847_v29  ;;  %v2424_v55 = vand.u32 2147483647, %v5847_v29  ;;  %v2469_v29 = vpop.xlane.xlu1 %2468  ;;  %v2663_v57 = vsub.f32 1.0, %v2662_v39  ;;  %v2425_v9 = vand.u32 2147483647, %v5863_v35  ;;  %v2678_v39 = vmul.f32 %v5868_v61, %v5845_v43  ;;  %v5890_v47 = vpop.eup %4305  ;;  %vm5960_vm0 = vmor %vm2682_vm13, %vm2683_vm12 }
 0x646   :  { %7613 = vst [vmem:[#allocation63_spill] sm:$0xff] %v5863_v35  ;;  %v2192_v35 = vpop.f32.mrf.mxu1  ;;  %vm2655_vm7 = vcmp.eq.f32.partialorder %v2654_v14, 8.507059e+37  ;;  %vm2715_vm1 = vweird.f32 %v5890_v47 }
 0x647   :  { %v2512_v51 = vmax.f32 %v2423_v3, %v2424_v55  ;;  %v2656_v3 = vand.u32 2147483648, %v5817_v6  ;;  %v2679_v23 = vsub.f32 1.0, %v2678_v39  ;;  %vm5984_vm4 = vmor %vm2714_vm3, %vm2715_vm1 }
 0x649   :  { %2513 = vmax.xlane.f32.xlu1 %v2512_v51  ;;  %v5876_v51 = vmax.f32 %v2469_v29, 1e-30  ;;  %v2657_v29 = vor.u32 1.1754944e-38, %v2656_v3  ;;  %v5900_v3 = vadd.f32 %v2190_v18, %v2101_v40 }
 0x64a   :  { %v2358_v1 = vpop.f32.mrf.mxu3  ;;  %v2271_v55 = vpop.f32.mrf.mxu2 }
 0x64b   :  { %v5870_v37 = vadd.f32 %v2358_v1, %v2269_v46  ;;  %7615 = vst [vmem:[#allocation65_spill] sm:$0xff] %v5876_v51  ;;  %v5882_v46 = vadd.f32 %v5799_v36, %v5807_v38  ;;  %v5885_v1 = vadd.f32 %v5819_v0, %v2096_v50  ;;  %4309 = vrcp.f32 %v5876_v51  ;;  %v5894_v38 = vpop.eup %4307  ;;  %v2103_v50 = vpop.f32.mrf.mxu0 }
 0x64c   :  { %v2658_v36 = vsel %vm2655_vm7, %v2657_v29, %v2653_v8  ;;  %v5896_v0 = vadd.f32 %v2187_v54, %v2098_v11  ;;  %v2710_v8 = vmul.f32 %v5890_v47, %v5854_v16  ;;  %v2694_v40 = vmul.f32 %v5894_v38, %v5857_v20  ;;  %v2472_v49 = vpop.xlane.xlu2 %2471 }
 0x64d   :  { %7614 = vst [vmem:[#allocation64_spill] sm:$0xff] %v5870_v37  ;;  %v2426_v33 = vand.u32 2147483647, %v5870_v37  ;;  %v2664_v37 = vmul.f32 %v5849_v2, %v2663_v57  ;;  %v2427_v59 = vand.u32 2147483647, %v5882_v46  ;;  %v2659_v11 = vmul.f32 %v2658_v36, %v5495_v62 }
 0x64e   :  { %7616 = vst [vmem:[#allocation66_spill] sm:$0xff] %v5882_v46  ;;  %v2660_v29 = vmul.f32 %v2658_v36, %v5571_v45  ;;  %v2711_v45 = vsub.f32 1.0, %v2710_v8  ;;  %v2686_v62 = vand.u32 2147483647, %v5845_v43  ;;  %v2720_v46 = vand.u32 2147483648, %v5854_v16 }
 0x64f   :  { %7617 = vst [vmem:[#allocation67_spill] sm:$0xff] %v5885_v1  ;;  %v2515_v6 = vmax.f32 %v2425_v9, %v2426_v33  ;;  %v2429_v33 = vand.u32 2147483647, %v5885_v1  ;;  %v5902_v9 = vadd.f32 %v2192_v35, %v2103_v50  ;;  %v2665_v54 = vadd.f32 %v5849_v2, %v2664_v37 }
 0x650   :  { %7618 = vst [vmem:[#allocation68_spill] sm:$0xff] %v5896_v0  ;;  %v2670_v37 = vand.u32 2147483647, %v5832_v32  ;;  %v3087_v1 = vmul.f32 %v2659_v11, %v2659_v11  ;;  %vm5944_vm14 = vcmp.eq.f32.partialorder %v2686_v62, 8.507059e+37  ;;  %vm2699_vm2 = vweird.f32 %v5894_v38 }
 0x651   :  { %2516 = vmax.xlane.f32.xlu2 %v2515_v6  ;;  %v5922_v50 = vpop.eup %4309  ;;  %v2669_v35 = vsel %vm5925_vm10, %v5849_v2, %v2665_v54  ;;  %vm6001_vm6 = vmor %vm2698_vm15, %vm2699_vm2  ;;  %vm2730_vm9 = vweird.f32 %v5876_v51 }
 0x652   :  { %v2360_v10 = vpop.f32.mrf.mxu3  ;;  %v2274_v14 = vpop.f32.mrf.mxu2  ;;  %vm2671_vm11 = vcmp.eq.f32.partialorder %v2670_v37, 8.507059e+37  ;;  %v2726_v2 = vmul.f32 %v5922_v50, %v5876_v51  ;;  %vm2731_vm7 = vweird.f32 %v5922_v50 }
 0x653   :  { %v5904_v57 = vadd.f32 %v2360_v10, %v2271_v55  ;;  %v2672_v10 = vand.u32 2147483648, %v5832_v32  ;;  %v2680_v55 = vmul.f32 %v5868_v61, %v2679_v23  ;;  %v2688_v32 = vand.u32 2147483648, %v5845_v43  ;;  %vm6025_vm10 = vmor %vm2730_vm9, %vm2731_vm7 }
 0x654   :  { %v2475_v6 = vpop.xlane.xlu0 %2474  ;;  %v3088_v23 = vmul.f32 %v2660_v29, %v2660_v29  ;;  %v2712_v29 = vmul.f32 %v5890_v47, %v2711_v45 }
 0x655   :  { %7619 = vst [vmem:[#allocation69_spill] sm:$0xff] %v5904_v57  ;;  %v5912_v39 = vmax.f32 %v2475_v6, 1e-30  ;;  %v2428_v18 = vand.u32 2147483647, %v5904_v57  ;;  %v2673_v57 = vor.u32 1.1754944e-38, %v2672_v10  ;;  %v2681_v8 = vadd.f32 %v5868_v61, %v2680_v55 }
 0x656   :  { %v2689_v37 = vor.u32 1.1754944e-38, %v2688_v32  ;;  %v5953_v6 = vmax.f32 %v2472_v49, 1e-30 }
 0x657   :  { %4311 = vrcp.f32 %v5912_v39  ;;  %v2518_v36 = vmax.f32 %v2427_v59, %v2428_v18  ;;  %v2695_v18 = vsub.f32 1.0, %v2694_v40  ;;  %v2674_v11 = vsel %vm2671_vm11, %v2673_v57, %v2669_v35 }
 0x658   :  { %v2675_v57 = vmul.f32 %v2674_v11, %v5499_v60  ;;  %v2685_v49 = vsel %vm5960_vm0, %v5868_v61, %v2681_v8  ;;  %v2727_v35 = vsub.f32 1.0, %v2726_v2  ;;  %v2704_v59 = vand.u32 2147483648, %v5857_v20 }
 0x659   :  { %2519 = vmax.xlane.f32.xlu0 %v2518_v36  ;;  %v5948_v36 = vadd.f32 %v3088_v23, %v3087_v1  ;;  %v2696_v32 = vmul.f32 %v5894_v38, %v2695_v18  ;;  %v2718_v18 = vand.u32 2147483647, %v5854_v16  ;;  %v2690_v61 = vsel %vm5944_vm14, %v2689_v37, %v2685_v49 }
 0x65a   :  { %v2363_v24 = vpop.f32.mrf.mxu3  ;;  %v2276_v1 = vpop.f32.mrf.mxu2  ;;  %v2676_v2 = vmul.f32 %v2674_v11, %v5580_v19  ;;  %v2728_v62 = vmul.f32 %v5922_v50, %v2727_v35  ;;  %v2702_v60 = vand.u32 2147483647, %v5857_v20  ;;  %v3089_v43 = vmul.f32 %v2675_v57, %v2675_v57 }
 0x65b   :  { %v5940_v54 = vadd.f32 %v2363_v24, %v2274_v14  ;;  %v2705_v37 = vor.u32 1.1754944e-38, %v2704_v59  ;;  %vm2719_vm5 = vcmp.eq.f32.partialorder %v2718_v18, 8.507059e+37  ;;  %v2721_v11 = vor.u32 1.1754944e-38, %v2720_v46 }
 0x65c   :  { %v2478_v10 = vpop.xlane.xlu1 %2477  ;;  %v2691_v49 = vmul.f32 %v2690_v61, %v5503_v52  ;;  %v2692_v19 = vmul.f32 %v2690_v61, %v5589_v30  ;;  %v2734_v59 = vand.u32 2147483647, %v5876_v51  ;;  %v2729_v18 = vadd.f32 %v5922_v50, %v2728_v62 }
 0x65d   :  { %7622 = vst [vmem:[#allocation70_spill] sm:$0xff] %v5940_v54  ;;  %v5951_v55 = vpop.eup %4311  ;;  %v5955_v24 = vmax.f32 %v2478_v10, 1e-30  ;;  %v2430_v45 = vand.u32 2147483647, %v5940_v54  ;;  %v2713_v10 = vadd.f32 %v5890_v47, %v2712_v29  ;;  %v2736_v20 = vand.u32 2147483648, %v5876_v51 }
 0x65e   :  { %v2758_v14 = vmul.f32 %v5951_v55, %v5912_v39  ;;  %vm2703_vm8 = vcmp.eq.f32.partialorder %v2702_v60, 8.507059e+37  ;;  %vm6029_vm11 = vcmp.eq.f32.partialorder %v2734_v59, 8.507059e+37  ;;  %vm2763_vm12 = vweird.f32 %v5951_v55 }
 0x65f   :  { %v2521_v23 = vmax.f32 %v2429_v33, %v2430_v45  ;;  %4313 = vrcp.f32 %v5955_v24  ;;  %v2697_v33 = vadd.f32 %v5894_v38, %v2696_v32  ;;  %v2717_v40 = vsel %vm5984_vm4, %v5890_v47, %v2713_v10 }
 0x660   :  { %4315 = vrcp.f32 %v5953_v6  ;;  %v2759_v45 = vsub.f32 1.0, %v2758_v14  ;;  %v2722_v35 = vsel %vm2719_vm5, %v2721_v11, %v2717_v40  ;;  %vm2762_vm13 = vweird.f32 %v5912_v39 }
 0x661   :  { %2522 = vmax.xlane.f32.xlu1 %v2521_v23  ;;  %v2701_v46 = vsel %vm6001_vm6, %v5894_v38, %v2697_v33  ;;  %v3091_v38 = vmul.f32 %v2691_v49, %v2691_v49  ;;  %v3092_v33 = vmul.f32 %v2692_v19, %v2692_v19  ;;  %v2724_v59 = vmul.f32 %v2722_v35, %v5613_v58  ;;  %vm6053_vm14 = vmor %vm2762_vm13, %vm2763_vm12 }
 0x662   :  { %v2365_v8 = vpop.f32.mrf.mxu3  ;;  %v2760_v10 = vmul.f32 %v5951_v55, %v2759_v45  ;;  %v2706_v40 = vsel %vm2703_vm8, %v2705_v37, %v2701_v46  ;;  %v2723_v45 = vmul.f32 %v2722_v35, %v5608_v63  ;;  %v2733_v37 = vsel %vm6025_vm10, %v5922_v50, %v2729_v18 }
 0x663   :  { %v5990_v23 = vadd.f32 %v2365_v8, %v2276_v1  ;;  %v7632_v8 = vand.u32 2147483647, %v5896_v0  ;;  %v2279_v1 = vpop.f32.mrf.mxu2  ;;  %v2768_v46 = vand.u32 2147483648, %v5912_v39  ;;  %v2707_v30 = vmul.f32 %v2706_v40, %v5596_v34 }
 0x664   :  { %v2481_v32 = vpop.xlane.xlu2 %2480  ;;  %v2761_v11 = vadd.f32 %v5951_v55, %v2760_v10  ;;  %v2766_v10 = vand.u32 2147483647, %v5912_v39  ;;  %v2708_v62 = vmul.f32 %v2706_v40, %v5602_v31  ;;  %v3095_v52 = vmul.f32 %v2723_v45, %v2723_v45 }
 0x665   :  { %7629 = vst [vmem:[#allocation71_spill] sm:$0xff] %v5990_v23  ;;  %v6005_v57 = vmax.f32 %v2481_v32, 1e-30  ;;  %v2432_v47 = vand.u32 2147483647, %v5990_v23  ;;  %v6012_v14 = vpop.eup %4313  ;;  %v3090_v32 = vmul.f32 %v2676_v2, %v2676_v2  ;;  %v2769_v63 = vor.u32 1.1754944e-38, %v2768_v46 }
 0x666   :  { %v6017_v61 = vpop.eup %4315  ;;  %v2774_v60 = vmul.f32 %v6012_v14, %v5955_v24  ;;  %v2765_v34 = vsel %vm6053_vm14, %v5951_v55, %v2761_v11  ;;  %v3162_v51 = vadd.f32 %v3092_v33, %v3091_v38  ;;  %vm2767_vm15 = vcmp.eq.f32.partialorder %v2766_v10, 8.507059e+37 }
 0x667   :  { %v2524_v29 = vmax.f32 %v7632_v8, %v2432_v47  ;;  %4317 = vrcp.f32 %v6005_v57  ;;  %v2742_v49 = vmul.f32 %v6017_v61, %v5953_v6  ;;  %v2737_v8 = vor.u32 1.1754944e-38, %v2736_v20 }
 0x668   :  { %v2775_v35 = vsub.f32 1.0, %v2774_v60  ;;  %v6071_v45 = vmul.f32 %v2708_v62, %v2708_v62  ;;  %vm2746_vm0 = vweird.f32 %v5953_v6  ;;  %v2750_v33 = vand.u32 2147483647, %v5953_v6 }
 0x669   :  { %2525 = vmax.xlane.f32.xlu2 %v2524_v29  ;;  %v2738_v20 = vsel %vm6029_vm11, %v2737_v8, %v2733_v37  ;;  %v2743_v58 = vsub.f32 1.0, %v2742_v49  ;;  %vm2747_vm1 = vweird.f32 %v6017_v61  ;;  %vm2779_vm2 = vweird.f32 %v6012_v14 }
 0x66a   :  { %v2368_v19 = vpop.f32.mrf.mxu3  ;;  %v2739_v2 = vmul.f32 %v2738_v20, %v5622_v56  ;;  %v2776_v55 = vmul.f32 %v6012_v14, %v2775_v35  ;;  %v2740_v37 = vmul.f32 %v2738_v20, %v5624_v25  ;;  %vm2778_vm3 = vweird.f32 %v5955_v24  ;;  %vm6117_vm7 = vmor %vm2746_vm0, %vm2747_vm1 }
 0x66b   :  { %v6042_v47 = vadd.f32 %v2368_v19, %v2279_v1  ;;  %v3159_v19 = vadd.f32 %v3090_v32, %v3089_v43  ;;  %v6068_v43 = vmul.f32 %v2707_v30, %v2707_v30  ;;  %v2770_v32 = vsel %vm2767_vm15, %v2769_v63, %v2765_v34  ;;  %v2281_v60 = vpop.f32.mrf.mxu2  ;;  %vm6100_vm4 = vmor %vm2778_vm3, %vm2779_vm2 }
 0x66c   :  { %v2484_v29 = vpop.xlane.xlu0 %2483  ;;  %v2744_v38 = vmul.f32 %v6017_v61, %v2743_v58  ;;  %v3097_v46 = vmul.f32 %v2739_v2, %v2739_v2  ;;  %v2784_v58 = vand.u32 2147483648, %v5955_v24  ;;  %v2782_v2 = vand.u32 2147483647, %v5955_v24 }
 0x66d   :  { %7637 = vst [vmem:[#allocation72_spill] sm:$0xff] %v6042_v47  ;;  %v6050_v50 = vmax.f32 %v2484_v29, 1e-30  ;;  %v2434_v18 = vand.u32 2147483647, %v6042_v47  ;;  %v6062_v40 = vpop.eup %4317  ;;  %v3096_v47 = vmul.f32 %v2724_v59, %v2724_v59  ;;  %v2771_v59 = vmul.f32 %v2770_v32, %v5646_v41 }
 0x66e   :  { %v7640_v29 = vand.u32 2147483647, %v5900_v3  ;;  %v2790_v30 = vmul.f32 %v6062_v40, %v6005_v57  ;;  %v2745_v20 = vadd.f32 %v6017_v61, %v2744_v38  ;;  %vm6104_vm5 = vcmp.eq.f32.partialorder %v2750_v33, 8.507059e+37 }
 0x66f   :  { %4319 = vrcp.f32 %v6050_v50  ;;  %v3168_v34 = vadd.f32 %v3096_v47, %v3095_v52  ;;  %v2777_v52 = vadd.f32 %v6012_v14, %v2776_v55  ;;  %v3098_v47 = vmul.f32 %v2740_v37, %v2740_v37 }
 0x670   :  { %v2527_v31 = vmax.f32 %v7640_v29, %v2434_v18  ;;  %v2772_v18 = vmul.f32 %v2770_v32, %v5650_v13  ;;  %v2791_v35 = vsub.f32 1.0, %v2790_v30  ;;  %v2785_v55 = vor.u32 1.1754944e-38, %v2784_v58 }
 0x671   :  { %3160 = vadd.xlane.f32.xlu2 %v3159_v19  ;;  %v7641_v19 = vand.u32 2147483647, %v5902_v9  ;;  %v3101_v38 = vmul.f32 %v2771_v59, %v2771_v59  ;;  %v2814_v58 = vand.u32 2147483647, %v6050_v50  ;;  %vm2783_vm8 = vcmp.eq.f32.partialorder %v2782_v2, 8.507059e+37 }
 0x672   :  { %2528 = vmax.xlane.f32.xlu0 %v2527_v31  ;;  %v2370_v11 = vpop.f32.mrf.mxu3  ;;  %v2752_v31 = vand.u32 2147483648, %v5953_v6  ;;  %v3102_v30 = vmul.f32 %v2772_v18, %v2772_v18  ;;  %vm2794_vm9 = vweird.f32 %v6005_v57  ;;  %vm2810_vm10 = vweird.f32 %v6050_v50 }
 0x673   :  { %v6079_v49 = vadd.f32 %v2370_v11, %v2281_v60  ;;  %vm2795_vm12 = vweird.f32 %v6062_v40  ;;  %vm2815_vm13 = vcmp.eq.f32.partialorder %v2814_v58, 8.507059e+37 }
 0x674   :  { %v2487_v63 = vpop.xlane.xlu1 %2486  ;;  %v2753_v37 = vor.u32 1.1754944e-38, %v2752_v31  ;;  %vm6147_vm14 = vmor %vm2794_vm9, %vm2795_vm12 }
 0x675   :  { %v4320_v8 = vpop.eup %4319  ;;  %v6086_v10 = vmax.f32 %v2487_v63, 1e-30  ;;  %v2436_v62 = vand.u32 2147483647, %v6079_v49  ;;  %v2816_v63 = vand.u32 2147483648, %v6050_v50 }
 0x676   :  { %v2806_v1 = vmul.f32 %v4320_v8, %v6050_v50  ;;  %vm2811_vm6 = vweird.f32 %v4320_v8 }
 0x677   :  { %4321 = vrcp.f32 %v6086_v10  ;;  %v2530_v29 = vmax.f32 %v7641_v19, %v2436_v62  ;;  %v2781_v62 = vsel %vm6100_vm4, %v6012_v14, %v2777_v52  ;;  %v2749_v14 = vsel %vm6117_vm7, %v6017_v61, %v2745_v20  ;;  %vm2812_vm11 = vmor %vm2810_vm10, %vm2811_vm6 }
 0x678   :  { %v2807_v60 = vsub.f32 1.0, %v2806_v1  ;;  %v2786_v18 = vsel %vm2783_vm8, %v2785_v55, %v2781_v62  ;;  %v2800_v52 = vand.u32 2147483648, %v6005_v57  ;;  %v2754_v62 = vsel %vm6104_vm5, %v2753_v37, %v2749_v14 }
 0x679   :  { %3169 = vadd.xlane.f32.xlu2 %v3168_v34  ;;  %2531 = vmax.xlane.f32.xlu1 %v2530_v29  ;;  %v3171_v34 = vadd.f32 %v3098_v47, %v3097_v46  ;;  %v2817_v46 = vor.u32 1.1754944e-38, %v2816_v63  ;;  %v2787_v2 = vmul.f32 %v2786_v18, %v5656_v5  ;;  %v2788_v32 = vmul.f32 %v2786_v18, %v5663_v28 }
 0x67a   :  { %3163 = vadd.xlane.f32.xlu0 %v3162_v51  ;;  %v2808_v1 = vmul.f32 %v4320_v8, %v2807_v60  ;;  %v2792_v51 = vmul.f32 %v6062_v40, %v2791_v35  ;;  %v3177_v60 = vadd.f32 %v3102_v30, %v3101_v38  ;;  %v2798_v63 = vand.u32 2147483647, %v6005_v57 }
 0x67b   :  { %v2801_v58 = vor.u32 1.1754944e-38, %v2800_v52  ;;  %v3103_v14 = vmul.f32 %v2787_v2, %v2787_v2  ;;  %v3165_v52 = vadd.f32 %v6071_v45, %v6068_v43  ;;  %vm2826_vm0 = vweird.f32 %v6086_v10 }
 0x67c   :  { %v2490_v31 = vpop.xlane.xlu2 %2489  ;;  %v2809_v59 = vadd.f32 %v4320_v8, %v2808_v1  ;;  %v2793_v20 = vadd.f32 %v6062_v40, %v2792_v51  ;;  %v2830_v51 = vand.u32 2147483647, %v6086_v10  ;;  %vm2799_vm1 = vcmp.eq.f32.partialorder %v2798_v63, 8.507059e+37  ;;  %v7651_v63 = vld [vmem:[#allocation36_spill] sm:$0xff] }
 0x67d   :  { %v4322_v19 = vpop.eup %4321  ;;  %v6128_v29 = vmax.f32 %v2490_v31, 1e-30  ;;  %v3104_v31 = vmul.f32 %v2788_v32, %v2788_v32  ;;  %v2756_v32 = vmul.f32 %v2754_v62, %v5637_v17 }
 0x67e   :  { %v2813_v47 = vsel %vm2812_vm11, %v4320_v8, %v2809_v59  ;;  %v2822_v61 = vmul.f32 %v4322_v19, %v6086_v10  ;;  %v2832_v8 = vand.u32 2147483648, %v6086_v10  ;;  %vm2827_vm15 = vweird.f32 %v4322_v19 }
 0x67f   :  { %4323 = vrcp.f32 %v6128_v29  ;;  %v2818_v35 = vsel %vm2815_vm13, %v2817_v46, %v2813_v47  ;;  %v2797_v11 = vsel %vm6147_vm14, %v6062_v40, %v2793_v20  ;;  %vm2828_vm2 = vmor %vm2826_vm0, %vm2827_vm15  ;;  %v2755_v46 = vmul.f32 %v2754_v62, %v5634_v7 }
 0x680   :  { %v2819_v55 = vmul.f32 %v2818_v35, %v5682_v22  ;;  %v2820_v38 = vmul.f32 %v2818_v35, %v5684_v42  ;;  %v2823_v30 = vsub.f32 1.0, %v2822_v61  ;;  %v2833_v40 = vor.u32 1.1754944e-38, %v2832_v8 }
 0x681   :  { %3178 = vadd.xlane.f32.xlu2 %v3177_v60  ;;  %3157 = vadd.xlane.f32.xlu1 %v5948_v36  ;;  %v2802_v47 = vsel %vm2799_vm1, %v2801_v58, %v2797_v11  ;;  %vm2831_vm3 = vcmp.eq.f32.partialorder %v2830_v51, 8.507059e+37  ;;  %v3180_v35 = vadd.f32 %v3104_v31, %v3103_v14  ;;  %v3099_v31 = vmul.f32 %v2755_v46, %v2755_v46 }
 0x682   :  { %3172 = vadd.xlane.f32.xlu0 %v3171_v34  ;;  %v2824_v33 = vmul.f32 %v4322_v19, %v2823_v30  ;;  %v3107_v37 = vmul.f32 %v2819_v55, %v2819_v55  ;;  %v3108_v34 = vmul.f32 %v2820_v38, %v2820_v38  ;;  %v7650_v38 = vld [vmem:[#allocation39_spill] sm:$0xff]  ;;  %v2803_v8 = vmul.f32 %v2802_v47, %v7651_v63  ;;  %v7661_v63 = vld [vmem:[#allocation45_spill] sm:$0xff] }
 0x683   :  { %vm2842_vm5 = vweird.f32 %v6128_v29 }
 0x684   :  { %v6156_v59 = vpop.xlane.xlu2 %3142  ;;  %v2493_v18 = vpop.xlane.xlu0 %2492  ;;  %v2825_v60 = vadd.f32 %v4322_v19, %v2824_v33  ;;  %v3186_v45 = vadd.f32 %v3108_v34, %v3107_v37 }
 0x685   :  { %v6161_v36 = vpop.eup %4323  ;;  %4325 = vrsqrt.f32 %v6156_v59  ;;  %v6166_v61 = vmax.f32 %v2493_v18, 1e-30  ;;  %v3100_v18 = vmul.f32 %v2756_v32, %v2756_v32  ;;  %vm3244_vm8 = vcmp.eq.f32.partialorder %v6156_v59, inf }
 0x686   :  { %v2829_v20 = vsel %vm2828_vm2, %v4322_v19, %v2825_v60  ;;  %v2838_v43 = vmul.f32 %v6161_v36, %v6128_v29  ;;  %v7652_v19 = vld [vmem:[#allocation37_spill] sm:$0xff]  ;;  %v3105_v60 = vmul.f32 %v2803_v8, %v2803_v8  ;;  %vm2843_vm4 = vweird.f32 %v6161_v36 }
 0x687   :  { %v2834_v2 = vsel %vm2831_vm3, %v2833_v40, %v2829_v20  ;;  %4327 = vrcp.f32 %v6166_v61  ;;  %v2804_v1 = vmul.f32 %v2802_v47, %v7652_v19  ;;  %vm6190_vm6 = vmor %vm2842_vm5, %vm2843_vm4  ;;  %vm3246_vm9 = vcmp.eq.f32.partialorder %v6156_v59, 0.0 }
 0x688   :  { %v2835_v55 = vmul.f32 %v2834_v2, %v5697_v4  ;;  %v2836_v30 = vmul.f32 %v2834_v2, %v7650_v38  ;;  %v2839_v58 = vsub.f32 1.0, %v2838_v43  ;;  %vm2858_vm11 = vweird.f32 %v6166_v61 }
 0x689   :  { %3187 = vadd.xlane.f32.xlu2 %v3186_v45  ;;  %3166 = vadd.xlane.f32.xlu1 %v3165_v52  ;;  %v3106_v40 = vmul.f32 %v2804_v1, %v2804_v1  ;;  %v2846_v52 = vand.u32 2147483647, %v6128_v29  ;;  %v2862_v1 = vand.u32 2147483647, %v6166_v61 }
 0x68a   :  { %3181 = vadd.xlane.f32.xlu0 %v3180_v35  ;;  %v3109_v51 = vmul.f32 %v2835_v55, %v2835_v55  ;;  %v3110_v11 = vmul.f32 %v2836_v30, %v2836_v30  ;;  %v2840_v37 = vmul.f32 %v6161_v36, %v2839_v58  ;;  %v2848_v35 = vand.u32 2147483648, %v6128_v29  ;;  %v7658_v30 = vld [vmem:[#allocation41_spill] sm:$0xff] }
 0x68b   :  { %v4326_v33 = vpop.eup %4325  ;;  %v3174_v55 = vadd.f32 %v3100_v18, %v3099_v31  ;;  %vm2847_vm7 = vcmp.eq.f32.partialorder %v2846_v52, 8.507059e+37  ;;  %v2864_v31 = vand.u32 2147483648, %v6166_v61  ;;  %vm6207_vm12 = vcmp.eq.f32.partialorder %v2862_v1, 8.507059e+37 }
 0x68c   :  { %v3238_v62 = vmul.f32 %v4326_v33, %v6156_v59  ;;  %v6178_v34 = vpop.xlane.xlu0 %3145  ;;  %v2496_v14 = vpop.xlane.xlu1 %2495  ;;  %v2841_v45 = vadd.f32 %v6161_v36, %v2840_v37  ;;  %v3189_v2 = vadd.f32 %v3110_v11, %v3109_v51  ;;  %v3183_v11 = vadd.f32 %v3106_v40, %v3105_v60 }
 0x68d   :  { %4329 = vrsqrt.f32 %v6178_v34  ;;  %v4328_v47 = vpop.eup %4327  ;;  %v6183_v43 = vmax.f32 %v2496_v14, 1e-30  ;;  %v2849_v37 = vor.u32 1.1754944e-38, %v2848_v35  ;;  %v3247_v60 = vand.u32 2147483648, %v6156_v59 }
 0x68e   :  { %v3239_v20 = vmul.f32 %v4326_v33, %v3238_v62  ;;  %v2854_v46 = vmul.f32 %v4328_v47, %v6166_v61  ;;  %v2845_v58 = vsel %vm6190_vm6, %v6161_v36, %v2841_v45  ;;  %vm2859_vm10 = vweird.f32 %v4328_v47 }
 0x68f   :  { %7653 = vst [vmem:[#allocation39_spill] sm:$0xff] %v6183_v43  ;;  %4331 = vrcp.f32 %v6183_v43  ;;  %v2850_v36 = vsel %vm2847_vm7, %v2849_v37, %v2845_v58  ;;  %vm2860_vm13 = vmor %vm2858_vm11, %vm2859_vm10  ;;  %v7659_v58 = vld [vmem:[#allocation42_spill] sm:$0xff]  ;;  %vm3256_vm14 = vcmp.eq.f32.partialorder %v6178_v34, inf  ;;  %vm3258_vm15 = vcmp.eq.f32.partialorder %v6178_v34, 0.0 }
 0x690   :  { %v3240_v32 = vmul.f32 0.5, %v3239_v20  ;;  %v2855_v8 = vsub.f32 1.0, %v2854_v46  ;;  %vm2874_vm0 = vweird.f32 %v6183_v43 }
 0x691   :  { %3175 = vadd.xlane.f32.xlu1 %v3174_v55  ;;  %v2865_v55 = vor.u32 1.1754944e-38, %v2864_v31 }
 0x692   :  { %3190 = vadd.xlane.f32.xlu0 %v3189_v2  ;;  %v3241_v51 = vsub.f32 1.5, %v3240_v32  ;;  %v2856_v14 = vmul.f32 %v4328_v47, %v2855_v8  ;;  %v2851_v8 = vmul.f32 %v2850_v36, %v7658_v30 }
 0x693   :  { %v4330_v62 = vpop.eup %4329 }
 0x694   :  { %v3242_v18 = vmul.f32 %v4326_v33, %v3241_v51  ;;  %v3250_v20 = vmul.f32 %v4330_v62, %v6178_v34  ;;  %v6202_v2 = vpop.xlane.xlu1 %3148  ;;  %v2499_v46 = vpop.xlane.xlu2 %2498  ;;  %v2857_v32 = vadd.f32 %v4328_v47, %v2856_v14  ;;  %v2852_v51 = vmul.f32 %v2850_v36, %v7659_v58 }
 0x695   :  { %4333 = vrsqrt.f32 %v6202_v2  ;;  %v6211_v52 = vpop.eup %4331  ;;  %v6214_v35 = vmax.f32 %v2499_v46, 1e-30  ;;  %v7660_v46 = vld [vmem:[#allocation38_spill] sm:$0xff]  ;;  %vm3268_vm3 = vcmp.eq.f32.partialorder %v6202_v2, inf  ;;  %vm3270_vm5 = vcmp.eq.f32.partialorder %v6202_v2, 0.0 }
 0x696   :  { %v3243_v33 = vmul.f32 %v3242_v18, %v6156_v59  ;;  %v3251_v45 = vmul.f32 %v4330_v62, %v3250_v20  ;;  %v2870_v1 = vmul.f32 %v6211_v52, %v6183_v43  ;;  %v2861_v18 = vsel %vm2860_vm13, %v4328_v47, %v2857_v32 }
 0x697   :  { %4335 = vrcp.f32 %v6214_v35  ;;  %v2866_v31 = vsel %vm6207_vm12, %v2865_v55, %v2861_v18  ;;  %v3111_v32 = vmul.f32 %v2851_v8, %v2851_v8  ;;  %v3259_v18 = vand.u32 2147483648, %v6178_v34 }
 0x698   :  { %v3245_v37 = vsel %vm3244_vm8, %v6156_v59, %v3243_v33  ;;  %v3252_v19 = vmul.f32 0.5, %v3251_v45  ;;  %v2871_v20 = vsub.f32 1.0, %v2870_v1  ;;  %v2867_v30 = vmul.f32 %v2866_v31, %v5728_v48 }
 0x699   :  { %v3248_v14 = vsel %vm3246_vm9, %v3247_v60, %v3245_v37  ;;  %3184 = vadd.xlane.f32.xlu1 %v3183_v11  ;;  %v2878_v33 = vand.u32 2147483647, %v6183_v43  ;;  %v2868_v47 = vmul.f32 %v2866_v31, %v7661_v63  ;;  %v3112_v59 = vmul.f32 %v2852_v51, %v2852_v51 }
 0x69a   :  { %v3621_v36 = vmul.f32 %v3248_v14, %v7660_v46  ;;  %v3253_v58 = vsub.f32 1.5, %v3252_v19  ;;  %v2880_v60 = vand.u32 2147483648, %v6183_v43  ;;  %v2872_v11 = vmul.f32 %v6211_v52, %v2871_v20 }
 0x69b   :  { %v4334_v45 = vpop.eup %4333  ;;  %v3113_v8 = vmul.f32 %v2867_v30, %v2867_v30  ;;  %vm2875_vm1 = vweird.f32 %v6211_v52  ;;  %vm6248_vm2 = vcmp.eq.f32.partialorder %v2878_v33, 8.507059e+37  ;;  %v3114_v31 = vmul.f32 %v2868_v47, %v2868_v47 }
 0x69c   :  { %v6234_v37 = vmax.f32 %v3621_v36, 1e-12  ;;  %v3254_v40 = vmul.f32 %v4330_v62, %v3253_v58  ;;  %v3262_v55 = vmul.f32 %v4334_v45, %v6202_v2  ;;  %v6237_v1 = vpop.xlane.xlu2 %3151  ;;  %v2502_v19 = vpop.xlane.xlu0 %2501  ;;  %v2881_v20 = vor.u32 1.1754944e-38, %v2880_v60  ;;  %vm2876_vm4 = vmor %vm2874_vm0, %vm2875_vm1 }
 0x69d   :  { %4337 = vrsqrt.f32 %v6237_v1  ;;  %v6243_v51 = vpop.eup %4335  ;;  %v3271_v46 = vand.u32 2147483648, %v6202_v2  ;;  %v3192_v30 = vadd.f32 %v3112_v59, %v3111_v32  ;;  %v2873_v36 = vadd.f32 %v6211_v52, %v2872_v11  ;;  %v7664_v11 = vld [vmem:[#allocation40_spill] sm:$0xff] }
 0x69e   :  { %4339 = vrcp.f32 %v6234_v37  ;;  %v3255_v58 = vmul.f32 %v3254_v40, %v6178_v34  ;;  %v3263_v14 = vmul.f32 %v4334_v45, %v3262_v55  ;;  %v2886_v63 = vmul.f32 %v6243_v51, %v6214_v35 }
 0x69f   :  { %v3195_v17 = vadd.f32 %v3114_v31, %v3113_v8  ;;  %v2894_v47 = vand.u32 2147483647, %v6214_v35  ;;  %v3694_v32 = vand.u32 2147483647, %v6234_v37  ;;  %v2877_v60 = vsel %vm2876_vm4, %v6211_v52, %v2873_v36 }
 0x6a0   :  { %v3257_v33 = vsel %vm3256_vm14, %v6178_v34, %v3255_v58  ;;  %v3264_v48 = vmul.f32 0.5, %v3263_v14  ;;  %v2882_v14 = vsel %vm6248_vm2, %v2881_v20, %v2877_v60  ;;  %v2887_v31 = vsub.f32 1.0, %v2886_v63 }
 0x6a1   :  { %v3260_v59 = vsel %vm3258_vm15, %v3259_v18, %v3257_v33  ;;  %3193 = vadd.xlane.f32.xlu1 %v3192_v30  ;;  %3196 = vadd.xlane.f32.xlu2 %v3195_v17  ;;  %v3696_v34 = vand.u32 2147483648, %v6234_v37  ;;  %v6276_v33 = vmax.f32 %v2502_v19, 1e-30  ;;  %vm2890_vm6 = vweird.f32 %v6214_v35 }
 0x6a2   :  { %v3622_v8 = vmul.f32 %v3260_v59, %v7664_v11  ;;  %v3265_v58 = vsub.f32 1.5, %v3264_v48  ;;  %v2883_v63 = vmul.f32 %v2882_v14, %v5749_v12  ;;  %vm3690_vm7 = vweird.f32 %v6234_v37 }
 0x6a3   :  { %v4338_v55 = vpop.eup %4337  ;;  %v2884_v36 = vmul.f32 %v2882_v14, %v5757_v15  ;;  %vm6288_vm8 = vcmp.eq.f32.partialorder %v3694_v32, 8.507059e+37  ;;  %v2888_v60 = vmul.f32 %v6243_v51, %v2887_v31  ;;  %v3697_v11 = vor.u32 1.1754944e-38, %v3696_v34 }
 0x6a4   :  { %v4340_v43 = vpop.eup %4339  ;;  %v3274_v18 = vmul.f32 %v4338_v55, %v6237_v1  ;;  %v6278_v52 = vpop.xlane.xlu0 %3154  ;;  %v6282_v17 = vmax.f32 %v3622_v8, 1e-12  ;;  %v3266_v62 = vmul.f32 %v4334_v45, %v3265_v58  ;;  %vm3280_vm9 = vcmp.eq.f32.partialorder %v6237_v1, inf }
 0x6a5   :  { %v3686_v48 = vmul.f32 %v4340_v43, %v6234_v37  ;;  %4341 = vrsqrt.f32 %v6278_v52  ;;  %vm3691_vm10 = vweird.f32 %v4340_v43  ;;  %vm3282_vm11 = vcmp.eq.f32.partialorder %v6237_v1, 0.0 }
 0x6a6   :  { %v3275_v20 = vmul.f32 %v4338_v55, %v3274_v18  ;;  %4343 = vrcp.f32 %v6282_v17  ;;  %v3267_v45 = vmul.f32 %v3266_v62, %v6202_v2  ;;  %v3115_v32 = vmul.f32 %v2883_v63, %v2883_v63  ;;  %v2505_v18 = vpop.xlane.xlu1 %2504  ;;  %vm3692_vm14 = vmor %vm3690_vm7, %vm3691_vm10 }
 0x6a7   :  { %v3687_v19 = vsub.f32 1.0, %v3686_v48  ;;  %4345 = vrcp.f32 %v6276_v33  ;;  %vm2891_vm12 = vweird.f32 %v6243_v51  ;;  %v3710_v14 = vand.u32 2147483647, %v6282_v17 }
 0x6a8   :  { %v3276_v8 = vmul.f32 0.5, %v3275_v20  ;;  %v3269_v31 = vsel %vm3268_vm3, %v6202_v2, %v3267_v45  ;;  %v3116_v48 = vmul.f32 %v2884_v36, %v2884_v36  ;;  %vm6306_vm13 = vcmp.eq.f32.partialorder %v2894_v47, 8.507059e+37  ;;  %vm6323_vm0 = vmor %vm2890_vm6, %vm2891_vm12 }
 0x6a9   :  { %v3688_v58 = vmul.f32 %v4340_v43, %v3687_v19  ;;  %v3272_v20 = vsel %vm3270_vm5, %v3271_v46, %v3269_v31  ;;  %v2889_v19 = vadd.f32 %v6243_v51, %v2888_v60  ;;  %vm3706_vm15 = vweird.f32 %v6282_v17 }
 0x6aa   :  { %v3277_v34 = vsub.f32 1.5, %v3276_v8  ;;  %v3712_v45 = vand.u32 2147483648, %v6282_v17  ;;  %v7669_v8 = vld [vmem:[#allocation43_spill] sm:$0xff]  ;;  %v3198_v40 = vadd.f32 %v3116_v48, %v3115_v32  ;;  %v6317_v31 = vmax.f32 %v2505_v18, 1e-30 }
 0x6ab   :  { %v3689_v62 = vadd.f32 %v4340_v43, %v3688_v58  ;;  %v4342_v63 = vpop.eup %4341  ;;  %v3623_v36 = vmul.f32 %v3272_v20, %v7669_v8  ;;  %vm6332_vm1 = vcmp.eq.f32.partialorder %v3710_v14, 8.507059e+37  ;;  %v2893_v48 = vsel %vm6323_vm0, %v6243_v51, %v2889_v19  ;;  %v7675_v8 = vld [vmem:[#allocation19_spill] sm:$0xff] }
 0x6ac   :  { %v3278_v58 = vmul.f32 %v4338_v55, %v3277_v34  ;;  %v4344_v2 = vpop.eup %4343  ;;  %v3286_v60 = vmul.f32 %v4342_v63, %v6278_v52  ;;  %3199 = vadd.xlane.f32.xlu0 %v3198_v40  ;;  %v2508_v18 = vpop.xlane.xlu2 %2507  ;;  %v3713_v14 = vor.u32 1.1754944e-38, %v3712_v45  ;;  %v7678_v45 = vand.u32 2147483648, %v6237_v1 }
 0x6ad   :  { %v3693_v46 = vsel %vm3692_vm14, %v4340_v43, %v3689_v62  ;;  %v6327_v15 = vpop.eup %4345  ;;  %v3702_v43 = vmul.f32 %v4344_v2, %v6282_v17  ;;  %v6336_v34 = vmax.f32 %v3623_v36, 1e-12  ;;  %v7674_v62 = vld [vmem:[#allocation26_spill] sm:$0xff]  ;;  %v7676_v36 = vand.u32 2147483648, %v6214_v35 }
 0x6ae   :  { %v3698_v55 = vsel %vm6288_vm8, %v3697_v11, %v3693_v46  ;;  %v3279_v59 = vmul.f32 %v3278_v58, %v6237_v1  ;;  %v3287_v11 = vmul.f32 %v4342_v63, %v3286_v60  ;;  %v6351_v19 = vmax.f32 %v2508_v18, 1e-30 }
 0x6af   :  { %v3699_v20 = vmul.f32 %v3698_v55, %v7674_v62  ;;  %v3700_v47 = vmul.f32 %v3698_v55, %v7675_v8  ;;  %v3703_v46 = vsub.f32 1.0, %v3702_v43  ;;  %4347 = vrcp.f32 %v6336_v34 }
 0x6b0   :  { %v2897_v12 = vor.u32 1.1754944e-38, %v7676_v36  ;;  %v3281_v40 = vsel %vm3280_vm9, %v6237_v1, %v3279_v59  ;;  %v3288_v51 = vmul.f32 0.5, %v3287_v11  ;;  %4349 = vrcp.f32 %v6317_v31  ;;  %7677 = vst [vmem:[#allocation38_spill] sm:$0xff] %v6351_v19 }
 0x6b1   :  { %4197 = vst [vmem:[#allocation10] sm:$0xff] %v3699_v20  ;;  %v3704_v58 = vmul.f32 %v4344_v2, %v3703_v46  ;;  %vm3707_vm2 = vweird.f32 %v4344_v2  ;;  %v3284_v60 = vsel %vm3282_vm11, %v7678_v45, %v3281_v40  ;;  %vm3292_vm3 = vcmp.eq.f32.partialorder %v6278_v52, inf  ;;  %v7682_v45 = vld [vmem:[#allocation17_spill] sm:$0xff] }
 0x6b2   :  { %4198 = vst [vmem:[#allocation10 + $0x8] sm:$0xff] %v3700_v47  ;;  %v2898_v37 = vsel %vm6306_vm13, %v2897_v12, %v2893_v48  ;;  %v3726_v55 = vand.u32 2147483647, %v6336_v34  ;;  %v3624_v43 = vmul.f32 %v3284_v60, %v5742_v27  ;;  %v3289_v62 = vsub.f32 1.5, %v3288_v51  ;;  %vm3708_vm5 = vmor %vm3706_vm15, %vm3707_vm2 }
 0x6b3   :  { %vm3294_vm4 = vcmp.eq.f32.partialorder %v6278_v52, 0.0  ;;  %v2899_v47 = vmul.f32 %v2898_v37, %v5772_v26  ;;  %v3705_v18 = vadd.f32 %v4344_v2, %v3704_v58  ;;  %v3728_v20 = vand.u32 2147483648, %v6336_v34  ;;  %v7690_v26 = vld [vmem:[#allocation15_spill] sm:$0xff] }
 0x6b4   :  { %v2900_v1 = vmul.f32 %v2898_v37, %v5776_v21  ;;  %v2902_v8 = vmul.f32 %v6327_v15, %v6276_v33  ;;  %vm3722_vm6 = vweird.f32 %v6336_v34  ;;  %v6371_v12 = vmax.f32 %v3624_v43, 1e-12  ;;  %v2511_v46 = vpop.xlane.xlu0 %2510 }
 0x6b5   :  { %v3290_v27 = vmul.f32 %v4342_v63, %v3289_v62  ;;  %v3117_v30 = vmul.f32 %v2899_v47, %v2899_v47  ;;  %v4348_v48 = vpop.eup %4347  ;;  %v3709_v59 = vsel %vm3708_vm5, %v4344_v2, %v3705_v18  ;;  %4351 = vrcp.f32 %v6351_v19  ;;  %v7681_v63 = vld [vmem:[#allocation28_spill] sm:$0xff] }
 0x6b6   :  { %v3118_v11 = vmul.f32 %v2900_v1, %v2900_v1  ;;  %v2903_v36 = vsub.f32 1.0, %v2902_v8  ;;  %v6374_v40 = vpop.eup %4349  ;;  %v3714_v51 = vsel %vm6332_vm1, %v3713_v14, %v3709_v59  ;;  %v3718_v17 = vmul.f32 %v4348_v48, %v6336_v34 }
 0x6b7   :  { %vm6379_vm7 = vcmp.eq.f32.partialorder %v3726_v55, 8.507059e+37  ;;  %4353 = vrcp.f32 %v6371_v12  ;;  %v3715_v2 = vmul.f32 %v3714_v51, %v7681_v63  ;;  %v3716_v60 = vmul.f32 %v3714_v51, %v7682_v45 }
 0x6b8   :  { %v3729_v37 = vor.u32 1.1754944e-38, %v3728_v20  ;;  %vm2906_vm8 = vweird.f32 %v6276_v33  ;;  %v3719_v43 = vsub.f32 1.0, %v3718_v17  ;;  %v3291_v62 = vmul.f32 %v3290_v27, %v6278_v52 }
 0x6b9   :  { %v3201_v32 = vadd.f32 %v3118_v11, %v3117_v30  ;;  %v6388_v14 = vmax.f32 %v2511_v46, 1e-30  ;;  %4199 = vst [vmem:[#allocation10 + $0x10] sm:$0xff] %v3715_v2  ;;  %v3742_v55 = vand.u32 2147483647, %v6371_v12  ;;  %v2904_v47 = vmul.f32 %v6327_v15, %v2903_v36 }
 0x6ba   :  { %vm2907_vm9 = vweird.f32 %v6327_v15  ;;  %v2910_v18 = vand.u32 2147483647, %v6276_v33  ;;  %4200 = vst [vmem:[#allocation10 + $0x18] sm:$0xff] %v3716_v60  ;;  %v3720_v1 = vmul.f32 %v4348_v48, %v3719_v43  ;;  %vm3723_vm10 = vweird.f32 %v4348_v48 }
 0x6bb   :  { %7683 = vst [vmem:[#allocation40_spill] sm:$0xff] %v6388_v14  ;;  %v3293_v20 = vsel %vm3292_vm3, %v6278_v52, %v3291_v62  ;;  %3202 = vadd.xlane.f32.xlu1 %v3201_v32  ;;  %v2912_v8 = vand.u32 2147483648, %v6276_v33  ;;  %v6398_v27 = vpop.eup %4351  ;;  %vm3738_vm11 = vweird.f32 %v6371_v12  ;;  %v3744_v30 = vand.u32 2147483648, %v6371_v12  ;;  %vm2908_vm12 = vmor %vm2906_vm8, %vm2907_vm9 }
 0x6bc   :  { %v7684_v59 = vand.u32 2147483648, %v6278_v52  ;;  %v2905_v46 = vadd.f32 %v6327_v15, %v2904_v47  ;;  %v2514_v36 = vpop.xlane.xlu1 %2513  ;;  %v2918_v51 = vmul.f32 %v6374_v40, %v6317_v31  ;;  %v3721_v63 = vadd.f32 %v4348_v48, %v3720_v1  ;;  %vm3724_vm13 = vmor %vm3722_vm6, %vm3723_vm10 }
 0x6bd   :  { %v4354_v17 = vpop.eup %4353  ;;  %4355 = vrcp.f32 %v6388_v14  ;;  %v2913_v45 = vor.u32 1.1754944e-38, %v2912_v8  ;;  %vm6419_vm14 = vcmp.eq.f32.partialorder %v3742_v55, 8.507059e+37  ;;  %vm2911_vm15 = vcmp.eq.f32.partialorder %v2910_v18, 8.507059e+37  ;;  %v7688_v55 = vld [vmem:[#allocation50_spill] sm:$0xff] }
 0x6be   :  { %v3296_v11 = vsel %vm3294_vm4, %v7684_v59, %v3293_v20  ;;  %v3734_v52 = vmul.f32 %v4354_v17, %v6371_v12  ;;  %v6424_v43 = vmax.f32 %v2514_v36, 1e-30  ;;  %v3725_v62 = vsel %vm3724_vm13, %v4348_v48, %v3721_v63 }
 0x6bf   :  { %v3625_v2 = vmul.f32 %v3296_v11, %v5761_v53  ;;  %v2909_v53 = vsel %vm2908_vm12, %v6327_v15, %v2905_v46  ;;  %v2919_v1 = vsub.f32 1.0, %v2918_v51  ;;  %v3730_v34 = vsel %vm6379_vm7, %v3729_v37, %v3725_v62  ;;  %v7689_v11 = vld [vmem:[#allocation16_spill] sm:$0xff] }
 0x6c0   :  { %7687 = vst [vmem:[#allocation43_spill] sm:$0xff] %v6424_v43  ;;  %v2914_v47 = vsel %vm2911_vm15, %v2913_v45, %v2909_v53  ;;  %v3735_v20 = vsub.f32 1.0, %v3734_v52  ;;  %v3731_v21 = vmul.f32 %v3730_v34, %v7689_v11  ;;  %v3732_v15 = vmul.f32 %v3730_v34, %v7690_v26 }
 0x6c1   :  { %v6426_v32 = vmax.f32 %v3625_v2, 1e-12  ;;  %v2915_v8 = vmul.f32 %v2914_v47, %v5790_v44  ;;  %v2916_v59 = vmul.f32 %v2914_v47, %v7688_v55  ;;  %v3745_v18 = vor.u32 1.1754944e-38, %v3744_v30 }
 0x6c2   :  { %v3736_v48 = vmul.f32 %v4354_v17, %v3735_v20  ;;  %vm3739_vm0 = vweird.f32 %v4354_v17  ;;  %4201 = vst [vmem:[#allocation10 + $0x20] sm:$0xff] %v3731_v21  ;;  %v2920_v37 = vmul.f32 %v6374_v40, %v2919_v1  ;;  %vm2923_vm1 = vweird.f32 %v6374_v40 }
 0x6c3   :  { %4357 = vrcp.f32 %v6426_v32  ;;  %v3760_v46 = vand.u32 2147483648, %v6426_v32  ;;  %v3119_v36 = vmul.f32 %v2915_v8, %v2915_v8  ;;  %v6436_v51 = vpop.eup %4355  ;;  %v3120_v58 = vmul.f32 %v2916_v59, %v2916_v59  ;;  %4202 = vst [vmem:[#allocation10 + $0x28] sm:$0xff] %v3732_v15  ;;  %vm3740_vm3 = vmor %vm3738_vm11, %vm3739_vm0  ;;  %v7694_v59 = vld [vmem:[#allocation21_spill] sm:$0xff] }
 0x6c4   :  { %4359 = vrcp.f32 %v6424_v43  ;;  %v3737_v26 = vadd.f32 %v4354_v17, %v3736_v48  ;;  %v3758_v30 = vand.u32 2147483647, %v6426_v32  ;;  %vm2922_vm2 = vweird.f32 %v6317_v31  ;;  %v2517_v2 = vpop.xlane.xlu2 %2516  ;;  %v7695_v15 = vld [vmem:[#allocation25_spill] sm:$0xff] }
 0x6c5   :  { %v2926_v63 = vand.u32 2147483647, %v6317_v31  ;;  %v3204_v21 = vadd.f32 %v3120_v58, %v3119_v36  ;;  %v2921_v45 = vadd.f32 %v6374_v40, %v2920_v37  ;;  %v2928_v52 = vand.u32 2147483648, %v6317_v31  ;;  %vm6454_vm5 = vmor %vm2922_vm2, %vm2923_vm1 }
 0x6c6   :  { %v6449_v53 = vmax.f32 %v2517_v2, 1e-30  ;;  %v3741_v62 = vsel %vm3740_vm3, %v4354_v17, %v3737_v26  ;;  %vm3754_vm4 = vweird.f32 %v6426_v32  ;;  %v3761_v47 = vor.u32 1.1754944e-38, %v3760_v46  ;;  %v7698_v26 = vld [vmem:[#allocation51_spill] sm:$0xff]  ;;  %v7699_v2 = vld [vmem:[#allocation52_spill] sm:$0xff] }
 0x6c7   :  { %vm2927_vm6 = vcmp.eq.f32.partialorder %v2926_v63, 8.507059e+37  ;;  %v2934_v12 = vmul.f32 %v6398_v27, %v6351_v19  ;;  %v3746_v20 = vsel %vm6419_vm14, %v3745_v18, %v3741_v62  ;;  %3205 = vadd.xlane.f32.xlu2 %v3204_v21  ;;  %v2925_v17 = vsel %vm6454_vm5, %v6374_v40, %v2921_v45 }
 0x6c8   :  { %7691 = vst [vmem:[#allocation26_spill] sm:$0xff] %v6449_v53  ;;  %v2929_v8 = vor.u32 1.1754944e-38, %v2928_v52  ;;  %vm2938_vm7 = vweird.f32 %v6351_v19  ;;  %v3747_v11 = vmul.f32 %v3746_v20, %v7694_v59  ;;  %v3748_v48 = vmul.f32 %v3746_v20, %v7695_v15 }
 0x6c9   :  { %v4358_v34 = vpop.eup %4357  ;;  %vm6469_vm8 = vcmp.eq.f32.partialorder %v3758_v30, 8.507059e+37  ;;  %4361 = vrcp.f32 %v6449_v53  ;;  %v2935_v40 = vsub.f32 1.0, %v2934_v12  ;;  %v2942_v58 = vand.u32 2147483647, %v6351_v19 }
 0x6ca   :  { %v3750_v46 = vmul.f32 %v4358_v34, %v6426_v32  ;;  %v6474_v60 = vpop.eup %4359  ;;  %vm3755_vm9 = vweird.f32 %v4358_v34  ;;  %v2930_v18 = vsel %vm2927_vm6, %v2929_v8, %v2925_v17  ;;  %4203 = vst [vmem:[#allocation10 + $0x30] sm:$0xff] %v3747_v11  ;;  %v2944_v30 = vand.u32 2147483648, %v6351_v19 }
 0x6cb   :  { %v2931_v63 = vmul.f32 %v2930_v18, %v7698_v26  ;;  %v2932_v21 = vmul.f32 %v2930_v18, %v7699_v2  ;;  %4204 = vst [vmem:[#allocation10 + $0x38] sm:$0xff] %v3748_v48  ;;  %v2936_v45 = vmul.f32 %v6398_v27, %v2935_v40  ;;  %vm2939_vm10 = vweird.f32 %v6398_v27  ;;  %vm3756_vm14 = vmor %vm3754_vm4, %vm3755_vm9 }
 0x6cc   :  { %v3751_v37 = vsub.f32 1.0, %v3750_v46  ;;  %vm6482_vm11 = vcmp.eq.f32.partialorder %v2942_v58, 8.507059e+37  ;;  %v2950_v62 = vmul.f32 %v6436_v51, %v6388_v14  ;;  %v2520_v17 = vpop.xlane.xlu0 %2519  ;;  %vm2954_vm12 = vweird.f32 %v6388_v14  ;;  %vm2940_vm13 = vmor %vm2938_vm7, %vm2939_vm10 }
 0x6cd   :  { %v3121_v12 = vmul.f32 %v2931_v63, %v2931_v63  ;;  %v3122_v20 = vmul.f32 %v2932_v21, %v2932_v21  ;;  %v2937_v8 = vadd.f32 %v6398_v27, %v2936_v45  ;;  %v2945_v59 = vor.u32 1.1754944e-38, %v2944_v30 }
 0x6ce   :  { %v3752_v1 = vmul.f32 %v4358_v34, %v3751_v37  ;;  %v6490_v11 = vmax.f32 %v2520_v17, 1e-30  ;;  %v2951_v15 = vsub.f32 1.0, %v2950_v62  ;;  %v2958_v40 = vand.u32 2147483647, %v6388_v14  ;;  %v7703_v62 = vld [vmem:[#allocation53_spill] sm:$0xff] }
 0x6cf   :  { %v6492_v48 = vpop.eup %4361  ;;  %v3207_v18 = vadd.f32 %v3122_v20, %v3121_v12  ;;  %v2960_v58 = vand.u32 2147483648, %v6388_v14  ;;  %v2941_v37 = vsel %vm2940_vm13, %v6398_v27, %v2937_v8  ;;  %vm2955_vm15 = vweird.f32 %v6436_v51  ;;  %v7705_v17 = vld [vmem:[#allocation29_spill] sm:$0xff] }
 0x6d0   :  { %7702 = vst [vmem:[#allocation19_spill] sm:$0xff] %v6490_v11  ;;  %v3753_v46 = vadd.f32 %v4358_v34, %v3752_v1  ;;  %v2952_v63 = vmul.f32 %v6436_v51, %v2951_v15  ;;  %v2966_v21 = vmul.f32 %v6474_v60, %v6424_v43  ;;  %v2946_v45 = vsel %vm6482_vm11, %v2945_v59, %v2941_v37  ;;  %v7704_v1 = vld [vmem:[#allocation55_spill] sm:$0xff]  ;;  %v7706_v15 = vld [vmem:[#allocation24_spill] sm:$0xff]  ;;  %vm2956_vm1 = vmor %vm2954_vm12, %vm2955_vm15 }
 0x6d1   :  { %3208 = vadd.xlane.f32.xlu0 %v3207_v18  ;;  %4363 = vrcp.f32 %v6490_v11  ;;  %vm2959_vm0 = vcmp.eq.f32.partialorder %v2958_v40, 8.507059e+37  ;;  %v2947_v27 = vmul.f32 %v2946_v45, %v7703_v62  ;;  %v2948_v12 = vmul.f32 %v2946_v45, %v7704_v1 }
 0x6d2   :  { %v3757_v30 = vsel %vm3756_vm14, %v4358_v34, %v3753_v46  ;;  %v2953_v20 = vadd.f32 %v6436_v51, %v2952_v63  ;;  %v2961_v52 = vor.u32 1.1754944e-38, %v2960_v58  ;;  %v2967_v59 = vsub.f32 1.0, %v2966_v21  ;;  %v7708_v21 = vld [vmem:[#allocation58_spill] sm:$0xff] }
 0x6d3   :  { %v3762_v32 = vsel %vm6469_vm8, %v3761_v47, %v3757_v30  ;;  %v3123_v46 = vmul.f32 %v2947_v27, %v2947_v27  ;;  %v3124_v18 = vmul.f32 %v2948_v12, %v2948_v12  ;;  %vm2971_vm2 = vweird.f32 %v6474_v60 }
 0x6d4   :  { %v3763_v8 = vmul.f32 %v3762_v32, %v7705_v17  ;;  %v3764_v34 = vmul.f32 %v3762_v32, %v7706_v15  ;;  %v2957_v36 = vsel %vm2956_vm1, %v6436_v51, %v2953_v20  ;;  %v2523_v40 = vpop.xlane.xlu1 %2522  ;;  %v2968_v37 = vmul.f32 %v6474_v60, %v2967_v59  ;;  %v7707_v32 = vld [vmem:[#allocation56_spill] sm:$0xff] }
 0x6d5   :  { %v2962_v47 = vsel %vm2959_vm0, %v2961_v52, %v2957_v36  ;;  %v2974_v63 = vand.u32 2147483647, %v6424_v43  ;;  %v2976_v30 = vand.u32 2147483648, %v6424_v43  ;;  %v3210_v45 = vadd.f32 %v3124_v18, %v3123_v46 }
 0x6d6   :  { %4205 = vst [vmem:[#allocation10 + $0x40] sm:$0xff] %v3763_v8  ;;  %v2963_v58 = vmul.f32 %v2962_v47, %v7707_v32  ;;  %v2964_v27 = vmul.f32 %v2962_v47, %v7708_v21  ;;  %v6527_v12 = vmax.f32 %v2523_v40, 1e-30  ;;  %v2969_v20 = vadd.f32 %v6474_v60, %v2968_v37  ;;  %v7710_v37 = vld [vmem:[#allocation59_spill] sm:$0xff] }
 0x6d7   :  { %4206 = vst [vmem:[#allocation10 + $0x48] sm:$0xff] %v3764_v34  ;;  %v4364_v51 = vpop.eup %4363  ;;  %vm2970_vm3 = vweird.f32 %v6424_v43  ;;  %v2982_v17 = vmul.f32 %v6492_v48, %v6449_v53  ;;  %3211 = vadd.xlane.f32.xlu1 %v3210_v45  ;;  %v2977_v34 = vor.u32 1.1754944e-38, %v2976_v30  ;;  %vm2975_vm5 = vcmp.eq.f32.partialorder %v2974_v63, 8.507059e+37 }
 0x6d8   :  { %7709 = vst [vmem:[#allocation28_spill] sm:$0xff] %v6527_v12  ;;  %v3125_v8 = vmul.f32 %v2963_v58, %v2963_v58  ;;  %v3126_v15 = vmul.f32 %v2964_v27, %v2964_v27  ;;  %4365 = vrcp.f32 %v6527_v12  ;;  %vm2972_vm4 = vmor %vm2970_vm3, %vm2971_vm2  ;;  %v2990_v46 = vand.u32 2147483647, %v6449_v53  ;;  %v7711_v58 = vld [vmem:[#allocation61_spill] sm:$0xff] }
 0x6d9   :  { %v2973_v52 = vsel %vm2972_vm4, %v6474_v60, %v2969_v20  ;;  %v2983_v59 = vsub.f32 1.0, %v2982_v17  ;;  %v2992_v47 = vand.u32 2147483648, %v6449_v53  ;;  %v2998_v40 = vmul.f32 %v4364_v51, %v6490_v11 }
 0x6da   :  { %v3213_v18 = vadd.f32 %v3126_v15, %v3125_v8  ;;  %v2978_v36 = vsel %vm2975_vm5, %v2977_v34, %v2973_v52  ;;  %vm2987_vm6 = vweird.f32 %v6492_v48  ;;  %vm2986_vm7 = vweird.f32 %v6449_v53 }
 0x6db   :  { %v2979_v45 = vmul.f32 %v2978_v36, %v7710_v37  ;;  %v2980_v27 = vmul.f32 %v2978_v36, %v7711_v58  ;;  %v2984_v21 = vmul.f32 %v6492_v48, %v2983_v59  ;;  %vm6545_vm8 = vcmp.eq.f32.partialorder %v2990_v46, 8.507059e+37  ;;  %vm2988_vm9 = vmor %vm2986_vm7, %vm2987_vm6 }
 0x6dc   :  { %3214 = vadd.xlane.f32.xlu2 %v3213_v18  ;;  %v2993_v63 = vor.u32 1.1754944e-38, %v2992_v47  ;;  %v2999_v30 = vsub.f32 1.0, %v2998_v40  ;;  %v2526_v8 = vpop.xlane.xlu2 %2525  ;;  %v3006_v34 = vand.u32 2147483647, %v6490_v11  ;;  %vm3003_vm10 = vweird.f32 %v4364_v51 }
 0x6dd   :  { %v3127_v20 = vmul.f32 %v2979_v45, %v2979_v45  ;;  %v3128_v17 = vmul.f32 %v2980_v27, %v2980_v27  ;;  %v2985_v15 = vadd.f32 %v6492_v48, %v2984_v21  ;;  %v6551_v59 = vmax.f32 %v2526_v8, 1e-30  ;;  %v7715_v45 = vld [vmem:[#allocation63_spill] sm:$0xff] }
 0x6de   :  { %v4366_v52 = vpop.eup %4365  ;;  %v3000_v18 = vmul.f32 %v4364_v51, %v2999_v30  ;;  %v3008_v46 = vand.u32 2147483648, %v6490_v11  ;;  %vm3002_vm11 = vweird.f32 %v6490_v11  ;;  %vm3007_vm12 = vcmp.eq.f32.partialorder %v3006_v34, 8.507059e+37  ;;  %v7716_v30 = vld [vmem:[#allocation64_spill] sm:$0xff] }
 0x6df   :  { %7714 = vst [vmem:[#allocation17_spill] sm:$0xff] %v6551_v59  ;;  %v3216_v36 = vadd.f32 %v3128_v17, %v3127_v20  ;;  %v2989_v58 = vsel %vm2988_vm9, %v6492_v48, %v2985_v15  ;;  %v3014_v47 = vmul.f32 %v4366_v52, %v6527_v12  ;;  %4367 = vrcp.f32 %v6551_v59  ;;  %vm3004_vm13 = vmor %vm3002_vm11, %vm3003_vm10 }
 0x6e0   :  { %v2994_v21 = vsel %vm6545_vm8, %v2993_v63, %v2989_v58  ;;  %v3001_v40 = vadd.f32 %v4364_v51, %v3000_v18  ;;  %v3009_v20 = vor.u32 1.1754944e-38, %v3008_v46  ;;  %vm3019_vm14 = vweird.f32 %v4366_v52  ;;  %v7717_v63 = vld [vmem:[#allocation66_spill] sm:$0xff]  ;;  %v7718_v18 = vld [vmem:[#allocation69_spill] sm:$0xff] }
 0x6e1   :  { %3217 = vadd.xlane.f32.xlu0 %v3216_v36  ;;  %v2995_v27 = vmul.f32 %v2994_v21, %v7715_v45  ;;  %v2996_v8 = vmul.f32 %v2994_v21, %v7716_v30  ;;  %v3015_v17 = vsub.f32 1.0, %v3014_v47  ;;  %v3022_v15 = vand.u32 2147483647, %v6527_v12 }
 0x6e2   :  { %v3005_v48 = vsel %vm3004_vm13, %v4364_v51, %v3001_v40  ;;  %v3024_v37 = vand.u32 2147483648, %v6527_v12  ;;  %vm3018_vm15 = vweird.f32 %v6527_v12  ;;  %vm3034_vm3 = vweird.f32 %v6551_v59 }
 0x6e3   :  { %v3129_v11 = vmul.f32 %v2995_v27, %v2995_v27  ;;  %v3130_v32 = vmul.f32 %v2996_v8, %v2996_v8  ;;  %v3010_v60 = vsel %vm3007_vm12, %v3009_v20, %v3005_v48  ;;  %v3016_v58 = vmul.f32 %v4366_v52, %v3015_v17  ;;  %vm3020_vm0 = vmor %vm3018_vm15, %vm3019_vm14  ;;  %v7719_v17 = vld [vmem:[#allocation67_spill] sm:$0xff] }
 0x6e4   :  { %v3011_v34 = vmul.f32 %v3010_v60, %v7717_v63  ;;  %v3012_v36 = vmul.f32 %v3010_v60, %v7718_v18  ;;  %v6566_v1 = vpop.xlane.xlu2 %3160  ;;  %v3025_v47 = vor.u32 1.1754944e-38, %v3024_v37  ;;  %vm3023_vm1 = vcmp.eq.f32.partialorder %v3022_v15, 8.507059e+37 }
 0x6e5   :  { %v3219_v45 = vadd.f32 %v3130_v32, %v3129_v11  ;;  %v2529_v21 = vpop.xlane.xlu0 %2528  ;;  %v3017_v46 = vadd.f32 %v4366_v52, %v3016_v58  ;;  %v4368_v51 = vpop.eup %4367  ;;  %4369 = vrsqrt.f32 %v6566_v1  ;;  %vm3316_vm6 = vcmp.eq.f32.partialorder %v6566_v1, inf }
 0x6e6   :  { %v3131_v40 = vmul.f32 %v3011_v34, %v3011_v34  ;;  %v3132_v27 = vmul.f32 %v3012_v36, %v3012_v36  ;;  %v3030_v11 = vmul.f32 %v4368_v51, %v6551_v59  ;;  %v3040_v34 = vand.u32 2147483648, %v6551_v59 }
 0x6e7   :  { %3220 = vadd.xlane.f32.xlu1 %v3219_v45  ;;  %v3021_v8 = vsel %vm3020_vm0, %v4366_v52, %v3017_v46  ;;  %vm3035_vm2 = vweird.f32 %v4368_v51  ;;  %v3038_v46 = vand.u32 2147483647, %v6551_v59  ;;  %vm3318_vm7 = vcmp.eq.f32.partialorder %v6566_v1, 0.0 }
 0x6e8   :  { %v3026_v20 = vsel %vm3023_vm1, %v3025_v47, %v3021_v8  ;;  %v3222_v32 = vadd.f32 %v3132_v27, %v3131_v40  ;;  %v3031_v58 = vsub.f32 1.0, %v3030_v11  ;;  %vm3036_vm4 = vmor %vm3034_vm3, %vm3035_vm2  ;;  %v3041_v8 = vor.u32 1.1754944e-38, %v3040_v34 }
 0x6e9   :  { %v3027_v48 = vmul.f32 %v3026_v20, %v7719_v17  ;;  %v3028_v60 = vmul.f32 %v3026_v20, %v5940_v54  ;;  %vm3039_vm5 = vcmp.eq.f32.partialorder %v3038_v46, 8.507059e+37 }
 0x6ea   :  { %3223 = vadd.xlane.f32.xlu2 %v3222_v32  ;;  %v3032_v12 = vmul.f32 %v4368_v51, %v3031_v58 }
 0x6eb   :  { %v3133_v18 = vmul.f32 %v3027_v48, %v3027_v48  ;;  %v3134_v63 = vmul.f32 %v3028_v60, %v3028_v60  ;;  %v4370_v30 = vpop.eup %4369 }
 0x6ec   :  { %v3310_v37 = vmul.f32 %v4370_v30, %v6566_v1  ;;  %v6575_v45 = vpop.xlane.xlu2 %3169  ;;  %v2532_v36 = vpop.xlane.xlu1 %2531  ;;  %v3033_v40 = vadd.f32 %v4368_v51, %v3032_v12 }
 0x6ed   :  { %v6577_v52 = vpop.xlane.xlu0 %3163  ;;  %v3225_v15 = vadd.f32 %v3134_v63, %v3133_v18  ;;  %4371 = vrsqrt.f32 %v6575_v45  ;;  %v6606_v59 = vmax.f32 %v2532_v36, 1e-30  ;;  %vm3352_vm8 = vcmp.eq.f32.partialorder %v6575_v45, inf }
 0x6ee   :  { %v3311_v47 = vmul.f32 %v4370_v30, %v3310_v37  ;;  %4373 = vrsqrt.f32 %v6577_v52  ;;  %v3037_v20 = vsel %vm3036_vm4, %v4368_v51, %v3033_v40  ;;  %v6599_v40 = vmax.f32 %v2529_v21, 1e-30 }
 0x6ef   :  { %3226 = vadd.xlane.f32.xlu0 %v3225_v15  ;;  %v3042_v18 = vsel %vm3039_vm5, %v3041_v8, %v3037_v20  ;;  %vm3354_vm9 = vcmp.eq.f32.partialorder %v6575_v45, 0.0  ;;  %vm3328_vm10 = vcmp.eq.f32.partialorder %v6577_v52, inf  ;;  %vm3330_vm11 = vcmp.eq.f32.partialorder %v6577_v52, 0.0 }
 0x6f0   :  { %v3312_v27 = vmul.f32 0.5, %v3311_v47  ;;  %v3043_v51 = vmul.f32 %v3042_v18, %v5896_v0  ;;  %v3319_v47 = vand.u32 2147483648, %v6566_v1 }
 0x6f2   :  { %v3313_v63 = vsub.f32 1.5, %v3312_v27 }
 0x6f3   :  { %v4372_v11 = vpop.eup %4371 }
 0x6f4   :  { %v4374_v32 = vpop.eup %4373  ;;  %v3314_v48 = vmul.f32 %v4370_v30, %v3313_v63  ;;  %v3346_v60 = vmul.f32 %v4372_v11, %v6575_v45  ;;  %v6585_v58 = vpop.xlane.xlu2 %3178  ;;  %v3044_v30 = vmul.f32 %v3042_v18, %v5990_v23  ;;  %v3135_v18 = vmul.f32 %v3043_v51, %v3043_v51 }
 0x6f5   :  { %v6587_v37 = vpop.xlane.xlu0 %3172  ;;  %v3322_v12 = vmul.f32 %v4374_v32, %v6577_v52  ;;  %4375 = vrsqrt.f32 %v6585_v58  ;;  %v6591_v15 = vpop.xlane.xlu1 %3157  ;;  %vm3388_vm12 = vcmp.eq.f32.partialorder %v6585_v58, inf  ;;  %vm3390_vm13 = vcmp.eq.f32.partialorder %v6585_v58, 0.0 }
 0x6f6   :  { %v3315_v34 = vmul.f32 %v3314_v48, %v6566_v1  ;;  %v3347_v46 = vmul.f32 %v4372_v11, %v3346_v60  ;;  %4377 = vrsqrt.f32 %v6587_v37  ;;  %v7720_v60 = vld [vmem:[#allocation57_spill] sm:$0xff]  ;;  %v3136_v23 = vmul.f32 %v3044_v30, %v3044_v30 }
 0x6f7   :  { %v3323_v27 = vmul.f32 %v4374_v32, %v3322_v12  ;;  %4379 = vrsqrt.f32 %v6591_v15  ;;  %vm3364_vm14 = vcmp.eq.f32.partialorder %v6587_v37, inf  ;;  %vm3366_vm15 = vcmp.eq.f32.partialorder %v6587_v37, 0.0 }
 0x6f8   :  { %v3317_v8 = vsel %vm3316_vm6, %v6566_v1, %v3315_v34  ;;  %v3348_v20 = vmul.f32 0.5, %v3347_v46  ;;  %4381 = vrcp.f32 %v6599_v40  ;;  %v3228_v62 = vadd.f32 %v3136_v23, %v3135_v18 }
 0x6f9   :  { %v3320_v63 = vsel %vm3318_vm7, %v3319_v47, %v3317_v8  ;;  %v3324_v48 = vmul.f32 0.5, %v3323_v27  ;;  %vm3304_vm0 = vcmp.eq.f32.partialorder %v6591_v15, inf  ;;  %vm3306_vm4 = vcmp.eq.f32.partialorder %v6591_v15, 0.0 }
 0x6fa   :  { %v3627_v0 = vmul.f32 %v3320_v63, %v7720_v60  ;;  %v3349_v54 = vsub.f32 1.5, %v3348_v20  ;;  %3229 = vadd.xlane.f32.xlu1 %v3228_v62 }
 0x6fb   :  { %v4376_v17 = vpop.eup %4375  ;;  %v3325_v21 = vsub.f32 1.5, %v3324_v48 }
 0x6fc   :  { %v4378_v12 = vpop.eup %4377  ;;  %v6608_v34 = vmax.f32 %v3627_v0, 1e-12  ;;  %v3350_v1 = vmul.f32 %v4372_v11, %v3349_v54  ;;  %v3382_v46 = vmul.f32 %v4376_v17, %v6585_v58  ;;  %v6611_v47 = vpop.xlane.xlu2 %3187  ;;  %v3355_v0 = vand.u32 2147483648, %v6575_v45 }
 0x6fd   :  { %v3326_v27 = vmul.f32 %v4374_v32, %v3325_v21  ;;  %v3358_v51 = vmul.f32 %v4378_v12, %v6587_v37  ;;  %4383 = vrsqrt.f32 %v6611_v47  ;;  %v4380_v30 = vpop.eup %4379  ;;  %v3331_v32 = vand.u32 2147483648, %v6577_v52 }
 0x6fe   :  { %4385 = vrcp.f32 %v6608_v34  ;;  %v3351_v54 = vmul.f32 %v3350_v1, %v6575_v45  ;;  %v3383_v36 = vmul.f32 %v4376_v17, %v3382_v46  ;;  %v3298_v8 = vmul.f32 %v4380_v30, %v6591_v15  ;;  %v6626_v20 = vpop.eup %4381 }
 0x6ff   :  { %v3327_v23 = vmul.f32 %v3326_v27, %v6577_v52  ;;  %v3359_v11 = vmul.f32 %v4378_v12, %v3358_v51  ;;  %4387 = vrcp.f32 %v6606_v59  ;;  %v3391_v1 = vand.u32 2147483648, %v6585_v58  ;;  %v6636_v27 = vpop.xlane.xlu0 %3181 }
 0x700   :  { %v3353_v62 = vsel %vm3352_vm8, %v6575_v45, %v3351_v54  ;;  %v3384_v48 = vmul.f32 0.5, %v3383_v36  ;;  %v3299_v46 = vmul.f32 %v4380_v30, %v3298_v8  ;;  %v7721_v54 = vld [vmem:[#allocation60_spill] sm:$0xff]  ;;  %v3367_v36 = vand.u32 2147483648, %v6587_v37 }
 0x701   :  { %v3329_v63 = vsel %vm3328_vm10, %v6577_v52, %v3327_v23  ;;  %v3360_v60 = vmul.f32 0.5, %v3359_v11  ;;  %v3356_v18 = vsel %vm3354_vm9, %v3355_v0, %v3353_v62  ;;  %v3790_v0 = vand.u32 2147483647, %v6608_v34 }
 0x702   :  { %v3332_v21 = vsel %vm3330_vm11, %v3331_v32, %v3329_v63  ;;  %v3630_v2 = vmul.f32 %v3356_v18, %v5854_v16  ;;  %v3385_v52 = vsub.f32 1.5, %v3384_v48  ;;  %v3300_v11 = vmul.f32 0.5, %v3299_v46 }
 0x703   :  { %v6638_v51 = vpop.eup %4383  ;;  %v3628_v26 = vmul.f32 %v3332_v21, %v7721_v54  ;;  %v3361_v23 = vsub.f32 1.5, %v3360_v60  ;;  %4389 = vrsqrt.f32 %v6636_v27  ;;  %v3792_v48 = vand.u32 2147483648, %v6608_v34 }
 0x704   :  { %v4386_v45 = vpop.eup %4385  ;;  %v3418_v32 = vmul.f32 %v6638_v51, %v6611_v47  ;;  %v6650_v8 = vmax.f32 %v3630_v2, 1e-12  ;;  %v3386_v60 = vmul.f32 %v4376_v17, %v3385_v52  ;;  %v3301_v21 = vsub.f32 1.5, %v3300_v11 }
 0x705   :  { %v3782_v16 = vmul.f32 %v4386_v45, %v6608_v34  ;;  %v6652_v62 = vmax.f32 %v3628_v26, 1e-12  ;;  %v6655_v63 = vpop.eup %4387  ;;  %v3362_v18 = vmul.f32 %v4378_v12, %v3361_v23  ;;  %vm3786_vm1 = vweird.f32 %v6608_v34 }
 0x706   :  { %4391 = vrcp.f32 %v6650_v8  ;;  %v3419_v46 = vmul.f32 %v6638_v51, %v3418_v32  ;;  %v3307_v26 = vand.u32 2147483648, %v6591_v15  ;;  %v6666_v2 = vmul.f32 %v6626_v20, %v6599_v40 }
 0x707   :  { %v3783_v54 = vsub.f32 1.0, %v3782_v16  ;;  %4393 = vrcp.f32 %v6652_v62  ;;  %vm3787_vm2 = vweird.f32 %v4386_v45  ;;  %vm6668_vm3 = vcmp.eq.f32.partialorder %v3790_v0, 8.507059e+37 }
 0x708   :  { %v3387_v52 = vmul.f32 %v3386_v60, %v6585_v58  ;;  %v3793_v23 = vor.u32 1.1754944e-38, %v3792_v48  ;;  %v3363_v11 = vmul.f32 %v3362_v18, %v6587_v37  ;;  %v3302_v32 = vmul.f32 %v4380_v30, %v3301_v21  ;;  %vm3788_vm5 = vmor %vm3786_vm1, %vm3787_vm2 }
 0x709   :  { %v3784_v17 = vmul.f32 %v4386_v45, %v3783_v54  ;;  %v6676_v53 = vpop.eup %4389  ;;  %v3838_v54 = vand.u32 2147483647, %v6650_v8  ;;  %v3420_v14 = vmul.f32 0.5, %v3419_v46  ;;  %v3840_v48 = vand.u32 2147483648, %v6650_v8 }
 0x70a   :  { %v3389_v0 = vsel %vm3388_vm12, %v6585_v58, %v3387_v52  ;;  %v3365_v60 = vsel %vm3364_vm14, %v6587_v37, %v3363_v11  ;;  %v3303_v18 = vmul.f32 %v3302_v32, %v6591_v15  ;;  %vm3424_vm6 = vcmp.eq.f32.partialorder %v6611_v47, inf }
 0x70b   :  { %v3785_v43 = vadd.f32 %v4386_v45, %v3784_v17  ;;  %v3392_v30 = vsel %vm3390_vm13, %v3391_v1, %v3389_v0  ;;  %v3368_v46 = vsel %vm3366_vm15, %v3367_v36, %v3365_v60  ;;  %v3421_v34 = vsub.f32 1.5, %v3420_v14  ;;  %v7724_v1 = vld [vmem:[#allocation65_spill] sm:$0xff] }
 0x70c   :  { %v4392_v21 = vpop.eup %4391  ;;  %v3633_v16 = vmul.f32 %v3392_v30, %v5912_v39  ;;  %v3631_v0 = vmul.f32 %v3368_v46, %v7724_v1  ;;  %v3394_v11 = vmul.f32 %v6676_v53, %v6636_v27  ;;  %v7726_v39 = vld [vmem:[#allocation22_spill] sm:$0xff]  ;;  %v3806_v14 = vand.u32 2147483647, %v6652_v62 }
 0x70d   :  { %v3789_v17 = vsel %vm3788_vm5, %v4386_v45, %v3785_v43  ;;  %v4394_v52 = vpop.eup %4393  ;;  %v3830_v58 = vmul.f32 %v4392_v21, %v6650_v8  ;;  %v7725_v43 = vld [vmem:[#allocation27_spill] sm:$0xff]  ;;  %vm3426_vm7 = vcmp.eq.f32.partialorder %v6611_v47, 0.0  ;;  %v3305_v30 = vsel %vm3304_vm0, %v6591_v15, %v3303_v18 }
 0x70e   :  { %v3794_v19 = vsel %vm6668_vm3, %v3793_v23, %v3789_v17  ;;  %v3798_v37 = vmul.f32 %v4394_v52, %v6652_v62  ;;  %v6706_v12 = vmax.f32 %v3633_v16, 1e-12  ;;  %v6708_v23 = vmax.f32 %v3631_v0, 1e-12 }
 0x70f   :  { %v3795_v45 = vmul.f32 %v3794_v19, %v7725_v43  ;;  %v3796_v32 = vmul.f32 %v3794_v19, %v7726_v39  ;;  %v3831_v36 = vsub.f32 1.0, %v3830_v58  ;;  %vm3835_vm8 = vweird.f32 %v4392_v21 }
 0x710   :  { %v3799_v60 = vsub.f32 1.0, %v3798_v37  ;;  %v3808_v19 = vand.u32 2147483648, %v6652_v62  ;;  %v3422_v17 = vmul.f32 %v6638_v51, %v3421_v34  ;;  %4395 = vrcp.f32 %v6706_v12  ;;  %v7727_v34 = vld [vmem:[#allocation54_spill] sm:$0xff]  ;;  %v7728_v37 = vld [vmem:[#allocation33_spill] sm:$0xff] }
 0x711   :  { %4209 = vst [vmem:[#allocation10 + $0x60] sm:$0xff] %v3795_v45  ;;  %v3832_v46 = vmul.f32 %v4392_v21, %v3831_v36  ;;  %v3308_v16 = vsel %vm3306_vm4, %v3307_v26, %v3305_v30  ;;  %v3395_v58 = vmul.f32 %v6676_v53, %v3394_v11  ;;  %vm3834_vm9 = vweird.f32 %v6650_v8  ;;  %v7729_v36 = vld [vmem:[#allocation34_spill] sm:$0xff] }
 0x712   :  { %4210 = vst [vmem:[#allocation10 + $0x68] sm:$0xff] %v3796_v32  ;;  %v3800_v1 = vmul.f32 %v4394_v52, %v3799_v60  ;;  %vm3803_vm10 = vweird.f32 %v4394_v52  ;;  %4397 = vrcp.f32 %v6708_v23  ;;  %vm3839_vm11 = vcmp.eq.f32.partialorder %v3838_v54, 8.507059e+37  ;;  %vm3836_vm13 = vmor %vm3834_vm9, %vm3835_vm8 }
 0x713   :  { %v3833_v18 = vadd.f32 %v4392_v21, %v3832_v46  ;;  %v3841_v0 = vor.u32 1.1754944e-38, %v3840_v48  ;;  %vm3802_vm12 = vweird.f32 %v6652_v62  ;;  %vm3807_vm14 = vcmp.eq.f32.partialorder %v3806_v14, 8.507059e+37  ;;  %v7731_v46 = vld [vmem:[#allocation20_spill] sm:$0xff] }
 0x714   :  { %v3801_v51 = vadd.f32 %v4394_v52, %v3800_v1  ;;  %v3626_v15 = vmul.f32 %v3308_v16, %v7727_v34  ;;  %v3423_v26 = vmul.f32 %v3422_v17, %v6611_v47  ;;  %vm3804_vm15 = vmor %vm3802_vm12, %vm3803_vm10  ;;  %v3809_v8 = vor.u32 1.1754944e-38, %v3808_v19  ;;  %v7732_v16 = vld [vmem:[#allocation30_spill] sm:$0xff] }
 0x715   :  { %v3837_v11 = vsel %vm3836_vm13, %v4392_v21, %v3833_v18  ;;  %v3886_v43 = vand.u32 2147483647, %v6706_v12  ;;  %v3396_v45 = vmul.f32 0.5, %v3395_v58  ;;  %v7730_v21 = vand.u32 2147483648, %v6611_v47 }
 0x716   :  { %v3842_v39 = vsel %vm3839_vm11, %v3841_v0, %v3837_v11  ;;  %v3805_v32 = vsel %vm3804_vm15, %v4394_v52, %v3801_v51  ;;  %v6726_v54 = vmax.f32 %v3626_v15, 1e-12  ;;  %v3425_v62 = vsel %vm3424_vm6, %v6611_v47, %v3423_v26  ;;  %v4396_v48 = vpop.eup %4395  ;;  %v6748_v26 = vpop.xlane.xlu1 %3166 }
 0x717   :  { %v3843_v14 = vmul.f32 %v3842_v39, %v7728_v37  ;;  %v3844_v30 = vmul.f32 %v3842_v39, %v7729_v36  ;;  %v3810_v60 = vsel %vm3807_vm14, %v3809_v8, %v3805_v32  ;;  %v3428_v19 = vsel %vm3426_vm7, %v7730_v21, %v3425_v62 }
 0x718   :  { %v4398_v17 = vpop.eup %4397  ;;  %v3811_v52 = vmul.f32 %v3810_v60, %v7731_v46  ;;  %v3812_v58 = vmul.f32 %v3810_v60, %v7732_v16  ;;  %v3878_v1 = vmul.f32 %v4396_v48, %v6706_v12  ;;  %v3888_v18 = vand.u32 2147483648, %v6706_v12 }
 0x719   :  { %4215 = vst [vmem:[#allocation10 + $0x90] sm:$0xff] %v3843_v14  ;;  %vm3882_vm0 = vweird.f32 %v6706_v12  ;;  %v3846_v0 = vmul.f32 %v4398_v17, %v6708_v23  ;;  %4399 = vrcp.f32 %v6726_v54  ;;  %vm3400_vm1 = vcmp.eq.f32.partialorder %v6636_v27, inf }
 0x71a   :  { %4216 = vst [vmem:[#allocation10 + $0x98] sm:$0xff] %v3844_v30  ;;  %v3879_v47 = vsub.f32 1.0, %v3878_v1  ;;  %v3854_v51 = vand.u32 2147483647, %v6708_v23  ;;  %v3856_v34 = vand.u32 2147483648, %v6708_v23  ;;  %v3636_v15 = vmul.f32 %v3428_v19, %v6050_v50 }
 0x71b   :  { %4211 = vst [vmem:[#allocation10 + $0x70] sm:$0xff] %v3811_v52  ;;  %vm6750_vm2 = vcmp.eq.f32.partialorder %v3886_v43, 8.507059e+37  ;;  %v3847_v8 = vsub.f32 1.0, %v3846_v0  ;;  %vm3850_vm3 = vweird.f32 %v6708_v23  ;;  %v3397_v39 = vsub.f32 1.5, %v3396_v45 }
 0x71c   :  { %4212 = vst [vmem:[#allocation10 + $0x78] sm:$0xff] %v3812_v58  ;;  %v3880_v32 = vmul.f32 %v4396_v48, %v3879_v47  ;;  %vm3883_vm4 = vweird.f32 %v4396_v48  ;;  %v3889_v62 = vor.u32 1.1754944e-38, %v3888_v18  ;;  %v6755_v37 = vmax.f32 %v3636_v15, 1e-12 }
 0x71d   :  { %v3848_v14 = vmul.f32 %v4398_v17, %v3847_v8  ;;  %vm3851_vm5 = vweird.f32 %v4398_v17  ;;  %v3398_v50 = vmul.f32 %v6676_v53, %v3397_v39  ;;  %4401 = vrsqrt.f32 %v6748_v26  ;;  %vm3884_vm7 = vmor %vm3882_vm0, %vm3883_vm4 }
 0x71e   :  { %v3881_v43 = vadd.f32 %v4396_v48, %v3880_v32  ;;  %vm6759_vm6 = vcmp.eq.f32.partialorder %v3854_v51, 8.507059e+37  ;;  %v3857_v30 = vor.u32 1.1754944e-38, %v3856_v34  ;;  %4403 = vrcp.f32 %v6755_v37  ;;  %vm3852_vm9 = vmor %vm3850_vm3, %vm3851_vm5 }
 0x71f   :  { %v4400_v45 = vpop.eup %4399  ;;  %v3849_v60 = vadd.f32 %v4398_v17, %v3848_v14  ;;  %vm3770_vm8 = vweird.f32 %v6726_v54  ;;  %v3774_v21 = vand.u32 2147483647, %v6726_v54  ;;  %v3399_v53 = vmul.f32 %v3398_v50, %v6636_v27 }
 0x720   :  { %v3885_v19 = vsel %vm3884_vm7, %v4396_v48, %v3881_v43  ;;  %v3766_v46 = vmul.f32 %v4400_v45, %v6726_v54  ;;  %v3776_v52 = vand.u32 2147483648, %v6726_v54  ;;  %vm3402_vm10 = vcmp.eq.f32.partialorder %v6636_v27, 0.0 }
 0x721   :  { %v3890_v12 = vsel %vm6750_vm2, %v3889_v62, %v3885_v19  ;;  %v3853_v16 = vsel %vm3852_vm9, %v4398_v17, %v3849_v60  ;;  %v3401_v58 = vsel %vm3400_vm1, %v6636_v27, %v3399_v53  ;;  %v3403_v1 = vand.u32 2147483648, %v6636_v27  ;;  %v6810_v53 = vpop.xlane.xlu0 %3190  ;;  %v6812_v19 = vpop.xlane.xlu1 %3175 }
 0x722   :  { %v3891_v48 = vmul.f32 %v3890_v12, %v5646_v41  ;;  %v3892_v23 = vmul.f32 %v3890_v12, %v5650_v13  ;;  %v3858_v18 = vsel %vm6759_vm6, %v3857_v30, %v3853_v16  ;;  %v3767_v0 = vsub.f32 1.0, %v3766_v46 }
 0x723   :  { %v4402_v47 = vpop.eup %4401  ;;  %v3859_v51 = vmul.f32 %v3858_v18, %v5622_v56  ;;  %v3860_v34 = vmul.f32 %v3858_v18, %v5624_v25  ;;  %vm3771_vm11 = vweird.f32 %v4400_v45  ;;  %v3404_v17 = vsel %vm3402_vm10, %v3403_v1, %v3401_v58 }
 0x724   :  { %v4404_v15 = vpop.eup %4403  ;;  %4221 = vst [vmem:[#allocation10 + $0xc0] sm:$0xff] %v3891_v48  ;;  %v3768_v11 = vmul.f32 %v4400_v45, %v3767_v0  ;;  %v3634_v27 = vmul.f32 %v3404_v17, %v5955_v24  ;;  %v3334_v41 = vmul.f32 %v4402_v47, %v6748_v26  ;;  %v3047_v13 = vsub.f32 1.0, %v6666_v2  ;;  %vm3772_vm14 = vmor %vm3770_vm8, %vm3771_vm11 }
 0x725   :  { %4222 = vst [vmem:[#allocation10 + $0xc8] sm:$0xff] %v3892_v23  ;;  %vm6789_vm12 = vcmp.eq.f32.partialorder %v3774_v21, 8.507059e+37  ;;  %v3777_v39 = vor.u32 1.1754944e-38, %v3776_v52  ;;  %v3926_v56 = vmul.f32 %v4404_v15, %v6755_v37  ;;  %vm3930_vm13 = vweird.f32 %v6755_v37  ;;  %v7740_v52 = vld [vmem:[#allocation23_spill] sm:$0xff] }
 0x726   :  { %4217 = vst [vmem:[#allocation10 + $0xa0] sm:$0xff] %v3859_v51  ;;  %v3769_v25 = vadd.f32 %v4400_v45, %v3768_v11  ;;  %v6795_v32 = vmax.f32 %v3634_v27, 1e-12  ;;  %v3335_v62 = vmul.f32 %v4402_v47, %v3334_v41  ;;  %v3048_v24 = vmul.f32 %v6626_v20, %v3047_v13 }
 0x727   :  { %4218 = vst [vmem:[#allocation10 + $0xa8] sm:$0xff] %v3860_v34  ;;  %v3927_v2 = vsub.f32 1.0, %v3926_v56  ;;  %vm3931_vm15 = vweird.f32 %v4404_v15  ;;  %v3934_v14 = vand.u32 2147483647, %v6755_v37  ;;  %v3936_v50 = vand.u32 2147483648, %v6755_v37 }
 0x728   :  { %v3773_v43 = vsel %vm3772_vm14, %v4400_v45, %v3769_v25  ;;  %4405 = vrcp.f32 %v6795_v32  ;;  %vm3051_vm0 = vweird.f32 %v6626_v20  ;;  %v3056_v36 = vand.u32 2147483648, %v6599_v40  ;;  %v7739_v45 = vld [vmem:[#allocation18_spill] sm:$0xff]  ;;  %vm3932_vm6 = vmor %vm3930_vm13, %vm3931_vm15 }
 0x729   :  { %v3778_v30 = vsel %vm6789_vm12, %v3777_v39, %v3773_v43  ;;  %v3928_v60 = vmul.f32 %v4404_v15, %v3927_v2  ;;  %v3336_v21 = vmul.f32 0.5, %v3335_v62  ;;  %vm3340_vm1 = vcmp.eq.f32.partialorder %v6748_v26, inf  ;;  %v7745_v62 = vld [vmem:[#allocation72_spill] sm:$0xff] }
 0x72a   :  { %v3054_v54 = vand.u32 2147483647, %v6599_v40  ;;  %v3779_v46 = vmul.f32 %v3778_v30, %v7739_v45  ;;  %v3780_v12 = vmul.f32 %v3778_v30, %v7740_v52  ;;  %vm3342_vm2 = vcmp.eq.f32.partialorder %v6748_v26, 0.0 }
 0x72b   :  { %v3049_v16 = vadd.f32 %v6626_v20, %v3048_v24  ;;  %vm3050_vm3 = vweird.f32 %v6599_v40  ;;  %v3929_v58 = vadd.f32 %v4404_v15, %v3928_v60  ;;  %vm6819_vm4 = vcmp.eq.f32.partialorder %v3934_v14, 8.507059e+37 }
 0x72c   :  { %v3937_v48 = vor.u32 1.1754944e-38, %v3936_v50  ;;  %v3337_v23 = vsub.f32 1.5, %v3336_v21  ;;  %vm6825_vm5 = vmor %vm3050_vm3, %vm3051_vm0  ;;  %4207 = vst [vmem:[#allocation10 + $0x50] sm:$0xff] %v3779_v46  ;;  %v3343_v0 = vand.u32 2147483648, %v6748_v26  ;;  %v3057_v34 = vor.u32 1.1754944e-38, %v3056_v36  ;;  %v7746_v46 = vld [vmem:[#allocation62_spill] sm:$0xff] }
 0x72d   :  { %v3053_v51 = vsel %vm6825_vm5, %v6626_v20, %v3049_v16  ;;  %4407 = vrsqrt.f32 %v6810_v53  ;;  %4208 = vst [vmem:[#allocation10 + $0x58] sm:$0xff] %v3780_v12  ;;  %v3933_v17 = vsel %vm3932_vm6, %v4404_v15, %v3929_v58  ;;  %vm3055_vm7 = vcmp.eq.f32.partialorder %v3054_v54, 8.507059e+37  ;;  %v6860_v54 = vpop.xlane.xlu1 %3184 }
 0x72e   :  { %v3338_v11 = vmul.f32 %v4402_v47, %v3337_v23  ;;  %v3062_v27 = vmul.f32 %v6655_v63, %v6606_v59  ;;  %v4406_v41 = vpop.eup %4405  ;;  %v3938_v37 = vsel %vm6819_vm4, %v3937_v48, %v3933_v17  ;;  %vm3898_vm8 = vweird.f32 %v6795_v32 }
 0x72f   :  { %v3058_v13 = vsel %vm3055_vm7, %v3057_v34, %v3053_v51  ;;  %4409 = vrsqrt.f32 %v6812_v19  ;;  %v3939_v20 = vmul.f32 %v3938_v37, %v5682_v22  ;;  %v3940_v8 = vmul.f32 %v3938_v37, %v5684_v42 }
 0x730   :  { %v3894_v15 = vmul.f32 %v4406_v41, %v6795_v32  ;;  %v3902_v47 = vand.u32 2147483647, %v6795_v32  ;;  %v3904_v39 = vand.u32 2147483648, %v6795_v32  ;;  %v3339_v56 = vmul.f32 %v3338_v11, %v6748_v26 }
 0x731   :  { %v3059_v25 = vmul.f32 %v3058_v13, %v5900_v3  ;;  %v3060_v24 = vmul.f32 %v3058_v13, %v7745_v62  ;;  %4227 = vst [vmem:[#allocation10 + $0xf0] sm:$0xff] %v3939_v20  ;;  %vm3899_vm9 = vweird.f32 %v4406_v41  ;;  %v3063_v14 = vsub.f32 1.0, %v3062_v27 }
 0x732   :  { %v3895_v2 = vsub.f32 1.0, %v3894_v15  ;;  %vm3066_vm10 = vweird.f32 %v6606_v59  ;;  %4228 = vst [vmem:[#allocation10 + $0xf8] sm:$0xff] %v3940_v8  ;;  %v3341_v42 = vsel %vm3340_vm1, %v6748_v26, %v3339_v56  ;;  %vm3067_vm11 = vweird.f32 %v6655_v63  ;;  %vm3900_vm12 = vmor %vm3898_vm8, %vm3899_vm9  ;;  %v6887_v15 = vpop.xlane.xlu2 %3196 }
 0x733   :  { %v4408_v22 = vpop.eup %4407  ;;  %v3137_v50 = vmul.f32 %v3059_v25, %v3059_v25  ;;  %v3138_v43 = vmul.f32 %v3060_v24, %v3060_v24  ;;  %v3344_v30 = vsel %vm3342_vm2, %v3343_v0, %v3341_v42  ;;  %v3064_v21 = vmul.f32 %v6655_v63, %v3063_v14  ;;  %vm6876_vm14 = vmor %vm3066_vm10, %vm3067_vm11 }
 0x734   :  { %v3896_v36 = vmul.f32 %v4406_v41, %v3895_v2  ;;  %v3430_v60 = vmul.f32 %v4408_v22, %v6810_v53  ;;  %v3629_v52 = vmul.f32 %v3344_v30, %v7746_v46  ;;  %v3070_v16 = vand.u32 2147483647, %v6606_v59  ;;  %v6904_v46 = vpop.xlane.xlu0 %3199 }
 0x735   :  { %v4410_v45 = vpop.eup %4409  ;;  %v3231_v12 = vadd.f32 %v3138_v43, %v3137_v50  ;;  %v3072_v58 = vand.u32 2147483648, %v6606_v59  ;;  %v3065_v23 = vadd.f32 %v6655_v63, %v3064_v21  ;;  %vm3903_vm13 = vcmp.eq.f32.partialorder %v3902_v47, 8.507059e+37 }
 0x736   :  { %v3897_v1 = vadd.f32 %v4406_v41, %v3896_v36  ;;  %v3431_v26 = vmul.f32 %v4408_v22, %v3430_v60  ;;  %v3370_v48 = vmul.f32 %v4410_v45, %v6812_v19  ;;  %v3905_v18 = vor.u32 1.1754944e-38, %v3904_v39 }
 0x737   :  { %v6870_v0 = vmax.f32 %v3629_v52, 1e-12  ;;  %3232 = vadd.xlane.f32.xlu2 %v3231_v12  ;;  %4411 = vrsqrt.f32 %v6860_v54  ;;  %v3069_v11 = vsel %vm6876_vm14, %v6655_v63, %v3065_v23  ;;  %v3073_v37 = vor.u32 1.1754944e-38, %v3072_v58 }
 0x738   :  { %v3901_v32 = vsel %vm3900_vm12, %v4406_v41, %v3897_v1  ;;  %v3432_v34 = vmul.f32 0.5, %v3431_v26  ;;  %v3371_v17 = vmul.f32 %v4410_v45, %v3370_v48  ;;  %vm3071_vm15 = vcmp.eq.f32.partialorder %v3070_v16, 8.507059e+37 }
 0x739   :  { %v3906_v27 = vsel %vm3903_vm13, %v3905_v18, %v3901_v32  ;;  %4413 = vrcp.f32 %v6870_v0  ;;  %v3074_v41 = vsel %vm3071_vm15, %v3073_v37, %v3069_v11  ;;  %vm3436_vm0 = vcmp.eq.f32.partialorder %v6810_v53, inf }
 0x73a   :  { %v3907_v13 = vmul.f32 %v3906_v27, %v5656_v5  ;;  %v3908_v20 = vmul.f32 %v3906_v27, %v5663_v28  ;;  %v3433_v8 = vsub.f32 1.5, %v3432_v34  ;;  %v3372_v47 = vmul.f32 0.5, %v3371_v17 }
 0x73b   :  { %v3075_v56 = vmul.f32 %v3074_v41, %v5902_v9  ;;  %v3076_v63 = vmul.f32 %v3074_v41, %v6079_v49  ;;  %vm3438_vm1 = vcmp.eq.f32.partialorder %v6810_v53, 0.0  ;;  %4415 = vrsqrt.f32 %v6887_v15 }
 0x73c   :  { %4223 = vst [vmem:[#allocation10 + $0xd0] sm:$0xff] %v3907_v13  ;;  %v3434_v39 = vmul.f32 %v4408_v22, %v3433_v8  ;;  %v3373_v5 = vsub.f32 1.5, %v3372_v47  ;;  %v6896_v22 = vpop.xlane.xlu1 %3193  ;;  %v3439_v50 = vand.u32 2147483648, %v6810_v53  ;;  %vm3376_vm2 = vcmp.eq.f32.partialorder %v6812_v19, inf }
 0x73d   :  { %v4412_v25 = vpop.eup %4411  ;;  %4224 = vst [vmem:[#allocation10 + $0xd8] sm:$0xff] %v3908_v20  ;;  %v3139_v24 = vmul.f32 %v3075_v56, %v3075_v56  ;;  %v3140_v2 = vmul.f32 %v3076_v63, %v3076_v63  ;;  %vm3378_vm3 = vcmp.eq.f32.partialorder %v6812_v19, 0.0  ;;  %v3379_v60 = vand.u32 2147483648, %v6812_v19  ;;  %v7750_v63 = vld [vmem:[#allocation32_spill] sm:$0xff] }
 0x73e   :  { %v3435_v28 = vmul.f32 %v3434_v39, %v6810_v53  ;;  %v3406_v14 = vmul.f32 %v4412_v25, %v6860_v54  ;;  %v3374_v43 = vmul.f32 %v4410_v45, %v3373_v5  ;;  %4417 = vrsqrt.f32 %v6896_v22 }
 0x73f   :  { %v4414_v42 = vpop.eup %4413  ;;  %v3234_v21 = vadd.f32 %v3140_v2, %v3139_v24  ;;  %v3822_v58 = vand.u32 2147483647, %v6870_v0  ;;  %v3824_v1 = vand.u32 2147483648, %v6870_v0  ;;  %4419 = vrsqrt.f32 %v6904_v46 }
 0x740   :  { %v3814_v36 = vmul.f32 %v4414_v42, %v6870_v0  ;;  %v3437_v30 = vsel %vm3436_vm0, %v6810_v53, %v3435_v28  ;;  %v3375_v12 = vmul.f32 %v3374_v43, %v6812_v19  ;;  %v3407_v16 = vmul.f32 %v4412_v25, %v3406_v14 }
 0x741   :  { %v3440_v52 = vsel %vm3438_vm1, %v3439_v50, %v3437_v30  ;;  %3235 = vadd.xlane.f32.xlu0 %v3234_v21  ;;  %v4416_v48 = vpop.eup %4415  ;;  %vm3819_vm4 = vweird.f32 %v4414_v42  ;;  %vm3818_vm5 = vweird.f32 %v6870_v0  ;;  %v3825_v37 = vor.u32 1.1754944e-38, %v3824_v1  ;;  %v7749_v0 = vld [vmem:[#allocation31_spill] sm:$0xff] }
 0x742   :  { %v3815_v45 = vsub.f32 1.0, %v3814_v36  ;;  %v3637_v26 = vmul.f32 %v3440_v52, %v6086_v10  ;;  %v3377_v53 = vsel %vm3376_vm2, %v6812_v19, %v3375_v12  ;;  %v3408_v23 = vmul.f32 0.5, %v3407_v16  ;;  %vm3820_vm6 = vmor %vm3818_vm5, %vm3819_vm4 }
 0x743   :  { %v3380_v32 = vsel %vm3378_vm3, %v3379_v60, %v3377_v53  ;;  %v3454_v34 = vmul.f32 %v4416_v48, %v6887_v15  ;;  %vm3823_vm7 = vcmp.eq.f32.partialorder %v3822_v58, 8.507059e+37  ;;  %vm3412_vm8 = vcmp.eq.f32.partialorder %v6860_v54, inf }
 0x744   :  { %v3816_v18 = vmul.f32 %v4414_v42, %v3815_v45  ;;  %v6917_v51 = vmax.f32 %v3637_v26, 1e-12  ;;  %v3632_v10 = vmul.f32 %v3380_v32, %v5953_v6  ;;  %v3409_v17 = vsub.f32 1.5, %v3408_v23  ;;  %v4418_v27 = vpop.eup %4417  ;;  %v6946_v30 = vpop.xlane.xlu1 %3202 }
 0x745   :  { %v3455_v8 = vmul.f32 %v4416_v48, %v3454_v34  ;;  %v3442_v19 = vmul.f32 %v4418_v27, %v6896_v22  ;;  %v6928_v41 = vpop.eup %4419  ;;  %vm3414_vm9 = vcmp.eq.f32.partialorder %v6860_v54, 0.0  ;;  %vm3460_vm10 = vcmp.eq.f32.partialorder %v6887_v15, inf  ;;  %v6964_v32 = vpop.xlane.xlu2 %3205 }
 0x746   :  { %v3817_v11 = vadd.f32 %v4414_v42, %v3816_v18  ;;  %4421 = vrcp.f32 %v6917_v51  ;;  %v6925_v13 = vmax.f32 %v3632_v10, 1e-12  ;;  %v3410_v20 = vmul.f32 %v4412_v25, %v3409_v17 }
 0x747   :  { %v3950_v39 = vand.u32 2147483647, %v6917_v51  ;;  %v3415_v25 = vand.u32 2147483648, %v6860_v54  ;;  %v3456_v24 = vmul.f32 0.5, %v3455_v8  ;;  %v3443_v2 = vmul.f32 %v4418_v27, %v3442_v19 }
 0x748   :  { %v3821_v47 = vsel %vm3820_vm6, %v4414_v42, %v3817_v11  ;;  %4423 = vrcp.f32 %v6925_v13  ;;  %v3411_v28 = vmul.f32 %v3410_v20, %v6860_v54  ;;  %v3466_v14 = vmul.f32 %v6928_v41, %v6904_v46 }
 0x749   :  { %v3826_v6 = vsel %vm3823_vm7, %v3825_v37, %v3821_v47  ;;  %vm3946_vm11 = vweird.f32 %v6917_v51  ;;  %v3952_v50 = vand.u32 2147483648, %v6917_v51  ;;  %vm3462_vm12 = vcmp.eq.f32.partialorder %v6887_v15, 0.0 }
 0x74a   :  { %v3827_v56 = vmul.f32 %v3826_v6, %v7749_v0  ;;  %v3828_v5 = vmul.f32 %v3826_v6, %v7750_v63  ;;  %v3463_v43 = vand.u32 2147483648, %v6887_v15  ;;  %v3451_v36 = vand.u32 2147483648, %v6896_v22 }
 0x74b   :  { %vm6949_vm13 = vcmp.eq.f32.partialorder %v3950_v39, 8.507059e+37  ;;  %v3413_v52 = vsel %vm3412_vm8, %v6860_v54, %v3411_v28  ;;  %v3457_v12 = vsub.f32 1.5, %v3456_v24  ;;  %v3870_v16 = vand.u32 2147483647, %v6925_v13 }
 0x74c   :  { %v4422_v42 = vpop.eup %4421  ;;  %4213 = vst [vmem:[#allocation10 + $0x80] sm:$0xff] %v3827_v56  ;;  %v3416_v45 = vsel %vm3414_vm9, %v3415_v25, %v3413_v52  ;;  %v3444_v58 = vmul.f32 0.5, %v3443_v2  ;;  %vm3448_vm14 = vcmp.eq.f32.partialorder %v6896_v22, inf  ;;  %v3467_v1 = vmul.f32 %v6928_v41, %v3466_v14 }
 0x74d   :  { %4214 = vst [vmem:[#allocation10 + $0x88] sm:$0xff] %v3828_v5  ;;  %v3942_v60 = vmul.f32 %v4422_v42, %v6917_v51  ;;  %v3635_v23 = vmul.f32 %v3416_v45, %v6005_v57  ;;  %v3458_v18 = vmul.f32 %v4416_v48, %v3457_v12  ;;  %vm3450_vm15 = vcmp.eq.f32.partialorder %v6896_v22, 0.0 }
 0x74e   :  { %v4424_v26 = vpop.eup %4423  ;;  %4425 = vrsqrt.f32 %v6946_v30  ;;  %vm3947_vm0 = vweird.f32 %v4422_v42  ;;  %v3445_v34 = vsub.f32 1.5, %v3444_v58  ;;  %v3468_v10 = vmul.f32 0.5, %v3467_v1 }
 0x74f   :  { %v3943_v53 = vsub.f32 1.0, %v3942_v60  ;;  %v3862_v54 = vmul.f32 %v4424_v26, %v6925_v13  ;;  %vm3472_vm1 = vcmp.eq.f32.partialorder %v6904_v46, inf  ;;  %v6968_v11 = vmax.f32 %v3635_v23, 1e-12  ;;  %vm3948_vm3 = vmor %vm3946_vm11, %vm3947_vm0 }
 0x750   :  { %v3459_v37 = vmul.f32 %v3458_v18, %v6887_v15  ;;  %4427 = vrsqrt.f32 %v6964_v32  ;;  %v3872_v48 = vand.u32 2147483648, %v6925_v13  ;;  %v3446_v20 = vmul.f32 %v4418_v27, %v3445_v34  ;;  %v7756_v18 = vld [vmem:[#allocation39_spill] sm:$0xff] }
 0x751   :  { %v3944_v17 = vmul.f32 %v4422_v42, %v3943_v53  ;;  %v3863_v57 = vsub.f32 1.0, %v3862_v54  ;;  %v3469_v8 = vsub.f32 1.5, %v3468_v10  ;;  %v3953_v19 = vor.u32 1.1754944e-38, %v3952_v50 }
 0x752   :  { %vm3866_vm2 = vweird.f32 %v6925_v13  ;;  %4429 = vrcp.f32 %v6968_v11  ;;  %vm3867_vm4 = vweird.f32 %v4424_v26  ;;  %v3461_v39 = vsel %vm3460_vm10, %v6887_v15, %v3459_v37 }
 0x753   :  { %v3945_v47 = vadd.f32 %v4422_v42, %v3944_v17  ;;  %v3864_v6 = vmul.f32 %v4424_v26, %v3863_v57  ;;  %v3447_v0 = vmul.f32 %v3446_v20, %v6896_v22  ;;  %vm6984_vm5 = vcmp.eq.f32.partialorder %v3870_v16, 8.507059e+37  ;;  %vm3868_vm6 = vmor %vm3866_vm2, %vm3867_vm4 }
 0x754   :  { %v6982_v27 = vpop.eup %4425  ;;  %v3464_v5 = vsel %vm3462_vm12, %v3463_v43, %v3461_v39  ;;  %v3470_v51 = vmul.f32 %v6928_v41, %v3469_v8  ;;  %v3873_v24 = vor.u32 1.1754944e-38, %v3872_v48  ;;  %v3475_v58 = vand.u32 2147483648, %v6904_v46 }
 0x755   :  { %v3949_v56 = vsel %vm3948_vm3, %v4422_v42, %v3945_v47  ;;  %v3865_v28 = vadd.f32 %v4424_v26, %v3864_v6  ;;  %v3639_v2 = vmul.f32 %v3464_v5, %v6166_v61  ;;  %v3449_v15 = vsel %vm3448_vm14, %v6896_v22, %v3447_v0 }
 0x756   :  { %v3954_v25 = vsel %vm6949_vm13, %v3953_v19, %v3949_v56  ;;  %v6994_v14 = vpop.eup %4427  ;;  %v3471_v41 = vmul.f32 %v3470_v51, %v6904_v46  ;;  %v3452_v61 = vsel %vm3450_vm15, %v3451_v36, %v3449_v15  ;;  %v7755_v36 = vld [vmem:[#allocation35_spill] sm:$0xff]  ;;  %v3918_v1 = vand.u32 2147483647, %v6968_v11 }
 0x757   :  { %v3955_v42 = vmul.f32 %v3954_v25, %v5697_v4  ;;  %v3956_v50 = vmul.f32 %v3954_v25, %v7650_v38  ;;  %v3869_v43 = vsel %vm3868_vm6, %v4424_v26, %v3865_v28  ;;  %v7005_v60 = vmax.f32 %v3639_v2, 1e-12  ;;  %v7053_v28 = vpop.xlane.xlu0 %3208  ;;  %v7759_v2 = vld [vmem:[#allocation36_spill] sm:$0xff] }
 0x758   :  { %v3478_v4 = vmul.f32 %v6982_v27, %v6946_v30  ;;  %v4430_v38 = vpop.eup %4429  ;;  %v3874_v13 = vsel %vm6984_vm5, %v3873_v24, %v3869_v43  ;;  %v3638_v21 = vmul.f32 %v3452_v61, %v6128_v29  ;;  %v3473_v52 = vsel %vm3472_vm1, %v6904_v46, %v3471_v41 }
 0x759   :  { %4229 = vst [vmem:[#allocation10 + $0x100] sm:$0xff] %v3955_v42  ;;  %v3490_v12 = vmul.f32 %v6994_v14, %v6964_v32  ;;  %v3875_v22 = vmul.f32 %v3874_v13, %v5634_v7  ;;  %v3876_v16 = vmul.f32 %v3874_v13, %v7755_v36  ;;  %v3910_v45 = vmul.f32 %v4430_v38, %v6968_v11 }
 0x75a   :  { %4230 = vst [vmem:[#allocation10 + $0x108] sm:$0xff] %v3956_v50  ;;  %4431 = vrcp.f32 %v7005_v60  ;;  %vm3474_vm7 = vcmp.eq.f32.partialorder %v6904_v46, 0.0  ;;  %v7026_v26 = vmax.f32 %v3638_v21, 1e-12  ;;  %v3479_v23 = vmul.f32 %v6982_v27, %v3478_v4  ;;  %v7760_v50 = vld [vmem:[#allocation37_spill] sm:$0xff] }
 0x75b   :  { %4219 = vst [vmem:[#allocation10 + $0xb0] sm:$0xff] %v3875_v22  ;;  %v3911_v29 = vsub.f32 1.0, %v3910_v45  ;;  %v3476_v53 = vsel %vm3474_vm7, %v3475_v58, %v3473_v52  ;;  %vm3915_vm8 = vweird.f32 %v4430_v38  ;;  %v3920_v7 = vand.u32 2147483648, %v6968_v11 }
 0x75c   :  { %4220 = vst [vmem:[#allocation10 + $0xb8] sm:$0xff] %v3876_v16  ;;  %v3640_v54 = vmul.f32 %v3476_v53, %v7756_v18  ;;  %v3491_v34 = vmul.f32 %v6994_v14, %v3490_v12  ;;  %v3982_v17 = vand.u32 2147483647, %v7005_v60  ;;  %v3984_v46 = vand.u32 2147483648, %v7005_v60  ;;  %v7067_v12 = vpop.xlane.xlu1 %3211 }
 0x75d   :  { %v3912_v10 = vmul.f32 %v4430_v38, %v3911_v29  ;;  %4433 = vrcp.f32 %v7026_v26  ;;  %v3480_v57 = vmul.f32 0.5, %v3479_v23  ;;  %v3487_v48 = vand.u32 2147483648, %v6946_v30 }
 0x75e   :  { %v7035_v37 = vmax.f32 %v3640_v54, 1e-12  ;;  %v3492_v20 = vmul.f32 0.5, %v3491_v34  ;;  %vm3914_vm9 = vweird.f32 %v6968_v11  ;;  %vm3919_vm10 = vcmp.eq.f32.partialorder %v3918_v1, 8.507059e+37 }
 0x75f   :  { %v3913_v8 = vadd.f32 %v4430_v38, %v3912_v10  ;;  %vm3484_vm11 = vcmp.eq.f32.partialorder %v6946_v30, inf  ;;  %vm3496_vm12 = vcmp.eq.f32.partialorder %v6964_v32, inf  ;;  %vm3916_vm13 = vmor %vm3914_vm9, %vm3915_vm8  ;;  %v3921_v19 = vor.u32 1.1754944e-38, %v3920_v7 }
 0x760   :  { %v4432_v47 = vpop.eup %4431  ;;  %vm3978_vm14 = vweird.f32 %v7005_v60  ;;  %v3966_v6 = vand.u32 2147483647, %v7026_v26  ;;  %4435 = vrcp.f32 %v7035_v37  ;;  %vm3486_vm15 = vcmp.eq.f32.partialorder %v6946_v30, 0.0 }
 0x761   :  { %v3917_v39 = vsel %vm3916_vm13, %v4430_v38, %v3913_v8  ;;  %v3974_v11 = vmul.f32 %v4432_v47, %v7005_v60  ;;  %vm7047_vm0 = vcmp.eq.f32.partialorder %v3982_v17, 8.507059e+37  ;;  %v3985_v56 = vor.u32 1.1754944e-38, %v3984_v46  ;;  %v7763_v8 = vld [vmem:[#allocation44_spill] sm:$0xff] }
 0x762   :  { %v3968_v63 = vand.u32 2147483648, %v7026_v26  ;;  %v3922_v5 = vsel %vm3919_vm10, %v3921_v19, %v3917_v39  ;;  %vm3962_vm1 = vweird.f32 %v7026_v26  ;;  %v3481_v51 = vsub.f32 1.5, %v3480_v57  ;;  %v7091_v57 = vpop.xlane.xlu2 %3214  ;;  %v7764_v19 = vld [vmem:[#allocation45_spill] sm:$0xff] }
 0x763   :  { %v3493_v25 = vsub.f32 1.5, %v3492_v20  ;;  %v4434_v24 = vpop.eup %4433  ;;  %v3923_v42 = vmul.f32 %v3922_v5, %v7759_v2  ;;  %v3924_v15 = vmul.f32 %v3922_v5, %v7760_v50  ;;  %v3975_v41 = vsub.f32 1.0, %v3974_v11  ;;  %v7767_v2 = vld [vmem:[#allocation46_spill] sm:$0xff]  ;;  %v7768_v50 = vld [vmem:[#allocation47_spill] sm:$0xff] }
 0x764   :  { %vm3498_vm2 = vcmp.eq.f32.partialorder %v6964_v32, 0.0  ;;  %v3958_v43 = vmul.f32 %v4434_v24, %v7026_v26  ;;  %vm7059_vm3 = vcmp.eq.f32.partialorder %v3966_v6, 8.507059e+37  ;;  %v3482_v4 = vmul.f32 %v6982_v27, %v3481_v51  ;;  %v7765_v26 = vld [vmem:[#allocation41_spill] sm:$0xff] }
 0x765   :  { %v3494_v38 = vmul.f32 %v6994_v14, %v3493_v25  ;;  %v3499_v13 = vand.u32 2147483648, %v6964_v32  ;;  %4225 = vst [vmem:[#allocation10 + $0xe0] sm:$0xff] %v3923_v42  ;;  %v3976_v21 = vmul.f32 %v4432_v47, %v3975_v41  ;;  %vm3979_vm4 = vweird.f32 %v4432_v47 }
 0x766   :  { %v3969_v52 = vor.u32 1.1754944e-38, %v3968_v63  ;;  %4437 = vrsqrt.f32 %v7053_v28  ;;  %v4436_v22 = vpop.eup %4435  ;;  %4226 = vst [vmem:[#allocation10 + $0xe8] sm:$0xff] %v3924_v15  ;;  %v3959_v36 = vsub.f32 1.0, %v3958_v43  ;;  %v3998_v16 = vand.u32 2147483647, %v7035_v37  ;;  %vm3980_vm6 = vmor %vm3978_vm14, %vm3979_vm4  ;;  %v7766_v63 = vld [vmem:[#allocation42_spill] sm:$0xff] }
 0x767   :  { %v3483_v45 = vmul.f32 %v3482_v4, %v6946_v30  ;;  %v3495_v27 = vmul.f32 %v3494_v38, %v6964_v32  ;;  %v3977_v14 = vadd.f32 %v4432_v47, %v3976_v21  ;;  %vm3963_vm5 = vweird.f32 %v4434_v24 }
 0x768   :  { %v3990_v58 = vmul.f32 %v4436_v22, %v7035_v37  ;;  %v4000_v1 = vand.u32 2147483648, %v7035_v37  ;;  %v3960_v29 = vmul.f32 %v4434_v24, %v3959_v36  ;;  %4439 = vrsqrt.f32 %v7067_v12  ;;  %vm3964_vm7 = vmor %vm3962_vm1, %vm3963_vm5 }
 0x769   :  { %v3485_v53 = vsel %vm3484_vm11, %v6946_v30, %v3483_v45  ;;  %v3497_v23 = vsel %vm3496_vm12, %v6964_v32, %v3495_v27  ;;  %v3981_v7 = vsel %vm3980_vm6, %v4432_v47, %v3977_v14  ;;  %vm3995_vm8 = vweird.f32 %v4436_v22 }
 0x76a   :  { %v3991_v18 = vsub.f32 1.0, %v3990_v58  ;;  %v3488_v54 = vsel %vm3486_vm15, %v3487_v48, %v3485_v53  ;;  %v3500_v60 = vsel %vm3498_vm2, %v3499_v13, %v3497_v23  ;;  %v3986_v34 = vsel %vm7047_vm0, %v3985_v56, %v3981_v7  ;;  %v7135_v53 = vpop.xlane.xlu1 %3220 }
 0x76b   :  { %v3961_v10 = vadd.f32 %v4434_v24, %v3960_v29  ;;  %v3641_v17 = vmul.f32 %v3488_v54, %v6214_v35  ;;  %v3642_v46 = vmul.f32 %v3500_v60, %v6276_v33  ;;  %v3987_v47 = vmul.f32 %v3986_v34, %v7763_v8 }
 0x76c   :  { %v7093_v20 = vpop.eup %4437  ;;  %v3988_v30 = vmul.f32 %v3986_v34, %v7764_v19  ;;  %v3992_v32 = vmul.f32 %v4436_v22, %v3991_v18  ;;  %vm3994_vm9 = vweird.f32 %v7035_v37  ;;  %v4001_v11 = vor.u32 1.1754944e-38, %v4000_v1 }
 0x76d   :  { %v3965_v48 = vsel %vm3964_vm7, %v4434_v24, %v3961_v10  ;;  %v7101_v35 = vmax.f32 %v3641_v17, 1e-12  ;;  %v7103_v33 = vmax.f32 %v3642_v46, 1e-12  ;;  %4233 = vst [vmem:[#allocation10 + $0x120] sm:$0xff] %v3987_v47  ;;  %4441 = vrsqrt.f32 %v7091_v57  ;;  %vm3996_vm10 = vmor %vm3994_vm9, %vm3995_vm8  ;;  %v7114_v24 = vpop.xlane.xlu0 %3217 }
 0x76e   :  { %v3970_v6 = vsel %vm7059_vm3, %v3969_v52, %v3965_v48  ;;  %v3993_v39 = vadd.f32 %v4436_v22, %v3992_v32  ;;  %v4440_v0 = vpop.eup %4439  ;;  %4234 = vst [vmem:[#allocation10 + $0x128] sm:$0xff] %v3988_v30  ;;  %v3502_v37 = vmul.f32 %v7093_v20, %v7053_v28  ;;  %vm3999_vm11 = vcmp.eq.f32.partialorder %v3998_v16, 8.507059e+37 }
 0x76f   :  { %v3971_v56 = vmul.f32 %v3970_v6, %v7765_v26  ;;  %v3972_v5 = vmul.f32 %v3970_v6, %v7766_v63  ;;  %4443 = vrcp.f32 %v7101_v35  ;;  %v3514_v43 = vmul.f32 %v4440_v0, %v7067_v12 }
 0x770   :  { %v3997_v51 = vsel %vm3996_vm10, %v4436_v22, %v3993_v39  ;;  %4445 = vrcp.f32 %v7103_v33  ;;  %v3503_v41 = vmul.f32 %v7093_v20, %v3502_v37  ;;  %v4014_v4 = vand.u32 2147483647, %v7101_v35 }
 0x771   :  { %4231 = vst [vmem:[#allocation10 + $0x110] sm:$0xff] %v3971_v56  ;;  %v4002_v25 = vsel %vm3999_vm11, %v4001_v11, %v3997_v51  ;;  %vm3508_vm12 = vcmp.eq.f32.partialorder %v7053_v28, inf  ;;  %v3511_v38 = vand.u32 2147483648, %v7053_v28  ;;  %4447 = vrsqrt.f32 %v7114_v24 }
 0x772   :  { %4232 = vst [vmem:[#allocation10 + $0x118] sm:$0xff] %v3972_v5  ;;  %v4003_v42 = vmul.f32 %v4002_v25, %v7767_v2  ;;  %v4004_v15 = vmul.f32 %v4002_v25, %v7768_v50  ;;  %v3504_v21 = vmul.f32 0.5, %v3503_v41  ;;  %vm3510_vm13 = vcmp.eq.f32.partialorder %v7053_v28, 0.0 }
 0x773   :  { %v4442_v61 = vpop.eup %4441  ;;  %v3515_v52 = vmul.f32 %v4440_v0, %v3514_v43  ;;  %v3523_v22 = vand.u32 2147483648, %v7067_v12  ;;  %vm4010_vm14 = vweird.f32 %v7101_v35  ;;  %v4016_v27 = vand.u32 2147483648, %v7101_v35  ;;  %v7774_v43 = vld [vmem:[#allocation49_spill] sm:$0xff] }
 0x774   :  { %4235 = vst [vmem:[#allocation10 + $0x130] sm:$0xff] %v4003_v42  ;;  %v3526_v36 = vmul.f32 %v4442_v61, %v7091_v57  ;;  %vm4026_vm15 = vweird.f32 %v7103_v33  ;;  %vm3520_vm0 = vcmp.eq.f32.partialorder %v7067_v12, inf  ;;  %v4030_v58 = vand.u32 2147483647, %v7103_v33 }
 0x775   :  { %v4444_v13 = vpop.eup %4443  ;;  %4236 = vst [vmem:[#allocation10 + $0x138] sm:$0xff] %v4004_v15  ;;  %v3505_v1 = vsub.f32 1.5, %v3504_v21  ;;  %v3516_v29 = vmul.f32 0.5, %v3515_v52  ;;  %vm3522_vm1 = vcmp.eq.f32.partialorder %v7067_v12, 0.0  ;;  %vm7137_vm2 = vcmp.eq.f32.partialorder %v4014_v4, 8.507059e+37  ;;  %v7167_v15 = vpop.xlane.xlu2 %3223  ;;  %v7775_v21 = vld [vmem:[#allocation38_spill] sm:$0xff] }
 0x776   :  { %v4446_v16 = vpop.eup %4445  ;;  %v4006_v45 = vmul.f32 %v4444_v13, %v7101_v35  ;;  %v4032_v18 = vand.u32 2147483648, %v7103_v33  ;;  %v3527_v54 = vmul.f32 %v4442_v61, %v3526_v36  ;;  %4449 = vrsqrt.f32 %v7135_v53 }
 0x777   :  { %v4022_v14 = vmul.f32 %v4446_v16, %v7103_v33  ;;  %v3506_v34 = vmul.f32 %v7093_v20, %v3505_v1  ;;  %v3517_v10 = vsub.f32 1.5, %v3516_v29  ;;  %v4448_v17 = vpop.eup %4447  ;;  %vm4011_vm3 = vweird.f32 %v4444_v13  ;;  %v7773_v33 = vld [vmem:[#allocation48_spill] sm:$0xff] }
 0x778   :  { %v4007_v23 = vsub.f32 1.0, %v4006_v45  ;;  %vm4027_vm4 = vweird.f32 %v4446_v16  ;;  %v3528_v8 = vmul.f32 0.5, %v3527_v54  ;;  %v3538_v32 = vmul.f32 %v4448_v17, %v7114_v24  ;;  %vm4012_vm6 = vmor %vm4010_vm14, %vm4011_vm3  ;;  %v7776_v29 = vld [vmem:[#allocation40_spill] sm:$0xff]  ;;  %v7195_v54 = vpop.xlane.xlu0 %3226 }
 0x779   :  { %v4023_v60 = vsub.f32 1.0, %v4022_v14  ;;  %v3507_v19 = vmul.f32 %v3506_v34, %v7053_v28  ;;  %v3518_v30 = vmul.f32 %v4440_v0, %v3517_v10  ;;  %v4017_v6 = vor.u32 1.1754944e-38, %v4016_v27  ;;  %vm4028_vm7 = vmor %vm4026_vm15, %vm4027_vm4 }
 0x77a   :  { %v4008_v46 = vmul.f32 %v4444_v13, %v4007_v23  ;;  %vm7146_vm5 = vcmp.eq.f32.partialorder %v4030_v58, 8.507059e+37  ;;  %v3529_v20 = vsub.f32 1.5, %v3528_v8  ;;  %v4033_v26 = vor.u32 1.1754944e-38, %v4032_v18 }
 0x77b   :  { %v4024_v47 = vmul.f32 %v4446_v16, %v4023_v60  ;;  %v3509_v56 = vsel %vm3508_vm12, %v7053_v28, %v3507_v19  ;;  %v3519_v0 = vmul.f32 %v3518_v30, %v7067_v12  ;;  %v3539_v51 = vmul.f32 %v4448_v17, %v3538_v32 }
 0x77c   :  { %v4009_v48 = vadd.f32 %v4444_v13, %v4008_v46  ;;  %v3512_v5 = vsel %vm3510_vm13, %v3511_v38, %v3509_v56  ;;  %v3530_v37 = vmul.f32 %v4442_v61, %v3529_v20  ;;  %v4450_v35 = vpop.eup %4449  ;;  %4451 = vrsqrt.f32 %v7167_v15 }
 0x77d   :  { %v4025_v11 = vadd.f32 %v4446_v16, %v4024_v47  ;;  %v3643_v42 = vmul.f32 %v3512_v5, %v6317_v31  ;;  %v3521_v50 = vsel %vm3520_vm0, %v7067_v12, %v3519_v0  ;;  %v3550_v45 = vmul.f32 %v4450_v35, %v7135_v53 }
 0x77e   :  { %v4013_v63 = vsel %vm4012_vm6, %v4444_v13, %v4009_v48  ;;  %v3524_v4 = vsel %vm3522_vm1, %v3523_v22, %v3521_v50  ;;  %v3531_v36 = vmul.f32 %v3530_v37, %v7091_v57  ;;  %vm3532_vm8 = vcmp.eq.f32.partialorder %v7091_v57, inf }
 0x77f   :  { %v4018_v25 = vsel %vm7137_vm2, %v4017_v6, %v4013_v63  ;;  %v4029_v2 = vsel %vm4028_vm7, %v4446_v16, %v4025_v11  ;;  %v7177_v13 = vmax.f32 %v3643_v42, 1e-12  ;;  %v3644_v52 = vmul.f32 %v3524_v4, %v7775_v21  ;;  %v7781_v42 = vld [vmem:[#allocation43_spill] sm:$0xff] }
 0x780   :  { %v4019_v41 = vmul.f32 %v4018_v25, %v7773_v33  ;;  %v4020_v28 = vmul.f32 %v4018_v25, %v7774_v43  ;;  %v4034_v61 = vsel %vm7146_vm5, %v4033_v26, %v4029_v2  ;;  %v3540_v16 = vmul.f32 0.5, %v3539_v51 }
 0x781   :  { %v4035_v38 = vmul.f32 %v4034_v61, %v5790_v44  ;;  %v4036_v31 = vmul.f32 %v4034_v61, %v7688_v55  ;;  %4453 = vrcp.f32 %v7177_v13  ;;  %vm3534_vm9 = vcmp.eq.f32.partialorder %v7091_v57, 0.0 }
 0x782   :  { %4237 = vst [vmem:[#allocation10 + $0x140] sm:$0xff] %v4019_v41  ;;  %v3535_v44 = vand.u32 2147483648, %v7091_v57  ;;  %v7187_v55 = vmax.f32 %v3644_v52, 1e-12  ;;  %v3533_v12 = vsel %vm3532_vm8, %v7091_v57, %v3531_v36  ;;  %v3541_v22 = vsub.f32 1.5, %v3540_v16  ;;  %v7197_v60 = vpop.eup %4451  ;;  %v7237_v41 = vpop.xlane.xlu1 %3229  ;;  %v7782_v36 = vld [vmem:[#allocation26_spill] sm:$0xff] }
 0x783   :  { %4238 = vst [vmem:[#allocation10 + $0x148] sm:$0xff] %v4020_v28  ;;  %v3551_v27 = vmul.f32 %v4450_v35, %v3550_v45  ;;  %v4046_v58 = vand.u32 2147483647, %v7177_v13  ;;  %vm3544_vm10 = vcmp.eq.f32.partialorder %v7114_v24, inf  ;;  %v4048_v1 = vand.u32 2147483648, %v7177_v13 }
 0x784   :  { %4239 = vst [vmem:[#allocation10 + $0x150] sm:$0xff] %v4035_v38  ;;  %v3536_v14 = vsel %vm3534_vm9, %v3535_v44, %v3533_v12  ;;  %4455 = vrcp.f32 %v7187_v55  ;;  %v3542_v7 = vmul.f32 %v4448_v17, %v3541_v22  ;;  %vm3546_vm11 = vcmp.eq.f32.partialorder %v7114_v24, 0.0 }
 0x785   :  { %4240 = vst [vmem:[#allocation10 + $0x158] sm:$0xff] %v4036_v31  ;;  %v3645_v23 = vmul.f32 %v3536_v14, %v7776_v29  ;;  %v3552_v18 = vmul.f32 0.5, %v3551_v27  ;;  %v3547_v57 = vand.u32 2147483648, %v7114_v24  ;;  %vm3556_vm12 = vcmp.eq.f32.partialorder %v7135_v53, inf  ;;  %v7784_v27 = vld [vmem:[#allocation52_spill] sm:$0xff] }
 0x786   :  { %4457 = vrsqrt.f32 %v7195_v54  ;;  %v3543_v46 = vmul.f32 %v3542_v7, %v7114_v24  ;;  %v3562_v17 = vmul.f32 %v7197_v60, %v7167_v15  ;;  %vm4042_vm13 = vweird.f32 %v7177_v13 }
 0x787   :  { %v4454_v34 = vpop.eup %4453  ;;  %v7203_v10 = vmax.f32 %v3645_v23, 1e-12  ;;  %v3553_v8 = vsub.f32 1.5, %v3552_v18  ;;  %vm3558_vm14 = vcmp.eq.f32.partialorder %v7135_v53, 0.0  ;;  %v3559_v19 = vand.u32 2147483648, %v7135_v53 }
 0x788   :  { %v4038_v47 = vmul.f32 %v4454_v34, %v7177_v13  ;;  %vm7212_vm15 = vcmp.eq.f32.partialorder %v4046_v58, 8.507059e+37  ;;  %v4049_v32 = vor.u32 1.1754944e-38, %v4048_v1  ;;  %v4062_v48 = vand.u32 2147483647, %v7187_v55 }
 0x789   :  { %4459 = vrcp.f32 %v7203_v10  ;;  %v3545_v20 = vsel %vm3544_vm10, %v7114_v24, %v3543_v46  ;;  %v3554_v11 = vmul.f32 %v4450_v35, %v3553_v8  ;;  %v3563_v26 = vmul.f32 %v7197_v60, %v3562_v17  ;;  %v7785_v8 = vld [vmem:[#allocation53_spill] sm:$0xff] }
 0x78a   :  { %v4456_v6 = vpop.eup %4455  ;;  %v4039_v39 = vsub.f32 1.0, %v4038_v47  ;;  %vm4043_vm0 = vweird.f32 %v4454_v34  ;;  %vm4058_vm1 = vweird.f32 %v7187_v55  ;;  %v4064_v0 = vand.u32 2147483648, %v7187_v55  ;;  %v7786_v47 = vld [vmem:[#allocation55_spill] sm:$0xff] }
 0x78b   :  { %v4054_v56 = vmul.f32 %v4456_v6, %v7187_v55  ;;  %v3548_v37 = vsel %vm3546_vm11, %v3547_v57, %v3545_v20  ;;  %v3555_v51 = vmul.f32 %v3554_v11, %v7135_v53  ;;  %v3564_v25 = vmul.f32 0.5, %v3563_v26  ;;  %vm4044_vm4 = vmor %vm4042_vm13, %vm4043_vm0 }
 0x78c   :  { %v7225_v63 = vpop.eup %4457  ;;  %v4040_v5 = vmul.f32 %v4454_v34, %v4039_v39  ;;  %vm7230_vm2 = vcmp.eq.f32.partialorder %v4062_v48, 8.507059e+37  ;;  %v3646_v50 = vmul.f32 %v3548_v37, %v7781_v42  ;;  %vm4059_vm3 = vweird.f32 %v4456_v6 }
 0x78d   :  { %v4055_v2 = vsub.f32 1.0, %v4054_v56  ;;  %v3574_v33 = vmul.f32 %v7225_v63, %v7195_v54  ;;  %v3557_v24 = vsel %vm3556_vm12, %v7135_v53, %v3555_v51  ;;  %4461 = vrsqrt.f32 %v7237_v41  ;;  %v7783_v53 = vld [vmem:[#allocation51_spill] sm:$0xff]  ;;  %vm4060_vm7 = vmor %vm4058_vm1, %vm4059_vm3  ;;  %v7787_v51 = vld [vmem:[#allocation56_spill] sm:$0xff] }
 0x78e   :  { %v4041_v43 = vadd.f32 %v4454_v34, %v4040_v5  ;;  %v7246_v4 = vmax.f32 %v3646_v50, 1e-12  ;;  %v3560_v38 = vsel %vm3558_vm14, %v3559_v19, %v3557_v24  ;;  %v3565_v31 = vsub.f32 1.5, %v3564_v25 }
 0x78f   :  { %v4460_v28 = vpop.eup %4459  ;;  %v4056_v61 = vmul.f32 %v4456_v6, %v4055_v2  ;;  %v3647_v16 = vmul.f32 %v3560_v38, %v7782_v36  ;;  %vm3568_vm5 = vcmp.eq.f32.partialorder %v7167_v15, inf  ;;  %v3575_v45 = vmul.f32 %v7225_v63, %v3574_v33  ;;  %v7788_v2 = vld [vmem:[#allocation58_spill] sm:$0xff] }
 0x790   :  { %v4045_v21 = vsel %vm4044_vm4, %v4454_v34, %v4041_v43  ;;  %v4070_v52 = vmul.f32 %v4460_v28, %v7203_v10  ;;  %v4065_v12 = vor.u32 1.1754944e-38, %v4064_v0  ;;  %4463 = vrcp.f32 %v7246_v4  ;;  %v7789_v43 = vld [vmem:[#allocation19_spill] sm:$0xff] }
 0x791   :  { %v4050_v13 = vsel %vm7212_vm15, %v4049_v32, %v4045_v21  ;;  %v4057_v44 = vadd.f32 %v4456_v6, %v4056_v61  ;;  %vm3570_vm6 = vcmp.eq.f32.partialorder %v7167_v15, 0.0  ;;  %v4078_v1 = vand.u32 2147483647, %v7203_v10 }
 0x792   :  { %v4051_v22 = vmul.f32 %v4050_v13, %v7783_v53  ;;  %v4052_v14 = vmul.f32 %v4050_v13, %v7784_v27  ;;  %v4071_v58 = vsub.f32 1.0, %v4070_v52  ;;  %v4080_v23 = vand.u32 2147483648, %v7203_v10  ;;  %v7792_v27 = vld [vmem:[#allocation28_spill] sm:$0xff] }
 0x793   :  { %v4061_v29 = vsel %vm4060_vm7, %v4456_v6, %v4057_v44  ;;  %v7265_v7 = vmax.f32 %v3647_v16, 1e-12  ;;  %v3566_v18 = vmul.f32 %v7197_v60, %v3565_v31  ;;  %v7268_v57 = vpop.eup %4461  ;;  %vm4075_vm8 = vweird.f32 %v4460_v28 }
 0x794   :  { %4241 = vst [vmem:[#allocation10 + $0x160] sm:$0xff] %v4051_v22  ;;  %v4066_v34 = vsel %vm7230_vm2, %v4065_v12, %v4061_v29  ;;  %v4072_v46 = vmul.f32 %v4460_v28, %v4071_v58  ;;  %v3576_v55 = vmul.f32 0.5, %v3575_v45  ;;  %v3571_v30 = vand.u32 2147483648, %v7167_v15  ;;  %v7793_v29 = vld [vmem:[#allocation59_spill] sm:$0xff] }
 0x795   :  { %4242 = vst [vmem:[#allocation10 + $0x168] sm:$0xff] %v4052_v14  ;;  %v4067_v17 = vmul.f32 %v4066_v34, %v7785_v8  ;;  %v4068_v19 = vmul.f32 %v4066_v34, %v7786_v47  ;;  %4465 = vrcp.f32 %v7265_v7  ;;  %vm4074_vm9 = vweird.f32 %v7203_v10 }
 0x796   :  { %v4073_v32 = vadd.f32 %v4460_v28, %v4072_v46  ;;  %vm3580_vm10 = vcmp.eq.f32.partialorder %v7195_v54, inf  ;;  %vm3582_vm11 = vcmp.eq.f32.partialorder %v7195_v54, 0.0  ;;  %v4464_v60 = vpop.eup %4463  ;;  %vm4076_vm12 = vmor %vm4074_vm9, %vm4075_vm8  ;;  %v4081_v48 = vor.u32 1.1754944e-38, %v4080_v23  ;;  %v7794_v23 = vld [vmem:[#allocation61_spill] sm:$0xff] }
 0x797   :  { %4243 = vst [vmem:[#allocation10 + $0x170] sm:$0xff] %v4067_v17  ;;  %v3567_v6 = vmul.f32 %v3566_v18, %v7167_v15  ;;  %v3577_v39 = vsub.f32 1.5, %v3576_v55  ;;  %v3586_v20 = vmul.f32 %v7268_v57, %v7237_v41  ;;  %vm4079_vm13 = vcmp.eq.f32.partialorder %v4078_v1, 8.507059e+37 }
 0x798   :  { %4244 = vst [vmem:[#allocation10 + $0x178] sm:$0xff] %v4068_v19  ;;  %v4077_v11 = vsel %vm4076_vm12, %v4460_v28, %v4073_v32  ;;  %v4086_v26 = vmul.f32 %v4464_v60, %v7246_v4  ;;  %v4094_v10 = vand.u32 2147483647, %v7246_v4  ;;  %v4096_v0 = vand.u32 2147483648, %v7246_v4 }
 0x799   :  { %v4082_v56 = vsel %vm4079_vm13, %v4081_v48, %v4077_v11  ;;  %v3569_v5 = vsel %vm3568_vm5, %v7167_v15, %v3567_v6  ;;  %v3578_v37 = vmul.f32 %v7225_v63, %v3577_v39  ;;  %v3583_v61 = vand.u32 2147483648, %v7195_v54 }
 0x79a   :  { %v4083_v25 = vmul.f32 %v4082_v56, %v7787_v51  ;;  %v4084_v35 = vmul.f32 %v4082_v56, %v7788_v2  ;;  %v4087_v42 = vsub.f32 1.0, %v4086_v26  ;;  %v3572_v50 = vsel %vm3570_vm6, %v3571_v30, %v3569_v5  ;;  %v7797_v56 = vld [vmem:[#allocation17_spill] sm:$0xff] }
 0x79b   :  { %v4466_v33 = vpop.eup %4465  ;;  %v3648_v24 = vmul.f32 %v3572_v50, %v7789_v43  ;;  %v3579_v28 = vmul.f32 %v3578_v37, %v7195_v54  ;;  %v3587_v38 = vmul.f32 %v7268_v57, %v3586_v20  ;;  %vm4090_vm14 = vweird.f32 %v7246_v4 }
 0x79c   :  { %4245 = vst [vmem:[#allocation10 + $0x180] sm:$0xff] %v4083_v25  ;;  %v4088_v31 = vmul.f32 %v4464_v60, %v4087_v42  ;;  %vm4091_vm15 = vweird.f32 %v4464_v60  ;;  %v4102_v63 = vmul.f32 %v4466_v33, %v7265_v7  ;;  %vm7299_vm0 = vcmp.eq.f32.partialorder %v4094_v10, 8.507059e+37 }
 0x79d   :  { %4246 = vst [vmem:[#allocation10 + $0x188] sm:$0xff] %v4084_v35  ;;  %v3680_v21 = vmax.f32 %v3648_v24, 1e-12  ;;  %v3581_v52 = vsel %vm3580_vm10, %v7195_v54, %v3579_v28  ;;  %v3588_v36 = vmul.f32 0.5, %v3587_v38  ;;  %v4097_v45 = vor.u32 1.1754944e-38, %v4096_v0  ;;  %vm4092_vm1 = vmor %vm4090_vm14, %vm4091_vm15  ;;  %v7798_v38 = vld [vmem:[#allocation66_spill] sm:$0xff] }
 0x79e   :  { %v4089_v16 = vadd.f32 %v4464_v60, %v4088_v31  ;;  %v4103_v13 = vsub.f32 1.0, %v4102_v63  ;;  %v3584_v4 = vsel %vm3582_vm11, %v3583_v61, %v3581_v52  ;;  %vm4107_vm2 = vweird.f32 %v4466_v33  ;;  %v7799_v63 = vld [vmem:[#allocation69_spill] sm:$0xff] }
 0x79f   :  { %v4110_v44 = vand.u32 2147483647, %v7265_v7  ;;  %v4112_v12 = vand.u32 2147483648, %v7265_v7  ;;  %4467 = vrcp.f32 %v3680_v21  ;;  %v3649_v14 = vmul.f32 %v3584_v4, %v7792_v27 }
 0x7a0   :  { %v4093_v53 = vsel %vm4092_vm1, %v4464_v60, %v4089_v16  ;;  %v4104_v22 = vmul.f32 %v4466_v33, %v4103_v13  ;;  %v3589_v58 = vsub.f32 1.5, %v3588_v36  ;;  %vm4106_vm3 = vweird.f32 %v7265_v7  ;;  %v7795_v7 = vld [vmem:[#allocation63_spill] sm:$0xff]  ;;  %v7796_v60 = vld [vmem:[#allocation64_spill] sm:$0xff] }
 0x7a1   :  { %v4098_v1 = vsel %vm7299_vm0, %v4097_v45, %v4093_v53  ;;  %v3681_v46 = vmax.f32 %v3649_v14, 1e-12  ;;  %vm4108_vm4 = vmor %vm4106_vm3, %vm4107_vm2  ;;  %v4113_v55 = vor.u32 1.1754944e-38, %v4112_v12  ;;  %vm4111_vm5 = vcmp.eq.f32.partialorder %v4110_v44, 8.507059e+37  ;;  %v7801_v14 = vld [vmem:[#allocation70_spill] sm:$0xff] }
 0x7a2   :  { %v4099_v54 = vmul.f32 %v4098_v1, %v7793_v29  ;;  %v4100_v18 = vmul.f32 %v4098_v1, %v7794_v23  ;;  %v4105_v34 = vadd.f32 %v4466_v33, %v4104_v22  ;;  %v3590_v8 = vmul.f32 %v7268_v57, %v3589_v58  ;;  %v7800_v22 = vld [vmem:[#allocation67_spill] sm:$0xff] }
 0x7a3   :  { %4469 = vrcp.f32 %v3681_v46  ;;  %vm3592_vm6 = vcmp.eq.f32.partialorder %v7237_v41, inf  ;;  %v3595_v39 = vand.u32 2147483648, %v7237_v41  ;;  %vm3594_vm7 = vcmp.eq.f32.partialorder %v7237_v41, 0.0 }
 0x7a4   :  { %4247 = vst [vmem:[#allocation10 + $0x190] sm:$0xff] %v4099_v54  ;;  %v4109_v17 = vsel %vm4108_vm4, %v4466_v33, %v4105_v34  ;;  %v3591_v30 = vmul.f32 %v3590_v8, %v7237_v41  ;;  %v4128_v10 = vand.u32 2147483648, %v3680_v21  ;;  %v4126_v51 = vand.u32 2147483647, %v3680_v21 }
 0x7a5   :  { %v4468_v47 = vpop.eup %4467  ;;  %4248 = vst [vmem:[#allocation10 + $0x198] sm:$0xff] %v4100_v18  ;;  %v4114_v19 = vsel %vm4111_vm5, %v4113_v55, %v4109_v17  ;;  %vm4122_vm9 = vweird.f32 %v3680_v21  ;;  %v4144_v33 = vand.u32 2147483648, %v3681_v46  ;;  %v4142_v61 = vand.u32 2147483647, %v3681_v46 }
 0x7a6   :  { %v4115_v32 = vmul.f32 %v4114_v19, %v7795_v7  ;;  %v4116_v48 = vmul.f32 %v4114_v19, %v7796_v60  ;;  %v4118_v6 = vmul.f32 %v4468_v47, %v3680_v21  ;;  %v3593_v57 = vsel %vm3592_vm6, %v7237_v41, %v3591_v30 }
 0x7a7   :  { %v3596_v11 = vsel %vm3594_vm7, %v3595_v39, %v3593_v57  ;;  %vm4123_vm8 = vweird.f32 %v4468_v47  ;;  %v4129_v41 = vor.u32 1.1754944e-38, %v4128_v10  ;;  %vm4127_vm11 = vcmp.eq.f32.partialorder %v4126_v51, 8.507059e+37  ;;  %v7803_v39 = vld [vmem:[#allocation71_spill] sm:$0xff] }
 0x7a8   :  { %4249 = vst [vmem:[#allocation10 + $0x1a0] sm:$0xff] %v4115_v32  ;;  %v4119_v20 = vsub.f32 1.0, %v4118_v6  ;;  %v3650_v0 = vmul.f32 %v3596_v11, %v7797_v56  ;;  %vm4124_vm10 = vmor %vm4122_vm9, %vm4123_vm8  ;;  %vm4138_vm13 = vweird.f32 %v3681_v46  ;;  %v4145_v21 = vor.u32 1.1754944e-38, %v4144_v33 }
 0x7a9   :  { %4250 = vst [vmem:[#allocation10 + $0x1a8] sm:$0xff] %v4116_v48  ;;  %v4470_v5 = vpop.eup %4469  ;;  %vm4143_vm15 = vcmp.eq.f32.partialorder %v4142_v61, 8.507059e+37  ;;  %v7802_v48 = vld [vmem:[#allocation68_spill] sm:$0xff] }
 0x7aa   :  { %v7324_v26 = vpop.xlane.xlu2 %3232  ;;  %v4120_v37 = vmul.f32 %v4468_v47, %v4119_v20  ;;  %v4134_v25 = vmul.f32 %v4470_v5, %v3681_v46  ;;  %v3682_v2 = vmax.f32 %v3650_v0, 1e-12  ;;  %vm4139_vm12 = vweird.f32 %v4470_v5 }
 0x7ab   :  { %4471 = vrsqrt.f32 %v7324_v26  ;;  %vm4140_vm14 = vmor %vm4138_vm13, %vm4139_vm12  ;;  %vm3604_vm3 = vcmp.eq.f32.partialorder %v7324_v26, inf  ;;  %vm3606_vm4 = vcmp.eq.f32.partialorder %v7324_v26, 0.0 }
 0x7ac   :  { %v4121_v35 = vadd.f32 %v4468_v47, %v4120_v37  ;;  %v4135_v42 = vsub.f32 1.0, %v4134_v25  ;;  %4473 = vrcp.f32 %v3682_v2  ;;  %v4160_v54 = vand.u32 2147483648, %v3682_v2 }
 0x7ad   :  { %v4158_v18 = vand.u32 2147483647, %v3682_v2  ;;  %vm4154_vm1 = vweird.f32 %v3682_v2 }
 0x7ae   :  { %v4125_v50 = vsel %vm4124_vm10, %v4468_v47, %v4121_v35  ;;  %v4136_v28 = vmul.f32 %v4470_v5, %v4135_v42  ;;  %v4161_v17 = vor.u32 1.1754944e-38, %v4160_v54  ;;  %v3607_v47 = vand.u32 2147483648, %v7324_v26 }
 0x7af   :  { %v4130_v24 = vsel %vm4127_vm11, %v4129_v41, %v4125_v50  ;;  %vm4159_vm5 = vcmp.eq.f32.partialorder %v4158_v18, 8.507059e+37 }
 0x7b0   :  { %v4131_v31 = vmul.f32 %v4130_v24, %v7798_v38  ;;  %v4132_v15 = vmul.f32 %v4130_v24, %v7799_v63  ;;  %v4137_v36 = vadd.f32 %v4470_v5, %v4136_v28 }
 0x7b1   :  { %v4472_v43 = vpop.eup %4471 }
 0x7b2   :  { %v3598_v52 = vmul.f32 %v4472_v43, %v7324_v26  ;;  %4251 = vst [vmem:[#allocation10 + $0x1b0] sm:$0xff] %v4131_v31  ;;  %v4474_v45 = vpop.eup %4473  ;;  %v4141_v13 = vsel %vm4140_vm14, %v4470_v5, %v4137_v36 }
 0x7b3   :  { %4252 = vst [vmem:[#allocation10 + $0x1b8] sm:$0xff] %v4132_v15  ;;  %v4146_v44 = vsel %vm4143_vm15, %v4145_v21, %v4141_v13  ;;  %v4150_v12 = vmul.f32 %v4474_v45, %v3682_v2  ;;  %vm4155_vm0 = vweird.f32 %v4474_v45 }
 0x7b4   :  { %v3599_v16 = vmul.f32 %v4472_v43, %v3598_v52  ;;  %v3236_v4 = vpop.xlane.xlu0 %3235  ;;  %v4147_v27 = vmul.f32 %v4146_v44, %v7800_v22  ;;  %v4148_v58 = vmul.f32 %v4146_v44, %v7801_v14  ;;  %vm4156_vm2 = vmor %vm4154_vm1, %vm4155_vm0 }
 0x7b5   :  { %4475 = vrsqrt.f32 %v3236_v4  ;;  %v4151_v1 = vsub.f32 1.0, %v4150_v12  ;;  %vm3616_vm6 = vcmp.eq.f32.partialorder %v3236_v4, inf  ;;  %vm3618_vm7 = vcmp.eq.f32.partialorder %v3236_v4, 0.0 }
 0x7b6   :  { %v3600_v53 = vmul.f32 0.5, %v3599_v16  ;;  %4253 = vst [vmem:[#allocation10 + $0x1c0] sm:$0xff] %v4147_v27 }
 0x7b7   :  { %4254 = vst [vmem:[#allocation10 + $0x1c8] sm:$0xff] %v4148_v58  ;;  %v4152_v23 = vmul.f32 %v4474_v45, %v4151_v1 }
 0x7b8   :  { %v3601_v29 = vsub.f32 1.5, %v3600_v53 }
 0x7b9   :  { %v4153_v46 = vadd.f32 %v4474_v45, %v4152_v23 }
 0x7ba   :  { %v3602_v34 = vmul.f32 %v4472_v43, %v3601_v29 }
 0x7bb   :  { %v4476_v8 = vpop.eup %4475  ;;  %v4157_v19 = vsel %vm4156_vm2, %v4474_v45, %v4153_v46 }
 0x7bc   :  { %v3603_v55 = vmul.f32 %v3602_v34, %v7324_v26  ;;  %v3610_v7 = vmul.f32 %v4476_v8, %v3236_v4  ;;  %v4162_v32 = vsel %vm4159_vm5, %v4161_v17, %v4157_v19 }
 0x7bd   :  { %v4163_v6 = vmul.f32 %v4162_v32, %v7802_v48  ;;  %v4164_v57 = vmul.f32 %v4162_v32, %v7803_v39 }
 0x7be   :  { %v3605_v30 = vsel %vm3604_vm3, %v7324_v26, %v3603_v55  ;;  %v3611_v11 = vmul.f32 %v4476_v8, %v3610_v7  ;;  %v3619_v26 = vand.u32 2147483648, %v3236_v4 }
 0x7bf   :  { %v3608_v60 = vsel %vm3606_vm4, %v3607_v47, %v3605_v30  ;;  %4255 = vst [vmem:[#allocation10 + $0x1d0] sm:$0xff] %v4163_v6 }
 0x7c0   :  { %v3651_v20 = vmul.f32 %v3608_v60, %v6599_v40  ;;  %v3612_v56 = vmul.f32 0.5, %v3611_v11  ;;  %4256 = vst [vmem:[#allocation10 + $0x1d8] sm:$0xff] %v4164_v57 }
 0x7c2   :  { %v3683_v10 = vmax.f32 %v3651_v20, 1e-12  ;;  %v3613_v0 = vsub.f32 1.5, %v3612_v56 }
 0x7c4   :  { %4477 = vrcp.f32 %v3683_v10  ;;  %v3614_v5 = vmul.f32 %v4476_v8, %v3613_v0  ;;  %v4176_v40 = vand.u32 2147483648, %v3683_v10  ;;  %v4174_v33 = vand.u32 2147483647, %v3683_v10 }
 0x7c5   :  { %vm4170_vm9 = vweird.f32 %v3683_v10 }
 0x7c6   :  { %v3615_v37 = vmul.f32 %v3614_v5, %v3236_v4  ;;  %v4177_v28 = vor.u32 1.1754944e-38, %v4176_v40  ;;  %vm4175_vm11 = vcmp.eq.f32.partialorder %v4174_v33, 8.507059e+37 }
 0x7c8   :  { %v3617_v2 = vsel %vm3616_vm6, %v3236_v4, %v3615_v37 }
 0x7c9   :  { %v3620_v35 = vsel %vm3618_vm7, %v3619_v26, %v3617_v2 }
 0x7ca   :  { %v4478_v51 = vpop.eup %4477  ;;  %v3652_v42 = vmul.f32 %v3620_v35, %v6606_v59 }
 0x7cb   :  { %v4166_v25 = vmul.f32 %v4478_v51, %v3683_v10  ;;  %vm4171_vm8 = vweird.f32 %v4478_v51 }
 0x7cc   :  { %v3684_v43 = vmax.f32 %v3652_v42, 1e-12  ;;  %vm4172_vm10 = vmor %vm4170_vm9, %vm4171_vm8 }
 0x7cd   :  { %v4167_v41 = vsub.f32 1.0, %v4166_v25 }
 0x7ce   :  { %4479 = vrcp.f32 %v3684_v43  ;;  %v4192_v36 = vand.u32 2147483648, %v3684_v43  ;;  %v4190_v16 = vand.u32 2147483647, %v3684_v43  ;;  %vm4186_vm13 = vweird.f32 %v3684_v43 }
 0x7cf   :  { %v4168_v50 = vmul.f32 %v4478_v51, %v4167_v41 }
 0x7d0   :  { %v4193_v13 = vor.u32 1.1754944e-38, %v4192_v36  ;;  %vm4191_vm15 = vcmp.eq.f32.partialorder %v4190_v16, 8.507059e+37 }
 0x7d1   :  { %v4169_v24 = vadd.f32 %v4478_v51, %v4168_v50 }
 0x7d3   :  { %v4173_v61 = vsel %vm4172_vm10, %v4478_v51, %v4169_v24 }
 0x7d4   :  { %v4178_v38 = vsel %vm4175_vm11, %v4177_v28, %v4173_v61  ;;  %v4480_v15 = vpop.eup %4479 }
 0x7d5   :  { %v4179_v31 = vmul.f32 %v4178_v38, %v5900_v3  ;;  %v4180_v63 = vmul.f32 %v4178_v38, %v7745_v62  ;;  %v4182_v59 = vmul.f32 %v4480_v15, %v3684_v43  ;;  %vm4187_vm12 = vweird.f32 %v4480_v15 }
 0x7d6   :  { %vm4188_vm14 = vmor %vm4186_vm13, %vm4187_vm12 }
 0x7d7   :  { %4257 = vst [vmem:[#allocation10 + $0x1e0] sm:$0xff] %v4179_v31  ;;  %v4183_v52 = vsub.f32 1.0, %v4182_v59 }
 0x7d8   :  { %4258 = vst [vmem:[#allocation10 + $0x1e8] sm:$0xff] %v4180_v63 }
 0x7d9   :  { %v4184_v21 = vmul.f32 %v4480_v15, %v4183_v52 }
 0x7db   :  { %v4185_v45 = vadd.f32 %v4480_v15, %v4184_v21 }
 0x7dd   :  { %v4189_v4 = vsel %vm4188_vm14, %v4480_v15, %v4185_v45 }
 0x7de   :  { %v4194_v3 = vsel %vm4191_vm15, %v4193_v13, %v4189_v4 }
 0x7df   :  { %v4195_v62 = vmul.f32 %v4194_v3, %v5902_v9  ;;  %v4196_v44 = vmul.f32 %v4194_v3, %v6079_v49 }
 0x7e1   :  { %4259 = vst [vmem:[#allocation10 + $0x1f0] sm:$0xff] %v4195_v62 }
 0x7e2   :  { %4260 = vst [vmem:[#allocation10 + $0x1f8] sm:$0xff] %v4196_v44 }
 0x7e3   :  { %4273 = dma.vmem_to_hbm [thread:$0]  %s4266_s8, 8192, %s4268_s11, [#allocation4], %s4610_s23, %s4610_s23, %s4611_s24  }
 0x7e4   :  { %4607 = dma.done.wait [#allocation4], 8192  }
 0x7e5   :  { %4608 = vsyncadd [#allocation4], 4294959104 }
 0x7e6   :  { %4278 = vsyncpa [#allocation3], 1 }
 0x7e7   :  { %4279 = vsyncpa [#allocation6], 1 }
 0x7e8   :  { %4280 = vsyncpa [#allocation9], 1 }
 0x7e9   :  { %4281 = vsyncpa [#allocation4], 1 }

</bundles_post_ra>
